<compile_context>
chip_gen: v5e
topology: v5e:2x2
jax: 0.10.0
libtpu: 0.0.40
codegen_flags: <defaults>
</compile_context>

<pallas_src>
import math

import jax
import jax.numpy as jnp
from jax import lax
from jax.experimental import pallas as pl
from jax.experimental.pallas import tpu as pltpu

INPUT_SIZE = 18
HIDDEN = 18
HP = 24          # per-gate hidden size padded to a sublane multiple (8 | 24 >= 18)


def gru_lstm_kernel(x_ref, w_gih_ref, w_ghh_ref, b_gx_ref, b_ghn_ref,
                    w_lih_ref, w_lhh_ref, b_lx_ref, w_fc_ref, b_fc_ref,
                    out_ref):
    """One batch tile: fused GRU -> LSTM -> Linear over all T timesteps.

    Layout: batch on lanes (TB), hidden on sublanes (padded to HP per gate).
      x_ref : (T, I, TB)    out_ref: (T, TB)
      w_gih : (3*HP, I)     w_ghh  : (3*HP, HP)   b_gx: (3*HP, 1)   b_ghn: (HP, 1)
      w_lih : (4*HP, HP)    w_lhh  : (4*HP, HP)   b_lx: (4*HP, 1)
      w_fc  : (HP, 1)       b_fc   : (1, 1)
    LSTM gates are packed in (i, f, o, g) order so the sigmoid gates are contiguous.
    """
    f32 = jnp.float32
    T, TB = out_ref.shape

    def step(t, h_g, h_l, c):
        # ---- GRU cell (PyTorch r,z,n): one fused recurrent dot on the h-chain ----
        x_t = x_ref[t]                                               # (I, TB)
        gx = (jnp.dot(w_gih_ref[...], x_t, preferred_element_type=f32)
              + b_gx_ref[...]).reshape(3, HP, TB)                    # off the h-chain
        a = jnp.dot(w_ghh_ref[...], h_g,
                    preferred_element_type=f32).reshape(3, HP, TB)
        rz = jax.nn.sigmoid(gx[0:2] + a[0:2])                        # batched r|z
        n = jnp.tanh(gx[2] + rz[0] * (a[2] + b_ghn_ref[...]))
        h_g = (1.0 - rz[1]) * n + rz[1] * h_g

        # ---- LSTM cell (packed i,f,o,g): one fused recurrent dot on the h-chain ----
        pre = (jnp.dot(w_lih_ref[...], h_g, preferred_element_type=f32)
               + jnp.dot(w_lhh_ref[...], h_l, preferred_element_type=f32)
               + b_lx_ref[...]).reshape(4, HP, TB)
        ifo = jax.nn.sigmoid(pre[0:3])                               # batched i|f|o
        g = jnp.tanh(pre[3])
        c = ifo[1] * c + ifo[0] * g
        h_l = ifo[2] * jnp.tanh(c)

        # ---- fused Linear(18->1): weighted sublane reduce, lane-dense row store ----
        out_ref[pl.ds(t, 1), :] = (
            jnp.sum(w_fc_ref[...] * h_l, axis=0, keepdims=True) + b_fc_ref[...])
        return h_g, h_l, c

    U = 4                                    # manual unroll for LLO visibility
    n_main = (T // U) * U

    def body(s, carry):
        h_g, h_l, c = carry
        t0 = s * U
        for k in range(U):                   # static in-body unroll
            h_g, h_l, c = step(t0 + k, h_g, h_l, c)
        return (h_g, h_l, c)

    zeros = jnp.zeros((HP, TB), f32)
    h_g, h_l, c = lax.fori_loop(0, T // U, body, (zeros, zeros, zeros))
    for t in range(n_main, T):               # static remainder epilogue (any T)
        h_g, h_l, c = step(t, h_g, h_l, c)


def _round_up(n, m):
    return ((n + m - 1) // m) * m


def _pack_w(w, gate_order, in_pad):
    """Stack per-gate (H, in_dim) row blocks into (len*HP, in_pad), zero padded."""
    H = HIDDEN
    in_dim = w.shape[1]
    parts = [jnp.pad(w[g * H:(g + 1) * H, :],
                     ((0, HP - H), (0, in_pad - in_dim))) for g in gate_order]
    return jnp.concatenate(parts, axis=0).astype(jnp.float32)


def _pack_b(vecs):
    """Stack per-gate (H,) bias vectors into (len*HP, 1), zero padded."""
    H = HIDDEN
    parts = [jnp.pad(v, (0, HP - H)) for v in vecs]
    return jnp.concatenate(parts)[:, None].astype(jnp.float32)


def gru_lstm_forward(x, params, *, batch_tile=128):
    """x: (B, T, 18) -> (B, T, 1), matching the PyTorch GRU_LSTM forward pass."""
    B, T, I = x.shape
    assert I == INPUT_SIZE
    H = HIDDEN
    p = params

    TB = _round_up(max(batch_tile, 128), 128)        # lane-dense batch tile
    B_pad = _round_up(B, TB)
    nt = B_pad // TB

    xf = x.astype(jnp.float32)
    if B_pad != B:
        xf = jnp.pad(xf, ((0, B_pad - B), (0, 0), (0, 0)))
    # (nt, T, I, TB): batch on lanes; each grid block is one contiguous HBM slab.
    x_r = xf.reshape(nt, TB, T, I).transpose(0, 2, 3, 1)

    gbi, gbh = p['g_bih'], p['g_bhh']
    lbi, lbh = p['l_bih'], p['l_bhh']

    w_gih = _pack_w(p['g_wih'], (0, 1, 2), I)            # (3*HP, I)
    w_ghh = _pack_w(p['g_whh'], (0, 1, 2), HP)           # (3*HP, HP)
    b_gx = _pack_b((gbi[0:H] + gbh[0:H],                 # r: b_ir + b_hr
                    gbi[H:2 * H] + gbh[H:2 * H],         # z: b_iz + b_hz
                    gbi[2 * H:3 * H]))                   # n: b_in (b_hn stays in-loop)
    b_ghn = _pack_b((gbh[2 * H:3 * H],))                 # (HP, 1)
    # LSTM gates repacked from PyTorch (i,f,g,o) to (i,f,o,g): sigmoids contiguous.
    w_lih = _pack_w(p['l_wih'], (0, 1, 3, 2), HP)        # (4*HP, HP)
    w_lhh = _pack_w(p['l_whh'], (0, 1, 3, 2), HP)        # (4*HP, HP)
    b_lx = _pack_b((lbi[0:H] + lbh[0:H],
                    lbi[H:2 * H] + lbh[H:2 * H],
                    lbi[3 * H:4 * H] + lbh[3 * H:4 * H],
                    lbi[2 * H:3 * H] + lbh[2 * H:3 * H]))
    w_fc = jnp.pad(p['fc_w'].T, ((0, HP - H), (0, 0))).astype(jnp.float32)  # (HP, 1)
    b_fc = p['fc_b'].reshape(1, 1).astype(jnp.float32)

    w_args = (w_gih, w_ghh, b_gx, b_ghn, w_lih, w_lhh, b_lx, w_fc, b_fc)

    in_specs = [pl.BlockSpec((None, T, I, TB), lambda n: (n, 0, 0, 0))]
    in_specs += [pl.BlockSpec(a.shape, lambda n: (0, 0)) for a in w_args]
    out_specs = pl.BlockSpec((None, T, TB), lambda n: (n, 0, 0))

    out_r = pl.pallas_call(
        gru_lstm_kernel,
        out_shape=jax.ShapeDtypeStruct((nt, T, TB), jnp.float32),
        grid=(nt,),
        in_specs=in_specs,
        out_specs=out_specs,
        compiler_params=pltpu.CompilerParams(
            dimension_semantics=("parallel",),
            vmem_limit_bytes=32 * 1024 * 1024),
    )(x_r, *w_args)

    out = jnp.transpose(out_r, (0, 2, 1)).reshape(B_pad, T)
    return out[:B, :, None]                               # (B, T, 1)


gru_lstm_forward_jit = jax.jit(gru_lstm_forward, static_argnames=("batch_tile",))


def init_params(key):
    """Deterministic init mirroring PyTorch uniform(-1/sqrt(H), 1/sqrt(H))."""
    H, I = HIDDEN, INPUT_SIZE
    k = 1.0 / math.sqrt(H)
    ks = jax.random.split(key, 10)
    u = lambda kk, shape: jax.random.uniform(kk, shape, jnp.float32, -k, k)
    return {
        'g_wih': u(ks[0], (3 * H, I)),   # GRU weight_ih_l0 (gates r,z,n stacked)
        'g_whh': u(ks[1], (3 * H, H)),
        'g_bih': u(ks[2], (3 * H,)),
        'g_bhh': u(ks[3], (3 * H,)),
        'l_wih': u(ks[4], (4 * H, H)),   # LSTM weight_ih_l0 (gates i,f,g,o stacked)
        'l_whh': u(ks[5], (4 * H, H)),
        'l_bih': u(ks[6], (4 * H,)),
        'l_bhh': u(ks[7], (4 * H,)),
        'fc_w':  u(ks[8], (1, H)),
        'fc_b':  u(ks[9], (1,)),
    }


# ---------------- plain-JAX reference for correctness checking ----------------
def gru_lstm_reference(x, p):
    H = HIDDEN
    B = x.shape[0]
    x_tm = jnp.transpose(x, (1, 0, 2)).astype(jnp.float32)   # (T, B, I)

    def gru_step(h, xt):
        gi = xt @ p['g_wih'].T + p['g_bih']
        gh = h @ p['g_whh'].T + p['g_bhh']
        r = jax.nn.sigmoid(gi[:, :H] + gh[:, :H])
        z = jax.nn.sigmoid(gi[:, H:2 * H] + gh[:, H:2 * H])
        n = jnp.tanh(gi[:, 2 * H:] + r * gh[:, 2 * H:])
        h_new = (1.0 - z) * n + z * h
        return h_new, h_new

    _, gru_h = lax.scan(gru_step, jnp.zeros((B, H), jnp.float32), x_tm)

    def lstm_step(carry, xt):
        h, c = carry
        gi = xt @ p['l_wih'].T + p['l_bih']
        gh = h @ p['l_whh'].T + p['l_bhh']
        i = jax.nn.sigmoid(gi[:, :H] + gh[:, :H])
        f = jax.nn.sigmoid(gi[:, H:2 * H] + gh[:, H:2 * H])
        g = jnp.tanh(gi[:, 2 * H:3 * H] + gh[:, 2 * H:3 * H])
        o = jax.nn.sigmoid(gi[:, 3 * H:] + gh[:, 3 * H:])
        c_new = f * c + i * g
        h_new = o * jnp.tanh(c_new)
        return (h_new, c_new), h_new

    zeros = jnp.zeros((B, H), jnp.float32)
    _, lstm_h = lax.scan(lstm_step, (zeros, zeros), gru_h)

    out = lstm_h @ p['fc_w'].T + p['fc_b']       # (T, B, 1)
    return jnp.transpose(out, (1, 0, 2))         # (B, T, 1)


if __name__ == "__main__":
    key = jax.random.PRNGKey(0)
    pkey, xkey1, xkey2 = jax.random.split(key, 3)
    params = init_params(pkey)

    # main check: two batch-tile grid blocks (B=136 pads to 256 at TB=128), T % 4 == 0
    B, T = 136, 16
    x = jax.random.normal(xkey1, (B, T, INPUT_SIZE), jnp.float32)
    out = jax.block_until_ready(gru_lstm_forward_jit(x, params))
    ref = gru_lstm_reference(x, params)
    assert out.shape == (B, T, 1), out.shape
    err = float(jnp.max(jnp.abs(out - ref)))
    assert err < 5e-4, f"max abs err = {err}"

    # secondary check: tiny batch (padding path) + T with a remainder epilogue
    x2 = jax.random.normal(xkey2, (3, 10, INPUT_SIZE), jnp.float32)
    out2 = jax.block_until_ready(gru_lstm_forward_jit(x2, params))
    ref2 = gru_lstm_reference(x2, params)
    assert out2.shape == (3, 10, 1), out2.shape
    err2 = float(jnp.max(jnp.abs(out2 - ref2)))
    assert err2 < 5e-4, f"max abs err = {err2}"

    print("KERNEL_OK")
</pallas_src>

<mosaic_0001>
module attributes {stable_mosaic.version = 11 : i64} {
  func.func @gru_lstm_kernel(%arg0: i32, %arg1: memref<1x16x18x128xf32, #tpu.memory_space<vmem>>, %arg2: memref<72x18xf32, #tpu.memory_space<vmem>>, %arg3: memref<72x24xf32, #tpu.memory_space<vmem>>, %arg4: memref<72x1xf32, #tpu.memory_space<vmem>>, %arg5: memref<24x1xf32, #tpu.memory_space<vmem>>, %arg6: memref<96x24xf32, #tpu.memory_space<vmem>>, %arg7: memref<96x24xf32, #tpu.memory_space<vmem>>, %arg8: memref<96x1xf32, #tpu.memory_space<vmem>>, %arg9: memref<24x1xf32, #tpu.memory_space<vmem>>, %arg10: memref<1x1xf32, #tpu.memory_space<vmem>>, %arg11: memref<1x16x128xf32, #tpu.memory_space<vmem>>) attributes {dimension_semantics = [#tpu.dimension_semantics<parallel>], iteration_bounds = array<i64: 2>, scalar_prefetch = 0 : i64, scratch_operands = 0 : i64, tpu.core_type = #tpu.core_type<tc>, window_params = [{transform_indices = @transform_0, window_bounds = array<i64: 1, 16, 18, 128>}, {pipeline_mode = #tpu.pipeline_mode<synchronous>, transform_indices = @transform_1, window_bounds = array<i64: 72, 18>}, {pipeline_mode = #tpu.pipeline_mode<synchronous>, transform_indices = @transform_2, window_bounds = array<i64: 72, 24>}, {pipeline_mode = #tpu.pipeline_mode<synchronous>, transform_indices = @transform_3, window_bounds = array<i64: 72, 1>}, {pipeline_mode = #tpu.pipeline_mode<synchronous>, transform_indices = @transform_4, window_bounds = array<i64: 24, 1>}, {pipeline_mode = #tpu.pipeline_mode<synchronous>, transform_indices = @transform_5, window_bounds = array<i64: 96, 24>}, {pipeline_mode = #tpu.pipeline_mode<synchronous>, transform_indices = @transform_6, window_bounds = array<i64: 96, 24>}, {pipeline_mode = #tpu.pipeline_mode<synchronous>, transform_indices = @transform_7, window_bounds = array<i64: 96, 1>}, {pipeline_mode = #tpu.pipeline_mode<synchronous>, transform_indices = @transform_8, window_bounds = array<i64: 24, 1>}, {pipeline_mode = #tpu.pipeline_mode<synchronous>, transform_indices = @transform_9, window_bounds = array<i64: 1, 1>}, {transform_indices = @transform_10, window_bounds = array<i64: 1, 16, 128>}]} {
    %cst = arith.constant 0.000000e+00 : f32
    %0 = vector.broadcast %cst : f32 to vector<24x128xf32>
    %c0_i32 = arith.constant 0 : i32
    %c4_i32 = arith.constant 4 : i32
    %1 = arith.addi %c0_i32, %c4_i32 : i32
    %c1_i32 = arith.constant 1 : i32
    %2:3 = scf.for %arg12 = %c0_i32 to %1 step %c1_i32 iter_args(%arg13 = %0, %arg14 = %0, %arg15 = %0) -> (vector<24x128xf32>, vector<24x128xf32>, vector<24x128xf32>)  : i32 {
      %c4_i32_1 = arith.constant 4 : i32
      %3 = arith.muli %arg12, %c4_i32_1 : i32
      %c0_i32_2 = arith.constant 0 : i32
      %4 = arith.addi %3, %c0_i32_2 : i32
      %c0 = arith.constant 0 : index
      %5 = arith.index_cast %4 : i32 to index
      %c0_3 = arith.constant 0 : index
      %c0_4 = arith.constant 0 : index
      %6 = vector.load %arg1[%c0, %5, %c0_3, %c0_4] : memref<1x16x18x128xf32, #tpu.memory_space<vmem>>, vector<1x1x18x128xf32>
      %7 = vector.shape_cast %6 : vector<1x1x18x128xf32> to vector<18x128xf32>
      %c0_5 = arith.constant 0 : index
      %c0_6 = arith.constant 0 : index
      %8 = vector.load %arg2[%c0_5, %c0_6] : memref<72x18xf32, #tpu.memory_space<vmem>>, vector<72x18xf32>
      %cst_7 = arith.constant dense<0.000000e+00> : vector<72x128xf32>
      %9 = tpu.matmul %8, %7, %cst_7 {dimension_numbers = #tpu.dot_dimension_numbers<[1], [0], [0], [1], [0, 0, 1, 1], [], []>} : vector<72x18xf32>, vector<18x128xf32>, vector<72x128xf32> -> vector<72x128xf32>
      %c0_8 = arith.constant 0 : index
      %c0_9 = arith.constant 0 : index
      %10 = vector.load %arg4[%c0_8, %c0_9] : memref<72x1xf32, #tpu.memory_space<vmem>>, vector<72x1xf32>
      %11 = vector.broadcast %10 : vector<72x1xf32> to vector<72x128xf32>
      %12 = arith.addf %9, %11 : vector<72x128xf32>
      %13 = vector.shape_cast %12 : vector<72x128xf32> to vector<3x24x128xf32>
      %c0_10 = arith.constant 0 : index
      %c0_11 = arith.constant 0 : index
      %14 = vector.load %arg3[%c0_10, %c0_11] : memref<72x24xf32, #tpu.memory_space<vmem>>, vector<72x24xf32>
      %cst_12 = arith.constant dense<0.000000e+00> : vector<72x128xf32>
      %15 = tpu.matmul %14, %arg13, %cst_12 {dimension_numbers = #tpu.dot_dimension_numbers<[1], [0], [0], [1], [0, 0, 1, 1], [], []>} : vector<72x24xf32>, vector<24x128xf32>, vector<72x128xf32> -> vector<72x128xf32>
      %16 = vector.shape_cast %15 : vector<72x128xf32> to vector<3x24x128xf32>
      %17 = vector.extract_strided_slice %13 {offsets = [0, 0, 0], sizes = [2, 24, 128], strides = [1, 1, 1]} : vector<3x24x128xf32> to vector<2x24x128xf32>
      %18 = vector.extract_strided_slice %16 {offsets = [0, 0, 0], sizes = [2, 24, 128], strides = [1, 1, 1]} : vector<3x24x128xf32> to vector<2x24x128xf32>
      %19 = arith.addf %17, %18 : vector<2x24x128xf32>
      %20 = arith.negf %19 : vector<2x24x128xf32>
      %21 = math.exp %20 : vector<2x24x128xf32>
      %cst_13 = arith.constant 1.000000e+00 : f32
      %22 = vector.broadcast %cst_13 : f32 to vector<2x24x128xf32>
      %23 = arith.addf %22, %21 : vector<2x24x128xf32>
      %24 = arith.divf %22, %23 : vector<2x24x128xf32>
      %25 = vector.extract_strided_slice %13 {offsets = [2, 0, 0], sizes = [1, 24, 128], strides = [1, 1, 1]} : vector<3x24x128xf32> to vector<1x24x128xf32>
      %26 = vector.shape_cast %25 : vector<1x24x128xf32> to vector<24x128xf32>
      %27 = vector.extract_strided_slice %24 {offsets = [0, 0, 0], sizes = [1, 24, 128], strides = [1, 1, 1]} : vector<2x24x128xf32> to vector<1x24x128xf32>
      %28 = vector.shape_cast %27 : vector<1x24x128xf32> to vector<24x128xf32>
      %29 = vector.extract_strided_slice %16 {offsets = [2, 0, 0], sizes = [1, 24, 128], strides = [1, 1, 1]} : vector<3x24x128xf32> to vector<1x24x128xf32>
      %30 = vector.shape_cast %29 : vector<1x24x128xf32> to vector<24x128xf32>
      %c0_14 = arith.constant 0 : index
      %c0_15 = arith.constant 0 : index
      %31 = vector.load %arg5[%c0_14, %c0_15] : memref<24x1xf32, #tpu.memory_space<vmem>>, vector<24x1xf32>
      %32 = vector.broadcast %31 : vector<24x1xf32> to vector<24x128xf32>
      %33 = arith.addf %30, %32 : vector<24x128xf32>
      %34 = arith.mulf %28, %33 : vector<24x128xf32>
      %35 = arith.addf %26, %34 : vector<24x128xf32>
      %36 = math.tanh %35 : vector<24x128xf32>
      %37 = vector.extract_strided_slice %24 {offsets = [1, 0, 0], sizes = [1, 24, 128], strides = [1, 1, 1]} : vector<2x24x128xf32> to vector<1x24x128xf32>
      %38 = vector.shape_cast %37 : vector<1x24x128xf32> to vector<24x128xf32>
      %cst_16 = arith.constant 1.000000e+00 : f32
      %39 = vector.broadcast %cst_16 : f32 to vector<24x128xf32>
      %40 = arith.subf %39, %38 : vector<24x128xf32>
      %41 = arith.mulf %40, %36 : vector<24x128xf32>
      %42 = vector.extract_strided_slice %24 {offsets = [1, 0, 0], sizes = [1, 24, 128], strides = [1, 1, 1]} : vector<2x24x128xf32> to vector<1x24x128xf32>
      %43 = vector.shape_cast %42 : vector<1x24x128xf32> to vector<24x128xf32>
      %44 = arith.mulf %43, %arg13 : vector<24x128xf32>
      %45 = arith.addf %41, %44 : vector<24x128xf32>
      %c0_17 = arith.constant 0 : index
      %c0_18 = arith.constant 0 : index
      %46 = vector.load %arg6[%c0_17, %c0_18] : memref<96x24xf32, #tpu.memory_space<vmem>>, vector<96x24xf32>
      %cst_19 = arith.constant dense<0.000000e+00> : vector<96x128xf32>
      %47 = tpu.matmul %46, %45, %cst_19 {dimension_numbers = #tpu.dot_dimension_numbers<[1], [0], [0], [1], [0, 0, 1, 1], [], []>} : vector<96x24xf32>, vector<24x128xf32>, vector<96x128xf32> -> vector<96x128xf32>
      %c0_20 = arith.constant 0 : index
      %c0_21 = arith.constant 0 : index
      %48 = vector.load %arg7[%c0_20, %c0_21] : memref<96x24xf32, #tpu.memory_space<vmem>>, vector<96x24xf32>
      %cst_22 = arith.constant dense<0.000000e+00> : vector<96x128xf32>
      %49 = tpu.matmul %48, %arg14, %cst_22 {dimension_numbers = #tpu.dot_dimension_numbers<[1], [0], [0], [1], [0, 0, 1, 1], [], []>} : vector<96x24xf32>, vector<24x128xf32>, vector<96x128xf32> -> vector<96x128xf32>
      %50 = arith.addf %47, %49 : vector<96x128xf32>
      %c0_23 = arith.constant 0 : index
      %c0_24 = arith.constant 0 : index
      %51 = vector.load %arg8[%c0_23, %c0_24] : memref<96x1xf32, #tpu.memory_space<vmem>>, vector<96x1xf32>
      %52 = vector.broadcast %51 : vector<96x1xf32> to vector<96x128xf32>
      %53 = arith.addf %50, %52 : vector<96x128xf32>
      %54 = vector.shape_cast %53 : vector<96x128xf32> to vector<4x24x128xf32>
      %55 = vector.extract_strided_slice %54 {offsets = [0, 0, 0], sizes = [3, 24, 128], strides = [1, 1, 1]} : vector<4x24x128xf32> to vector<3x24x128xf32>
      %56 = arith.negf %55 : vector<3x24x128xf32>
      %57 = math.exp %56 : vector<3x24x128xf32>
      %cst_25 = arith.constant 1.000000e+00 : f32
      %58 = vector.broadcast %cst_25 : f32 to vector<3x24x128xf32>
      %59 = arith.addf %58, %57 : vector<3x24x128xf32>
      %60 = arith.divf %58, %59 : vector<3x24x128xf32>
      %61 = vector.extract_strided_slice %54 {offsets = [3, 0, 0], sizes = [1, 24, 128], strides = [1, 1, 1]} : vector<4x24x128xf32> to vector<1x24x128xf32>
      %62 = vector.shape_cast %61 : vector<1x24x128xf32> to vector<24x128xf32>
      %63 = math.tanh %62 : vector<24x128xf32>
      %64 = vector.extract_strided_slice %60 {offsets = [1, 0, 0], sizes = [1, 24, 128], strides = [1, 1, 1]} : vector<3x24x128xf32> to vector<1x24x128xf32>
      %65 = vector.shape_cast %64 : vector<1x24x128xf32> to vector<24x128xf32>
      %66 = arith.mulf %65, %arg15 : vector<24x128xf32>
      %67 = vector.extract_strided_slice %60 {offsets = [0, 0, 0], sizes = [1, 24, 128], strides = [1, 1, 1]} : vector<3x24x128xf32> to vector<1x24x128xf32>
      %68 = vector.shape_cast %67 : vector<1x24x128xf32> to vector<24x128xf32>
      %69 = arith.mulf %68, %63 : vector<24x128xf32>
      %70 = arith.addf %66, %69 : vector<24x128xf32>
      %71 = vector.extract_strided_slice %60 {offsets = [2, 0, 0], sizes = [1, 24, 128], strides = [1, 1, 1]} : vector<3x24x128xf32> to vector<1x24x128xf32>
      %72 = vector.shape_cast %71 : vector<1x24x128xf32> to vector<24x128xf32>
      %73 = math.tanh %70 : vector<24x128xf32>
      %74 = arith.mulf %72, %73 : vector<24x128xf32>
      %c0_26 = arith.constant 0 : index
      %c0_27 = arith.constant 0 : index
      %75 = vector.load %arg9[%c0_26, %c0_27] : memref<24x1xf32, #tpu.memory_space<vmem>>, vector<24x1xf32>
      %76 = vector.broadcast %75 : vector<24x1xf32> to vector<24x128xf32>
      %77 = arith.mulf %76, %74 : vector<24x128xf32>
      %cst_28 = arith.constant dense<0.000000e+00> : vector<128xf32>
      %78 = vector.multi_reduction <add>, %77, %cst_28 [0] : vector<24x128xf32> to vector<128xf32>
      %79 = vector.shape_cast %78 : vector<128xf32> to vector<1x128xf32>
      %c0_29 = arith.constant 0 : index
      %c0_30 = arith.constant 0 : index
      %80 = vector.load %arg10[%c0_29, %c0_30] : memref<1x1xf32, #tpu.memory_space<vmem>>, vector<1x1xf32>
      %81 = vector.broadcast %80 : vector<1x1xf32> to vector<1x128xf32>
      %82 = arith.addf %79, %81 : vector<1x128xf32>
      %c0_31 = arith.constant 0 : index
      %83 = arith.index_cast %4 : i32 to index
      %c0_32 = arith.constant 0 : index
      %84 = vector.load %arg11[%c0_31, %83, %c0_32] : memref<1x16x128xf32, #tpu.memory_space<vmem>>, vector<1x1x128xf32>
      %85 = vector.shape_cast %84 : vector<1x1x128xf32> to vector<1x128xf32>
      %86 = vector.shape_cast %82 : vector<1x128xf32> to vector<1x1x128xf32>
      tpu.vector_store %arg11[%c0_31, %83, %c0_32], %86 {strides = array<i32>} : memref<1x16x128xf32, #tpu.memory_space<vmem>>, vector<1x1x128xf32>,
      %c1_i32_33 = arith.constant 1 : i32
      %87 = arith.addi %3, %c1_i32_33 : i32
      %c0_34 = arith.constant 0 : index
      %88 = arith.index_cast %87 : i32 to index
      %c0_35 = arith.constant 0 : index
      %c0_36 = arith.constant 0 : index
      %89 = vector.load %arg1[%c0_34, %88, %c0_35, %c0_36] : memref<1x16x18x128xf32, #tpu.memory_space<vmem>>, vector<1x1x18x128xf32>
      %90 = vector.shape_cast %89 : vector<1x1x18x128xf32> to vector<18x128xf32>
      %c0_37 = arith.constant 0 : index
      %c0_38 = arith.constant 0 : index
      %91 = vector.load %arg2[%c0_37, %c0_38] : memref<72x18xf32, #tpu.memory_space<vmem>>, vector<72x18xf32>
      %cst_39 = arith.constant dense<0.000000e+00> : vector<72x128xf32>
      %92 = tpu.matmul %91, %90, %cst_39 {dimension_numbers = #tpu.dot_dimension_numbers<[1], [0], [0], [1], [0, 0, 1, 1], [], []>} : vector<72x18xf32>, vector<18x128xf32>, vector<72x128xf32> -> vector<72x128xf32>
      %c0_40 = arith.constant 0 : index
      %c0_41 = arith.constant 0 : index
      %93 = vector.load %arg4[%c0_40, %c0_41] : memref<72x1xf32, #tpu.memory_space<vmem>>, vector<72x1xf32>
      %94 = vector.broadcast %93 : vector<72x1xf32> to vector<72x128xf32>
      %95 = arith.addf %92, %94 : vector<72x128xf32>
      %96 = vector.shape_cast %95 : vector<72x128xf32> to vector<3x24x128xf32>
      %c0_42 = arith.constant 0 : index
      %c0_43 = arith.constant 0 : index
      %97 = vector.load %arg3[%c0_42, %c0_43] : memref<72x24xf32, #tpu.memory_space<vmem>>, vector<72x24xf32>
      %cst_44 = arith.constant dense<0.000000e+00> : vector<72x128xf32>
      %98 = tpu.matmul %97, %45, %cst_44 {dimension_numbers = #tpu.dot_dimension_numbers<[1], [0], [0], [1], [0, 0, 1, 1], [], []>} : vector<72x24xf32>, vector<24x128xf32>, vector<72x128xf32> -> vector<72x128xf32>
      %99 = vector.shape_cast %98 : vector<72x128xf32> to vector<3x24x128xf32>
      %100 = vector.extract_strided_slice %96 {offsets = [0, 0, 0], sizes = [2, 24, 128], strides = [1, 1, 1]} : vector<3x24x128xf32> to vector<2x24x128xf32>
      %101 = vector.extract_strided_slice %99 {offsets = [0, 0, 0], sizes = [2, 24, 128], strides = [1, 1, 1]} : vector<3x24x128xf32> to vector<2x24x128xf32>
      %102 = arith.addf %100, %101 : vector<2x24x128xf32>
      %103 = arith.negf %102 : vector<2x24x128xf32>
      %104 = math.exp %103 : vector<2x24x128xf32>
      %cst_45 = arith.constant 1.000000e+00 : f32
      %105 = vector.broadcast %cst_45 : f32 to vector<2x24x128xf32>
      %106 = arith.addf %105, %104 : vector<2x24x128xf32>
      %107 = arith.divf %105, %106 : vector<2x24x128xf32>
      %108 = vector.extract_strided_slice %96 {offsets = [2, 0, 0], sizes = [1, 24, 128], strides = [1, 1, 1]} : vector<3x24x128xf32> to vector<1x24x128xf32>
      %109 = vector.shape_cast %108 : vector<1x24x128xf32> to vector<24x128xf32>
      %110 = vector.extract_strided_slice %107 {offsets = [0, 0, 0], sizes = [1, 24, 128], strides = [1, 1, 1]} : vector<2x24x128xf32> to vector<1x24x128xf32>
      %111 = vector.shape_cast %110 : vector<1x24x128xf32> to vector<24x128xf32>
      %112 = vector.extract_strided_slice %99 {offsets = [2, 0, 0], sizes = [1, 24, 128], strides = [1, 1, 1]} : vector<3x24x128xf32> to vector<1x24x128xf32>
      %113 = vector.shape_cast %112 : vector<1x24x128xf32> to vector<24x128xf32>
      %c0_46 = arith.constant 0 : index
      %c0_47 = arith.constant 0 : index
      %114 = vector.load %arg5[%c0_46, %c0_47] : memref<24x1xf32, #tpu.memory_space<vmem>>, vector<24x1xf32>
      %115 = vector.broadcast %114 : vector<24x1xf32> to vector<24x128xf32>
      %116 = arith.addf %113, %115 : vector<24x128xf32>
      %117 = arith.mulf %111, %116 : vector<24x128xf32>
      %118 = arith.addf %109, %117 : vector<24x128xf32>
      %119 = math.tanh %118 : vector<24x128xf32>
      %120 = vector.extract_strided_slice %107 {offsets = [1, 0, 0], sizes = [1, 24, 128], strides = [1, 1, 1]} : vector<2x24x128xf32> to vector<1x24x128xf32>
      %121 = vector.shape_cast %120 : vector<1x24x128xf32> to vector<24x128xf32>
      %cst_48 = arith.constant 1.000000e+00 : f32
      %122 = vector.broadcast %cst_48 : f32 to vector<24x128xf32>
      %123 = arith.subf %122, %121 : vector<24x128xf32>
      %124 = arith.mulf %123, %119 : vector<24x128xf32>
      %125 = vector.extract_strided_slice %107 {offsets = [1, 0, 0], sizes = [1, 24, 128], strides = [1, 1, 1]} : vector<2x24x128xf32> to vector<1x24x128xf32>
      %126 = vector.shape_cast %125 : vector<1x24x128xf32> to vector<24x128xf32>
      %127 = arith.mulf %126, %45 : vector<24x128xf32>
      %128 = arith.addf %124, %127 : vector<24x128xf32>
      %c0_49 = arith.constant 0 : index
      %c0_50 = arith.constant 0 : index
      %129 = vector.load %arg6[%c0_49, %c0_50] : memref<96x24xf32, #tpu.memory_space<vmem>>, vector<96x24xf32>
      %cst_51 = arith.constant dense<0.000000e+00> : vector<96x128xf32>
      %130 = tpu.matmul %129, %128, %cst_51 {dimension_numbers = #tpu.dot_dimension_numbers<[1], [0], [0], [1], [0, 0, 1, 1], [], []>} : vector<96x24xf32>, vector<24x128xf32>, vector<96x128xf32> -> vector<96x128xf32>
      %c0_52 = arith.constant 0 : index
      %c0_53 = arith.constant 0 : index
      %131 = vector.load %arg7[%c0_52, %c0_53] : memref<96x24xf32, #tpu.memory_space<vmem>>, vector<96x24xf32>
      %cst_54 = arith.constant dense<0.000000e+00> : vector<96x128xf32>
      %132 = tpu.matmul %131, %74, %cst_54 {dimension_numbers = #tpu.dot_dimension_numbers<[1], [0], [0], [1], [0, 0, 1, 1], [], []>} : vector<96x24xf32>, vector<24x128xf32>, vector<96x128xf32> -> vector<96x128xf32>
      %133 = arith.addf %130, %132 : vector<96x128xf32>
      %c0_55 = arith.constant 0 : index
      %c0_56 = arith.constant 0 : index
      %134 = vector.load %arg8[%c0_55, %c0_56] : memref<96x1xf32, #tpu.memory_space<vmem>>, vector<96x1xf32>
      %135 = vector.broadcast %134 : vector<96x1xf32> to vector<96x128xf32>
      %136 = arith.addf %133, %135 : vector<96x128xf32>
      %137 = vector.shape_cast %136 : vector<96x128xf32> to vector<4x24x128xf32>
      %138 = vector.extract_strided_slice %137 {offsets = [0, 0, 0], sizes = [3, 24, 128], strides = [1, 1, 1]} : vector<4x24x128xf32> to vector<3x24x128xf32>
      %139 = arith.negf %138 : vector<3x24x128xf32>
      %140 = math.exp %139 : vector<3x24x128xf32>
      %cst_57 = arith.constant 1.000000e+00 : f32
      %141 = vector.broadcast %cst_57 : f32 to vector<3x24x128xf32>
      %142 = arith.addf %141, %140 : vector<3x24x128xf32>
      %143 = arith.divf %141, %142 : vector<3x24x128xf32>
      %144 = vector.extract_strided_slice %137 {offsets = [3, 0, 0], sizes = [1, 24, 128], strides = [1, 1, 1]} : vector<4x24x128xf32> to vector<1x24x128xf32>
      %145 = vector.shape_cast %144 : vector<1x24x128xf32> to vector<24x128xf32>
      %146 = math.tanh %145 : vector<24x128xf32>
      %147 = vector.extract_strided_slice %143 {offsets = [1, 0, 0], sizes = [1, 24, 128], strides = [1, 1, 1]} : vector<3x24x128xf32> to vector<1x24x128xf32>
      %148 = vector.shape_cast %147 : vector<1x24x128xf32> to vector<24x128xf32>
      %149 = arith.mulf %148, %70 : vector<24x128xf32>
      %150 = vector.extract_strided_slice %143 {offsets = [0, 0, 0], sizes = [1, 24, 128], strides = [1, 1, 1]} : vector<3x24x128xf32> to vector<1x24x128xf32>
      %151 = vector.shape_cast %150 : vector<1x24x128xf32> to vector<24x128xf32>
      %152 = arith.mulf %151, %146 : vector<24x128xf32>
      %153 = arith.addf %149, %152 : vector<24x128xf32>
      %154 = vector.extract_strided_slice %143 {offsets = [2, 0, 0], sizes = [1, 24, 128], strides = [1, 1, 1]} : vector<3x24x128xf32> to vector<1x24x128xf32>
      %155 = vector.shape_cast %154 : vector<1x24x128xf32> to vector<24x128xf32>
      %156 = math.tanh %153 : vector<24x128xf32>
      %157 = arith.mulf %155, %156 : vector<24x128xf32>
      %c0_58 = arith.constant 0 : index
      %c0_59 = arith.constant 0 : index
      %158 = vector.load %arg9[%c0_58, %c0_59] : memref<24x1xf32, #tpu.memory_space<vmem>>, vector<24x1xf32>
      %159 = vector.broadcast %158 : vector<24x1xf32> to vector<24x128xf32>
      %160 = arith.mulf %159, %157 : vector<24x128xf32>
      %cst_60 = arith.constant dense<0.000000e+00> : vector<128xf32>
      %161 = vector.multi_reduction <add>, %160, %cst_60 [0] : vector<24x128xf32> to vector<128xf32>
      %162 = vector.shape_cast %161 : vector<128xf32> to vector<1x128xf32>
      %c0_61 = arith.constant 0 : index
      %c0_62 = arith.constant 0 : index
      %163 = vector.load %arg10[%c0_61, %c0_62] : memref<1x1xf32, #tpu.memory_space<vmem>>, vector<1x1xf32>
      %164 = vector.broadcast %163 : vector<1x1xf32> to vector<1x128xf32>
      %165 = arith.addf %162, %164 : vector<1x128xf32>
      %c0_63 = arith.constant 0 : index
      %166 = arith.index_cast %87 : i32 to index
      %c0_64 = arith.constant 0 : index
      %167 = vector.load %arg11[%c0_63, %166, %c0_64] : memref<1x16x128xf32, #tpu.memory_space<vmem>>, vector<1x1x128xf32>
      %168 = vector.shape_cast %167 : vector<1x1x128xf32> to vector<1x128xf32>
      %169 = vector.shape_cast %165 : vector<1x128xf32> to vector<1x1x128xf32>
      tpu.vector_store %arg11[%c0_63, %166, %c0_64], %169 {strides = array<i32>} : memref<1x16x128xf32, #tpu.memory_space<vmem>>, vector<1x1x128xf32>,
      %c2_i32 = arith.constant 2 : i32
      %170 = arith.addi %3, %c2_i32 : i32
      %c0_65 = arith.constant 0 : index
      %171 = arith.index_cast %170 : i32 to index
      %c0_66 = arith.constant 0 : index
      %c0_67 = arith.constant 0 : index
      %172 = vector.load %arg1[%c0_65, %171, %c0_66, %c0_67] : memref<1x16x18x128xf32, #tpu.memory_space<vmem>>, vector<1x1x18x128xf32>
      %173 = vector.shape_cast %172 : vector<1x1x18x128xf32> to vector<18x128xf32>
      %c0_68 = arith.constant 0 : index
      %c0_69 = arith.constant 0 : index
      %174 = vector.load %arg2[%c0_68, %c0_69] : memref<72x18xf32, #tpu.memory_space<vmem>>, vector<72x18xf32>
      %cst_70 = arith.constant dense<0.000000e+00> : vector<72x128xf32>
      %175 = tpu.matmul %174, %173, %cst_70 {dimension_numbers = #tpu.dot_dimension_numbers<[1], [0], [0], [1], [0, 0, 1, 1], [], []>} : vector<72x18xf32>, vector<18x128xf32>, vector<72x128xf32> -> vector<72x128xf32>
      %c0_71 = arith.constant 0 : index
      %c0_72 = arith.constant 0 : index
      %176 = vector.load %arg4[%c0_71, %c0_72] : memref<72x1xf32, #tpu.memory_space<vmem>>, vector<72x1xf32>
      %177 = vector.broadcast %176 : vector<72x1xf32> to vector<72x128xf32>
      %178 = arith.addf %175, %177 : vector<72x128xf32>
      %179 = vector.shape_cast %178 : vector<72x128xf32> to vector<3x24x128xf32>
      %c0_73 = arith.constant 0 : index
      %c0_74 = arith.constant 0 : index
      %180 = vector.load %arg3[%c0_73, %c0_74] : memref<72x24xf32, #tpu.memory_space<vmem>>, vector<72x24xf32>
      %cst_75 = arith.constant dense<0.000000e+00> : vector<72x128xf32>
      %181 = tpu.matmul %180, %128, %cst_75 {dimension_numbers = #tpu.dot_dimension_numbers<[1], [0], [0], [1], [0, 0, 1, 1], [], []>} : vector<72x24xf32>, vector<24x128xf32>, vector<72x128xf32> -> vector<72x128xf32>
      %182 = vector.shape_cast %181 : vector<72x128xf32> to vector<3x24x128xf32>
      %183 = vector.extract_strided_slice %179 {offsets = [0, 0, 0], sizes = [2, 24, 128], strides = [1, 1, 1]} : vector<3x24x128xf32> to vector<2x24x128xf32>
      %184 = vector.extract_strided_slice %182 {offsets = [0, 0, 0], sizes = [2, 24, 128], strides = [1, 1, 1]} : vector<3x24x128xf32> to vector<2x24x128xf32>
      %185 = arith.addf %183, %184 : vector<2x24x128xf32>
      %186 = arith.negf %185 : vector<2x24x128xf32>
      %187 = math.exp %186 : vector<2x24x128xf32>
      %cst_76 = arith.constant 1.000000e+00 : f32
      %188 = vector.broadcast %cst_76 : f32 to vector<2x24x128xf32>
      %189 = arith.addf %188, %187 : vector<2x24x128xf32>
      %190 = arith.divf %188, %189 : vector<2x24x128xf32>
      %191 = vector.extract_strided_slice %179 {offsets = [2, 0, 0], sizes = [1, 24, 128], strides = [1, 1, 1]} : vector<3x24x128xf32> to vector<1x24x128xf32>
      %192 = vector.shape_cast %191 : vector<1x24x128xf32> to vector<24x128xf32>
      %193 = vector.extract_strided_slice %190 {offsets = [0, 0, 0], sizes = [1, 24, 128], strides = [1, 1, 1]} : vector<2x24x128xf32> to vector<1x24x128xf32>
      %194 = vector.shape_cast %193 : vector<1x24x128xf32> to vector<24x128xf32>
      %195 = vector.extract_strided_slice %182 {offsets = [2, 0, 0], sizes = [1, 24, 128], strides = [1, 1, 1]} : vector<3x24x128xf32> to vector<1x24x128xf32>
      %196 = vector.shape_cast %195 : vector<1x24x128xf32> to vector<24x128xf32>
      %c0_77 = arith.constant 0 : index
      %c0_78 = arith.constant 0 : index
      %197 = vector.load %arg5[%c0_77, %c0_78] : memref<24x1xf32, #tpu.memory_space<vmem>>, vector<24x1xf32>
      %198 = vector.broadcast %197 : vector<24x1xf32> to vector<24x128xf32>
      %199 = arith.addf %196, %198 : vector<24x128xf32>
      %200 = arith.mulf %194, %199 : vector<24x128xf32>
      %201 = arith.addf %192, %200 : vector<24x128xf32>
      %202 = math.tanh %201 : vector<24x128xf32>
      %203 = vector.extract_strided_slice %190 {offsets = [1, 0, 0], sizes = [1, 24, 128], strides = [1, 1, 1]} : vector<2x24x128xf32> to vector<1x24x128xf32>
      %204 = vector.shape_cast %203 : vector<1x24x128xf32> to vector<24x128xf32>
      %cst_79 = arith.constant 1.000000e+00 : f32
      %205 = vector.broadcast %cst_79 : f32 to vector<24x128xf32>
      %206 = arith.subf %205, %204 : vector<24x128xf32>
      %207 = arith.mulf %206, %202 : vector<24x128xf32>
      %208 = vector.extract_strided_slice %190 {offsets = [1, 0, 0], sizes = [1, 24, 128], strides = [1, 1, 1]} : vector<2x24x128xf32> to vector<1x24x128xf32>
      %209 = vector.shape_cast %208 : vector<1x24x128xf32> to vector<24x128xf32>
      %210 = arith.mulf %209, %128 : vector<24x128xf32>
      %211 = arith.addf %207, %210 : vector<24x128xf32>
      %c0_80 = arith.constant 0 : index
      %c0_81 = arith.constant 0 : index
      %212 = vector.load %arg6[%c0_80, %c0_81] : memref<96x24xf32, #tpu.memory_space<vmem>>, vector<96x24xf32>
      %cst_82 = arith.constant dense<0.000000e+00> : vector<96x128xf32>
      %213 = tpu.matmul %212, %211, %cst_82 {dimension_numbers = #tpu.dot_dimension_numbers<[1], [0], [0], [1], [0, 0, 1, 1], [], []>} : vector<96x24xf32>, vector<24x128xf32>, vector<96x128xf32> -> vector<96x128xf32>
      %c0_83 = arith.constant 0 : index
      %c0_84 = arith.constant 0 : index
      %214 = vector.load %arg7[%c0_83, %c0_84] : memref<96x24xf32, #tpu.memory_space<vmem>>, vector<96x24xf32>
      %cst_85 = arith.constant dense<0.000000e+00> : vector<96x128xf32>
      %215 = tpu.matmul %214, %157, %cst_85 {dimension_numbers = #tpu.dot_dimension_numbers<[1], [0], [0], [1], [0, 0, 1, 1], [], []>} : vector<96x24xf32>, vector<24x128xf32>, vector<96x128xf32> -> vector<96x128xf32>
      %216 = arith.addf %213, %215 : vector<96x128xf32>
      %c0_86 = arith.constant 0 : index
      %c0_87 = arith.constant 0 : index
      %217 = vector.load %arg8[%c0_86, %c0_87] : memref<96x1xf32, #tpu.memory_space<vmem>>, vector<96x1xf32>
      %218 = vector.broadcast %217 : vector<96x1xf32> to vector<96x128xf32>
      %219 = arith.addf %216, %218 : vector<96x128xf32>
      %220 = vector.shape_cast %219 : vector<96x128xf32> to vector<4x24x128xf32>
      %221 = vector.extract_strided_slice %220 {offsets = [0, 0, 0], sizes = [3, 24, 128], strides = [1, 1, 1]} : vector<4x24x128xf32> to vector<3x24x128xf32>
      %222 = arith.negf %221 : vector<3x24x128xf32>
      %223 = math.exp %222 : vector<3x24x128xf32>
      %cst_88 = arith.constant 1.000000e+00 : f32
      %224 = vector.broadcast %cst_88 : f32 to vector<3x24x128xf32>
      %225 = arith.addf %224, %223 : vector<3x24x128xf32>
      %226 = arith.divf %224, %225 : vector<3x24x128xf32>
      %227 = vector.extract_strided_slice %220 {offsets = [3, 0, 0], sizes = [1, 24, 128], strides = [1, 1, 1]} : vector<4x24x128xf32> to vector<1x24x128xf32>
      %228 = vector.shape_cast %227 : vector<1x24x128xf32> to vector<24x128xf32>
      %229 = math.tanh %228 : vector<24x128xf32>
      %230 = vector.extract_strided_slice %226 {offsets = [1, 0, 0], sizes = [1, 24, 128], strides = [1, 1, 1]} : vector<3x24x128xf32> to vector<1x24x128xf32>
      %231 = vector.shape_cast %230 : vector<1x24x128xf32> to vector<24x128xf32>
      %232 = arith.mulf %231, %153 : vector<24x128xf32>
      %233 = vector.extract_strided_slice %226 {offsets = [0, 0, 0], sizes = [1, 24, 128], strides = [1, 1, 1]} : vector<3x24x128xf32> to vector<1x24x128xf32>
      %234 = vector.shape_cast %233 : vector<1x24x128xf32> to vector<24x128xf32>
      %235 = arith.mulf %234, %229 : vector<24x128xf32>
      %236 = arith.addf %232, %235 : vector<24x128xf32>
      %237 = vector.extract_strided_slice %226 {offsets = [2, 0, 0], sizes = [1, 24, 128], strides = [1, 1, 1]} : vector<3x24x128xf32> to vector<1x24x128xf32>
      %238 = vector.shape_cast %237 : vector<1x24x128xf32> to vector<24x128xf32>
      %239 = math.tanh %236 : vector<24x128xf32>
      %240 = arith.mulf %238, %239 : vector<24x128xf32>
      %c0_89 = arith.constant 0 : index
      %c0_90 = arith.constant 0 : index
      %241 = vector.load %arg9[%c0_89, %c0_90] : memref<24x1xf32, #tpu.memory_space<vmem>>, vector<24x1xf32>
      %242 = vector.broadcast %241 : vector<24x1xf32> to vector<24x128xf32>
      %243 = arith.mulf %242, %240 : vector<24x128xf32>
      %cst_91 = arith.constant dense<0.000000e+00> : vector<128xf32>
      %244 = vector.multi_reduction <add>, %243, %cst_91 [0] : vector<24x128xf32> to vector<128xf32>
      %245 = vector.shape_cast %244 : vector<128xf32> to vector<1x128xf32>
      %c0_92 = arith.constant 0 : index
      %c0_93 = arith.constant 0 : index
      %246 = vector.load %arg10[%c0_92, %c0_93] : memref<1x1xf32, #tpu.memory_space<vmem>>, vector<1x1xf32>
      %247 = vector.broadcast %246 : vector<1x1xf32> to vector<1x128xf32>
      %248 = arith.addf %245, %247 : vector<1x128xf32>
      %c0_94 = arith.constant 0 : index
      %249 = arith.index_cast %170 : i32 to index
      %c0_95 = arith.constant 0 : index
      %250 = vector.load %arg11[%c0_94, %249, %c0_95] : memref<1x16x128xf32, #tpu.memory_space<vmem>>, vector<1x1x128xf32>
      %251 = vector.shape_cast %250 : vector<1x1x128xf32> to vector<1x128xf32>
      %252 = vector.shape_cast %248 : vector<1x128xf32> to vector<1x1x128xf32>
      tpu.vector_store %arg11[%c0_94, %249, %c0_95], %252 {strides = array<i32>} : memref<1x16x128xf32, #tpu.memory_space<vmem>>, vector<1x1x128xf32>,
      %c3_i32 = arith.constant 3 : i32
      %253 = arith.addi %3, %c3_i32 : i32
      %c0_96 = arith.constant 0 : index
      %254 = arith.index_cast %253 : i32 to index
      %c0_97 = arith.constant 0 : index
      %c0_98 = arith.constant 0 : index
      %255 = vector.load %arg1[%c0_96, %254, %c0_97, %c0_98] : memref<1x16x18x128xf32, #tpu.memory_space<vmem>>, vector<1x1x18x128xf32>
      %256 = vector.shape_cast %255 : vector<1x1x18x128xf32> to vector<18x128xf32>
      %c0_99 = arith.constant 0 : index
      %c0_100 = arith.constant 0 : index
      %257 = vector.load %arg2[%c0_99, %c0_100] : memref<72x18xf32, #tpu.memory_space<vmem>>, vector<72x18xf32>
      %cst_101 = arith.constant dense<0.000000e+00> : vector<72x128xf32>
      %258 = tpu.matmul %257, %256, %cst_101 {dimension_numbers = #tpu.dot_dimension_numbers<[1], [0], [0], [1], [0, 0, 1, 1], [], []>} : vector<72x18xf32>, vector<18x128xf32>, vector<72x128xf32> -> vector<72x128xf32>
      %c0_102 = arith.constant 0 : index
      %c0_103 = arith.constant 0 : index
      %259 = vector.load %arg4[%c0_102, %c0_103] : memref<72x1xf32, #tpu.memory_space<vmem>>, vector<72x1xf32>
      %260 = vector.broadcast %259 : vector<72x1xf32> to vector<72x128xf32>
      %261 = arith.addf %258, %260 : vector<72x128xf32>
      %262 = vector.shape_cast %261 : vector<72x128xf32> to vector<3x24x128xf32>
      %c0_104 = arith.constant 0 : index
      %c0_105 = arith.constant 0 : index
      %263 = vector.load %arg3[%c0_104, %c0_105] : memref<72x24xf32, #tpu.memory_space<vmem>>, vector<72x24xf32>
      %cst_106 = arith.constant dense<0.000000e+00> : vector<72x128xf32>
      %264 = tpu.matmul %263, %211, %cst_106 {dimension_numbers = #tpu.dot_dimension_numbers<[1], [0], [0], [1], [0, 0, 1, 1], [], []>} : vector<72x24xf32>, vector<24x128xf32>, vector<72x128xf32> -> vector<72x128xf32>
      %265 = vector.shape_cast %264 : vector<72x128xf32> to vector<3x24x128xf32>
      %266 = vector.extract_strided_slice %262 {offsets = [0, 0, 0], sizes = [2, 24, 128], strides = [1, 1, 1]} : vector<3x24x128xf32> to vector<2x24x128xf32>
      %267 = vector.extract_strided_slice %265 {offsets = [0, 0, 0], sizes = [2, 24, 128], strides = [1, 1, 1]} : vector<3x24x128xf32> to vector<2x24x128xf32>
      %268 = arith.addf %266, %267 : vector<2x24x128xf32>
      %269 = arith.negf %268 : vector<2x24x128xf32>
      %270 = math.exp %269 : vector<2x24x128xf32>
      %cst_107 = arith.constant 1.000000e+00 : f32
      %271 = vector.broadcast %cst_107 : f32 to vector<2x24x128xf32>
      %272 = arith.addf %271, %270 : vector<2x24x128xf32>
      %273 = arith.divf %271, %272 : vector<2x24x128xf32>
      %274 = vector.extract_strided_slice %262 {offsets = [2, 0, 0], sizes = [1, 24, 128], strides = [1, 1, 1]} : vector<3x24x128xf32> to vector<1x24x128xf32>
      %275 = vector.shape_cast %274 : vector<1x24x128xf32> to vector<24x128xf32>
      %276 = vector.extract_strided_slice %273 {offsets = [0, 0, 0], sizes = [1, 24, 128], strides = [1, 1, 1]} : vector<2x24x128xf32> to vector<1x24x128xf32>
      %277 = vector.shape_cast %276 : vector<1x24x128xf32> to vector<24x128xf32>
      %278 = vector.extract_strided_slice %265 {offsets = [2, 0, 0], sizes = [1, 24, 128], strides = [1, 1, 1]} : vector<3x24x128xf32> to vector<1x24x128xf32>
      %279 = vector.shape_cast %278 : vector<1x24x128xf32> to vector<24x128xf32>
      %c0_108 = arith.constant 0 : index
      %c0_109 = arith.constant 0 : index
      %280 = vector.load %arg5[%c0_108, %c0_109] : memref<24x1xf32, #tpu.memory_space<vmem>>, vector<24x1xf32>
      %281 = vector.broadcast %280 : vector<24x1xf32> to vector<24x128xf32>
      %282 = arith.addf %279, %281 : vector<24x128xf32>
      %283 = arith.mulf %277, %282 : vector<24x128xf32>
      %284 = arith.addf %275, %283 : vector<24x128xf32>
      %285 = math.tanh %284 : vector<24x128xf32>
      %286 = vector.extract_strided_slice %273 {offsets = [1, 0, 0], sizes = [1, 24, 128], strides = [1, 1, 1]} : vector<2x24x128xf32> to vector<1x24x128xf32>
      %287 = vector.shape_cast %286 : vector<1x24x128xf32> to vector<24x128xf32>
      %cst_110 = arith.constant 1.000000e+00 : f32
      %288 = vector.broadcast %cst_110 : f32 to vector<24x128xf32>
      %289 = arith.subf %288, %287 : vector<24x128xf32>
      %290 = arith.mulf %289, %285 : vector<24x128xf32>
      %291 = vector.extract_strided_slice %273 {offsets = [1, 0, 0], sizes = [1, 24, 128], strides = [1, 1, 1]} : vector<2x24x128xf32> to vector<1x24x128xf32>
      %292 = vector.shape_cast %291 : vector<1x24x128xf32> to vector<24x128xf32>
      %293 = arith.mulf %292, %211 : vector<24x128xf32>
      %294 = arith.addf %290, %293 : vector<24x128xf32>
      %c0_111 = arith.constant 0 : index
      %c0_112 = arith.constant 0 : index
      %295 = vector.load %arg6[%c0_111, %c0_112] : memref<96x24xf32, #tpu.memory_space<vmem>>, vector<96x24xf32>
      %cst_113 = arith.constant dense<0.000000e+00> : vector<96x128xf32>
      %296 = tpu.matmul %295, %294, %cst_113 {dimension_numbers = #tpu.dot_dimension_numbers<[1], [0], [0], [1], [0, 0, 1, 1], [], []>} : vector<96x24xf32>, vector<24x128xf32>, vector<96x128xf32> -> vector<96x128xf32>
      %c0_114 = arith.constant 0 : index
      %c0_115 = arith.constant 0 : index
      %297 = vector.load %arg7[%c0_114, %c0_115] : memref<96x24xf32, #tpu.memory_space<vmem>>, vector<96x24xf32>
      %cst_116 = arith.constant dense<0.000000e+00> : vector<96x128xf32>
      %298 = tpu.matmul %297, %240, %cst_116 {dimension_numbers = #tpu.dot_dimension_numbers<[1], [0], [0], [1], [0, 0, 1, 1], [], []>} : vector<96x24xf32>, vector<24x128xf32>, vector<96x128xf32> -> vector<96x128xf32>
      %299 = arith.addf %296, %298 : vector<96x128xf32>
      %c0_117 = arith.constant 0 : index
      %c0_118 = arith.constant 0 : index
      %300 = vector.load %arg8[%c0_117, %c0_118] : memref<96x1xf32, #tpu.memory_space<vmem>>, vector<96x1xf32>
      %301 = vector.broadcast %300 : vector<96x1xf32> to vector<96x128xf32>
      %302 = arith.addf %299, %301 : vector<96x128xf32>
      %303 = vector.shape_cast %302 : vector<96x128xf32> to vector<4x24x128xf32>
      %304 = vector.extract_strided_slice %303 {offsets = [0, 0, 0], sizes = [3, 24, 128], strides = [1, 1, 1]} : vector<4x24x128xf32> to vector<3x24x128xf32>
      %305 = arith.negf %304 : vector<3x24x128xf32>
      %306 = math.exp %305 : vector<3x24x128xf32>
      %cst_119 = arith.constant 1.000000e+00 : f32
      %307 = vector.broadcast %cst_119 : f32 to vector<3x24x128xf32>
      %308 = arith.addf %307, %306 : vector<3x24x128xf32>
      %309 = arith.divf %307, %308 : vector<3x24x128xf32>
      %310 = vector.extract_strided_slice %303 {offsets = [3, 0, 0], sizes = [1, 24, 128], strides = [1, 1, 1]} : vector<4x24x128xf32> to vector<1x24x128xf32>
      %311 = vector.shape_cast %310 : vector<1x24x128xf32> to vector<24x128xf32>
      %312 = math.tanh %311 : vector<24x128xf32>
      %313 = vector.extract_strided_slice %309 {offsets = [1, 0, 0], sizes = [1, 24, 128], strides = [1, 1, 1]} : vector<3x24x128xf32> to vector<1x24x128xf32>
      %314 = vector.shape_cast %313 : vector<1x24x128xf32> to vector<24x128xf32>
      %315 = arith.mulf %314, %236 : vector<24x128xf32>
      %316 = vector.extract_strided_slice %309 {offsets = [0, 0, 0], sizes = [1, 24, 128], strides = [1, 1, 1]} : vector<3x24x128xf32> to vector<1x24x128xf32>
      %317 = vector.shape_cast %316 : vector<1x24x128xf32> to vector<24x128xf32>
      %318 = arith.mulf %317, %312 : vector<24x128xf32>
      %319 = arith.addf %315, %318 : vector<24x128xf32>
      %320 = vector.extract_strided_slice %309 {offsets = [2, 0, 0], sizes = [1, 24, 128], strides = [1, 1, 1]} : vector<3x24x128xf32> to vector<1x24x128xf32>
      %321 = vector.shape_cast %320 : vector<1x24x128xf32> to vector<24x128xf32>
      %322 = math.tanh %319 : vector<24x128xf32>
      %323 = arith.mulf %321, %322 : vector<24x128xf32>
      %c0_120 = arith.constant 0 : index
      %c0_121 = arith.constant 0 : index
      %324 = vector.load %arg9[%c0_120, %c0_121] : memref<24x1xf32, #tpu.memory_space<vmem>>, vector<24x1xf32>
      %325 = vector.broadcast %324 : vector<24x1xf32> to vector<24x128xf32>
      %326 = arith.mulf %325, %323 : vector<24x128xf32>
      %cst_122 = arith.constant dense<0.000000e+00> : vector<128xf32>
      %327 = vector.multi_reduction <add>, %326, %cst_122 [0] : vector<24x128xf32> to vector<128xf32>
      %328 = vector.shape_cast %327 : vector<128xf32> to vector<1x128xf32>
      %c0_123 = arith.constant 0 : index
      %c0_124 = arith.constant 0 : index
      %329 = vector.load %arg10[%c0_123, %c0_124] : memref<1x1xf32, #tpu.memory_space<vmem>>, vector<1x1xf32>
      %330 = vector.broadcast %329 : vector<1x1xf32> to vector<1x128xf32>
      %331 = arith.addf %328, %330 : vector<1x128xf32>
      %c0_125 = arith.constant 0 : index
      %332 = arith.index_cast %253 : i32 to index
      %c0_126 = arith.constant 0 : index
      %333 = vector.load %arg11[%c0_125, %332, %c0_126] : memref<1x16x128xf32, #tpu.memory_space<vmem>>, vector<1x1x128xf32>
      %334 = vector.shape_cast %333 : vector<1x1x128xf32> to vector<1x128xf32>
      %335 = vector.shape_cast %331 : vector<1x128xf32> to vector<1x1x128xf32>
      tpu.vector_store %arg11[%c0_125, %332, %c0_126], %335 {strides = array<i32>} : memref<1x16x128xf32, #tpu.memory_space<vmem>>, vector<1x1x128xf32>,
      scf.yield %294, %323, %319 : vector<24x128xf32>, vector<24x128xf32>, vector<24x128xf32>
    }
    %c4_i32_0 = arith.constant 4 : i32
    return
  }
  func.func @transform_0(%arg0: i32) -> (i32, i32, i32, i32) {
    %c0_i32 = arith.constant 0 : i32
    %c0_i32_0 = arith.constant 0 : i32
    %c0_i32_1 = arith.constant 0 : i32
    %c0_i32_2 = arith.constant 0 : i32
    return %arg0, %c0_i32, %c0_i32_0, %c0_i32_1 : i32, i32, i32, i32
  }
  func.func @transform_1(%arg0: i32) -> (i32, i32) {
    %c0_i32 = arith.constant 0 : i32
    %c0_i32_0 = arith.constant 0 : i32
    %c0_i32_1 = arith.constant 0 : i32
    return %c0_i32, %c0_i32_0 : i32, i32
  }
  func.func @transform_2(%arg0: i32) -> (i32, i32) {
    %c0_i32 = arith.constant 0 : i32
    %c0_i32_0 = arith.constant 0 : i32
    %c0_i32_1 = arith.constant 0 : i32
    return %c0_i32, %c0_i32_0 : i32, i32
  }
  func.func @transform_3(%arg0: i32) -> (i32, i32) {
    %c0_i32 = arith.constant 0 : i32
    %c0_i32_0 = arith.constant 0 : i32
    %c0_i32_1 = arith.constant 0 : i32
    return %c0_i32, %c0_i32_0 : i32, i32
  }
  func.func @transform_4(%arg0: i32) -> (i32, i32) {
    %c0_i32 = arith.constant 0 : i32
    %c0_i32_0 = arith.constant 0 : i32
    %c0_i32_1 = arith.constant 0 : i32
    return %c0_i32, %c0_i32_0 : i32, i32
  }
  func.func @transform_5(%arg0: i32) -> (i32, i32) {
    %c0_i32 = arith.constant 0 : i32
    %c0_i32_0 = arith.constant 0 : i32
    %c0_i32_1 = arith.constant 0 : i32
    return %c0_i32, %c0_i32_0 : i32, i32
  }
  func.func @transform_6(%arg0: i32) -> (i32, i32) {
    %c0_i32 = arith.constant 0 : i32
    %c0_i32_0 = arith.constant 0 : i32
    %c0_i32_1 = arith.constant 0 : i32
    return %c0_i32, %c0_i32_0 : i32, i32
  }
  func.func @transform_7(%arg0: i32) -> (i32, i32) {
    %c0_i32 = arith.constant 0 : i32
    %c0_i32_0 = arith.constant 0 : i32
    %c0_i32_1 = arith.constant 0 : i32
    return %c0_i32, %c0_i32_0 : i32, i32
  }
  func.func @transform_8(%arg0: i32) -> (i32, i32) {
    %c0_i32 = arith.constant 0 : i32
    %c0_i32_0 = arith.constant 0 : i32
    %c0_i32_1 = arith.constant 0 : i32
    return %c0_i32, %c0_i32_0 : i32, i32
  }
  func.func @transform_9(%arg0: i32) -> (i32, i32) {
    %c0_i32 = arith.constant 0 : i32
    %c0_i32_0 = arith.constant 0 : i32
    %c0_i32_1 = arith.constant 0 : i32
    return %c0_i32, %c0_i32_0 : i32, i32
  }
  func.func @transform_10(%arg0: i32) -> (i32, i32, i32) {
    %c0_i32 = arith.constant 0 : i32
    %c0_i32_0 = arith.constant 0 : i32
    %c0_i32_1 = arith.constant 0 : i32
    return %arg0, %c0_i32, %c0_i32_0 : i32, i32, i32
  }
}

</mosaic_0001>

<bundles_post_ra>
// kernel: gru_lstm_forward.1
= control target key start
LH: loop header
LB: loop body
LE: loop exit
PB: predicated region body
PF: predicated region fallthrough
CT: control target
= control target key end

     0   :  { %s4915_s15 = smov 0   ;;  %s7612_s0 = inlined_call_operand.vmem [shape: f32[2,16,18,128], index: 0, kind: input, shape index: {}]   ;;  %s7613_s1 = inlined_call_operand.vmem [shape: f32[72,18], index: 1, kind: input, shape index: {}]   ;;  %s7614_s2 = inlined_call_operand.vmem [shape: f32[72,24], index: 2, kind: input, shape index: {}]   ;;  %s7615_s3 = inlined_call_operand.vmem [shape: f32[72,1], index: 3, kind: input, shape index: {}]   ;;  %s7616_s4 = inlined_call_operand.vmem [shape: f32[24,1], index: 4, kind: input, shape index: {}]   ;;  %s7617_s5 = inlined_call_operand.vmem [shape: f32[96,24], index: 5, kind: input, shape index: {}]   ;;  %s7618_s6 = inlined_call_operand.vmem [shape: f32[96,24], index: 6, kind: input, shape index: {}]   ;;  %s7619_s7 = inlined_call_operand.vmem [shape: f32[96,1], index: 7, kind: input, shape index: {}]   ;;  %s7620_s8 = inlined_call_operand.vmem [shape: f32[24,1], index: 8, kind: input, shape index: {}]   ;;  %s7621_s9 = inlined_call_operand.<no memory space> [shape: f32[1,1], index: 9, kind: input, shape index: {}]   ;;  %s7622_s10 = inlined_call_operand.vmem [shape: f32[2,16,128], index: 10, kind: output, shape index: {}]  }
   0x1   :  { %v15_v0 = vstv %s7621_s9 }
   0x2   :  { %16 = vst [vmem:[#allocation2] sm:$0x1] %v15_v0 }
   0x3 LB: > { %s4088_s16 = sadd.s32 4294967295, %s4814_s15   ;;  %p4092_p0 = scmp.ge.s32.totalorder %s4814_s15, 1  ;;  %s4814_s15 = sphi %s4915_s15, %s22_s15  }
   0x4   : > { %p314_p1 = scmp.lt.s32.totalorder %s4814_s15, 3 }
   0x6   : > { %p315_p2 = pnand %p4092_p0, %p314_p1 }
   0x7   : > { %p352_p3 = scmp.lt.s32.totalorder (!%p315_p2), %s4088_s16, 1  ;;  %s4951_s24 = smov (!%p315_p2), 0  }
   0x8   : > { %318 = sbr.rel (%p315_p2) target bundleno = 1228 (0x4cc), region = 60 }
   0xd   : > { %s7848_s16 = smov (!%p352_p3, %s4088_s16), 1  ;;  %v4933_v1 = vmov 0.0   ;;  %v4935_v2 = vmov 0.0   ;;  %v4937_v3 = vmov 0.0   ;;  %v4939_v4 = vmov 0.0  }
   0xe   : > { %s4360_s17 = smul.u32 384, %s7848_s16  ;;  %s4353_s9 = sshll.u32 %s7848_s16, 4  ;;  %v4941_v5 = vmov 0.0   ;;  %v4943_v6 = vmov 0.0   ;;  %v4945_v7 = vmov 0.0   ;;  %v4947_v8 = vmov 0.0  }
   0xf   : > { %s4926_s20 = scalar_lea.vmem %s7622_s10, %s4353_s9  ;;  %v4949_v9 = vmov 0.0  }
  0x10   : > { %s4931_s23 = scalar_lea.vmem %s7612_s0, %s4360_s17 }
  0x11 LB: >> { %7634 = vst [vmem:[#allocation3_spill] sm:$0xff] %v4818_v1  ;;  %v4986_v10 = vld [vmem:[%s7615_s3 + $0x20] sm:$0xff]  ;;  %v4991_v11 = vld [vmem:[%s7615_s3 + $0x10] sm:$0xff]  ;;  %v4856_v13 = vmov 0   ;;  %s4097_s11 = smul.u32 96, %s4854_s24  ;;  %vm474_vm0 = vcmask 1041408   ;;  %4357 = vmatpush.msra.mxu3 %v4842_v7  ;;  %572 = vmatpush.msra.mxu1 %v4842_v7  ;;  %s4854_s24 = sphi %s4951_s24, %s367_s24   ;;  %v4850_v9 = vphi %v4949_v9, %v7029_v9   ;;  %v4846_v8 = vphi %v4947_v8, %v7034_v8   ;;  %v4842_v7 = vphi %v4945_v7, %v7037_v7   ;;  %v4838_v6 = vphi %v4943_v6, %v3934_v6   ;;  %v4834_v5 = vphi %v4941_v5, %v3935_v5   ;;  %v4830_v4 = vphi %v4939_v4, %v3936_v4   ;;  %v4826_v3 = vphi %v4937_v3, %v7528_v3   ;;  %v4822_v2 = vphi %v4935_v2, %v7530_v2   ;;  %v4818_v1 = vphi %v4933_v1, %v3930_v1  }
  0x12   : >> { %7635 = vst [vmem:[#allocation4_spill] sm:$0xff] %v4822_v2  ;;  %v4996_v12 = vld [vmem:[%s7615_s3] sm:$0xff]  ;;  %4452 = vset.pattern.permute.xlu2 %v4856_v13  ;;  %4451 = vset.pattern.permute.xlu1 %v4856_v13  ;;  %v525_v16 = vld [vmem:[%s7614_s2 + $0x18] sm:$0xff]  ;;  %vm531_vm1 = vcmask 195584   ;;  %v5026_v19 = vld [vmem:[%s7615_s3 + $0x8] sm:$0xff]  ;;  %vm446_vm2 = vcmask 146432  }
  0x13   : >> { %7636 = vst [vmem:[#allocation5_spill] sm:$0xff] %v4826_v3  ;;  %4450 = vset.pattern.permute.xlu0 %v4856_v13  ;;  %423 = vperm.xlu2 %4452, %v4986_v10   ;;  %s5004_s12 = scalar_lea.vmem %s4931_s23, %s4097_s11  ;;  %v5018_v17 = vld [vmem:[%s7615_s3 + $0x18] sm:$0xff]  ;;  %v5031_v20 = vld [vmem:[%s7615_s3 + $0x28] sm:$0xff]  ;;  %v5037_v21 = vld [vmem:[%s7613_s1] sm:$0xff]  ;;  %s4096_s21 = sshll.u32 %s4854_s24, 2 }
  0x14   : >> { %413 = vperm.xlu0 %4450, %v4991_v11   ;;  %403 = vperm.xlu1 %4451, %v4996_v12   ;;  %v382_v14 = vld [vmem:[%s5004_s12 + $0x10] sm:$0x3]  ;;  %v381_v15 = vld [vmem:[%s5004_s12 + $0x8] sm:$0xff]  ;;  %v380_v18 = vld [vmem:[%s5004_s12] sm:$0xff]  ;;  %s6368_s26 = scalar_lea.vmem %s4926_s20, %s4096_s21  ;;  %s367_s24 = sadd.s32 1, %s4854_s24  }
  0x15   : >> { %4358 = vmatpush.msra.mxu3 %v4846_v8  ;;  %4098 = vmatpush.msk.msra.mxu0 %vm474_vm0, %v382_v14  ;;  %v5043_v22 = vld [vmem:[%s7613_s1 + $0x18] sm:$0xff]  ;;  %v5050_v23 = vld [vmem:[%s7614_s2] sm:$0xff]  ;;  %v4160_v24 = vld [vmem:[%s5004_s12 + $0x28] sm:$0x3]  ;;  %p364_p4 = scmp.ge.s32.totalorder %s367_s24, 4  }
  0x16   : >> { %4354 = vmatpush.msk.msra.mxu2 %vm474_vm0, %v382_v14  ;;  %573 = vmatpush.msra.mxu1 %v4846_v8  ;;  %v4159_v25 = vld [vmem:[%s5004_s12 + $0x20] sm:$0xff]  ;;  %v5068_v27 = vld [vmem:[%s7616_s4 + $0x8] sm:$0xff]  ;;  %v4158_v28 = vld [vmem:[%s5004_s12 + $0x18] sm:$0xff] }
  0x17   : >> { %4359 = vmatpush.msra.mxu3 %v4850_v9  ;;  %492 = vmatpush.msra.mxu0 %v381_v15  ;;  %v526_v26 = vld [vmem:[%s7614_s2 + $0x20] sm:$0xff]  ;;  %v5074_v29 = vld [vmem:[%s7616_s4 + $0x10] sm:$0xff]  ;;  %v5085_v31 = vld [vmem:[%s7613_s1 + $0x8] sm:$0xff] }
  0x18   : >> { %4111 = vmatmul.msk.f32.vlgmr.msra.gmra.mxu3 %vm531_vm1, %v525_v16  ;;  %4355 = vmatpush.msra.mxu2 %v381_v15  ;;  %v5079_v30 = vld [vmem:[%s7615_s3 + $0x40] sm:$0xff]  ;;  %v5098_v33 = vld [vmem:[%s7614_s2 + $0x8] sm:$0xff]  ;;  %v5112_v35 = vld [vmem:[%s7615_s3 + $0x30] sm:$0xff] }
  0x19   : >> { %493 = vmatpush.msra.mxu0 %v380_v18  ;;  %574 = vmatpush.msra.mxu1 %v4850_v9  ;;  %v5091_v32 = vld [vmem:[%s7613_s1 + $0x20] sm:$0xff]  ;;  %v527_v34 = vld [vmem:[%s7614_s2 + $0x28] sm:$0xff]  ;;  %v5117_v36 = vld [vmem:[%s7615_s3 + $0x38] sm:$0xff] }
  0x1a   : >> { %4356 = vmatpush.msra.mxu2 %v380_v18  ;;  %4099 = vmatmul.msk.f32.vlgmr.msra.gmra.mxu0 %vm446_vm2, %v5037_v21  ;;  %v5122_v37 = vld [vmem:[%s7616_s4] sm:$0xff]  ;;  %v5128_v38 = vld [vmem:[%s7613_s1 + $0x10] sm:$0xff]  ;;  %v5134_v39 = vld [vmem:[%s7613_s1 + $0x28] sm:$0xff] }
  0x1b   : >> { %418 = vperm.xlu2 %4452, %v5018_v17   ;;  %4102 = vmatmul.msk.f32.vlgmr.msra.gmra.mxu2 %vm446_vm2, %v5043_v22  ;;  %v5141_v40 = vld [vmem:[%s7614_s2 + $0x10] sm:$0xff]  ;;  %v529_v44 = vld [vmem:[%s7614_s2 + $0x38] sm:$0xff]  ;;  %v5176_v45 = vld [vmem:[%s7619_s7 + $0x8] sm:$0xff] }
  0x1c   : >> { %408 = vperm.xlu0 %4450, %v5026_v19   ;;  %428 = vperm.xlu1 %4451, %v5031_v20   ;;  %v528_v41 = vld [vmem:[%s7614_s2 + $0x30] sm:$0xff]  ;;  %v5181_v46 = vld [vmem:[%s7619_s7 + $0x28] sm:$0xff]  ;;  %v5188_v47 = vld [vmem:[%s7613_s1 + $0x38] sm:$0xff] }
  0x1d   : >> { %4108 = vmatmul.msk.f32.vlgmr.msra.gmra.mxu1 %vm531_vm1, %v5050_v23  ;;  %4161 = vmatpush.msk.msrb.mxu0 %vm474_vm0, %v4160_v24  ;;  %v5155_v42 = vld [vmem:[%s7619_s7 + $0x10] sm:$0xff]  ;;  %v530_v48 = vld [vmem:[%s7614_s2 + $0x40] sm:$0xff]  ;;  %v5202_v49 = vld [vmem:[%s7619_s7 + $0x18] sm:$0xff] }
  0x1e   : >> { %v5162_v43 = vld [vmem:[%s7613_s1 + $0x30] sm:$0xff]  ;;  %v5207_v50 = vld [vmem:[%s7619_s7 + $0x20] sm:$0xff]  ;;  %v5245_v55 = vld [vmem:[%s7619_s7 + $0x38] sm:$0xff]  ;;  %838 = vmatpush.msrb.mxu2 %v4830_v4 }
  0x1f   : >> { %1392 = vmatpush.msrb.mxu0 %v4159_v25  ;;  %v5212_v51 = vld [vmem:[%s7619_s7] sm:$0xff]  ;;  %v5235_v53 = vld [vmem:[%s7619_s7 + $0x30] sm:$0xff]  ;;  %v4224_v57 = vld [vmem:[%s5004_s12 + $0x38] sm:$0xff] }
  0x20   : >> { %4112 = vmatmul.msk.f32.gmra.mxu3 %vm531_vm1, %v526_v26  ;;  %v5219_v52 = vld [vmem:[%s7613_s1 + $0x40] sm:$0xff]  ;;  %v5258_v58 = vld [vmem:[%s7619_s7 + $0x48] sm:$0xff]  ;;  %v5263_v59 = vld [vmem:[%s7619_s7 + $0x58] sm:$0xff]  ;;  %839 = vmatpush.msrb.mxu2 %v4834_v5 }
  0x21   : >> { %1393 = vmatpush.msrb.mxu0 %v4158_v28  ;;  %7637 = vst [vmem:[#allocation6_spill] sm:$0xff] %v5219_v52  ;;  %v5240_v54 = vld [vmem:[%s7619_s7 + $0x40] sm:$0xff]  ;;  %v5268_v60 = vld [vmem:[%s7619_s7 + $0x50] sm:$0xff]  ;;  %v4290_v28 = vld [vmem:[%s5004_s12 + $0x58] sm:$0x3] }
  0x22   : >> { %4100 = vmatmul.msk.f32.gmra.mxu0 %vm446_vm2, %v5085_v31  ;;  %v4225_v56 = vld [vmem:[%s5004_s12 + $0x40] sm:$0x3]  ;;  %v4223_v61 = vld [vmem:[%s5004_s12 + $0x30] sm:$0xff]  ;;  %840 = vmatpush.msrb.mxu2 %v4838_v6 }
  0x23   : >> { %733 = vperm.xlu2 %4452, %v5068_v27   ;;  %4103 = vmatmul.msk.f32.gmra.mxu2 %vm446_vm2, %v5091_v32 }
  0x24   : >> { %738 = vperm.xlu0 %4450, %v5074_v29   ;;  %443 = vperm.xlu1 %4451, %v5079_v30  }
  0x25   : >> { %4109 = vmatmul.msk.f32.gmra.mxu1 %vm531_vm1, %v5098_v33  ;;  %4226 = vmatpush.msk.msra.mxu0 %vm474_vm0, %v4225_v56  ;;  %v4289_v56 = vld [vmem:[%s5004_s12 + $0x50] sm:$0xff] }
  0x27   : >> { %2291 = vmatpush.msra.mxu0 %v4224_v57 }
  0x28   : >> { %4113 = vmatmul.msk.f32.gmra.mxu3 %vm531_vm1, %v527_v34 }
  0x29   : >> { %2292 = vmatpush.msra.mxu0 %v4223_v61 }
  0x2a   : >> { %4101 = vmatmul.msk.f32.gmra.mxu0 %vm446_vm2, %v5128_v38 }
  0x2b   : >> { %433 = vperm.xlu2 %4452, %v5112_v35   ;;  %4104 = vmatmul.msk.f32.gmra.mxu2 %vm446_vm2, %v5134_v39 }
  0x2c   : >> { %438 = vperm.xlu0 %4450, %v5117_v36   ;;  %728 = vperm.xlu1 %4451, %v5122_v37  }
  0x2d   : >> { %4110 = vmatmul.msk.f32.gmra.mxu1 %vm531_vm1, %v5141_v40 }
  0x30   : >> { %4114 = vmatmul.msk.f32.gmra.mxu3 %vm531_vm1, %v528_v41 }
  0x32   : >> { %4162 = vmatmul.msk.f32.vlgmr.msrb.gmra.mxu0 %vm446_vm2, %v5037_v21 }
  0x33   : >> { %991 = vperm.xlu2 %4452, %v5155_v42   ;;  %4105 = vmatmul.msk.f32.gmra.mxu2 %vm446_vm2, %v5162_v43 }
  0x34   : >> { %1315 = vperm.xlu0 %4450, %v4991_v11   ;;  %1310 = vperm.xlu1 %4451, %v5026_v19  }
  0x35   : >> { %4291 = vmatpush.msk.msrb.mxu0 %vm474_vm0, %v4290_v28 }
  0x37   : >> { %3190 = vmatpush.msrb.mxu0 %v4289_v56 }
  0x38   : >> { %4115 = vmatmul.msk.f32.gmra.mxu3 %vm531_vm1, %v529_v44 }
  0x3a   : >> { %4163 = vmatmul.msk.f32.gmra.mxu0 %vm446_vm2, %v5085_v31 }
  0x3b   : >> { %986 = vperm.xlu2 %4452, %v5176_v45   ;;  %4106 = vmatmul.msk.f32.gmra.mxu2 %vm446_vm2, %v5188_v47 }
  0x3c   : >> { %1006 = vperm.xlu0 %4450, %v5181_v46   ;;  %1305 = vperm.xlu1 %4451, %v4996_v12  }
  0x40   : >> { %4116 = vmatmul.msk.f32.gmra.mxu3 %vm531_vm1, %v530_v48 }
  0x42   : >> { %4164 = vmatmul.msk.f32.gmra.mxu0 %vm446_vm2, %v5128_v38 }
  0x43   : >> { %996 = vperm.xlu2 %4452, %v5202_v49   ;;  %4107 = vmatmul.msk.f32.gmra.mxu2 %vm446_vm2, %v5219_v52 }
  0x44   : >> { %1001 = vperm.xlu0 %4450, %v5207_v50   ;;  %981 = vperm.xlu1 %4451, %v5212_v51  }
  0x4a   : >> { %4165 = vmatmul.msk.f32.gmra.mxu0 %vm446_vm2, %v5043_v22 }
  0x4b   : >> { %1320 = vperm.xlu2 %4452, %v5018_v17  }
  0x4c   : >> { %1330 = vperm.xlu0 %4450, %v5031_v20   ;;  %1325 = vperm.xlu1 %4451, %v4986_v10  }
  0x52   : >> { %4166 = vmatmul.msk.f32.gmra.mxu0 %vm446_vm2, %v5091_v32 }
  0x53   : >> { %1011 = vperm.xlu2 %4452, %v5235_v53  }
  0x54   : >> { %1021 = vperm.xlu0 %4450, %v5240_v54   ;;  %1016 = vperm.xlu1 %4451, %v5245_v55  }
  0x5a   : >> { %4167 = vmatmul.msk.f32.gmra.mxu0 %vm446_vm2, %v5134_v39 }
  0x5b   : >> { %1026 = vperm.xlu2 %4452, %v5258_v58  }
  0x5c   : >> { %1036 = vperm.xlu0 %4450, %v5263_v59   ;;  %1031 = vperm.xlu1 %4451, %v5268_v60  }
  0x62   : >> { %4168 = vmatmul.msk.f32.gmra.mxu0 %vm446_vm2, %v5162_v43 }
  0x63   : >> { %1632 = vperm.xlu2 %4452, %v5068_v27  }
  0x64   : >> { %1637 = vperm.xlu0 %4450, %v5074_v29   ;;  %1345 = vperm.xlu1 %4451, %v5079_v30  }
  0x6a   : >> { %4169 = vmatmul.msk.f32.gmra.mxu0 %vm446_vm2, %v5188_v47 }
  0x6b   : >> { %1335 = vperm.xlu2 %4452, %v5112_v35  }
  0x6c   : >> { %1340 = vperm.xlu0 %4450, %v5117_v36   ;;  %1627 = vperm.xlu1 %4451, %v5122_v37  }
  0x6d   : >> { %v424_v62 = vpop.permute.xlu2 %423 }
  0x72   : >> { %4170 = vmatmul.msk.f32.gmra.mxu0 %vm446_vm2, %v5219_v52 }
  0x73   : >> { %1890 = vperm.xlu2 %4452, %v5155_v42  }
  0x74   : >> { %2214 = vperm.xlu0 %4450, %v4991_v11   ;;  %2209 = vperm.xlu1 %4451, %v5026_v19  }
  0x75   : >> { %v419_v25 = vpop.permute.xlu2 %418 }
  0x7a   : >> { %4227 = vmatmul.msk.f32.vlgmr.msra.gmra.mxu0 %vm446_vm2, %v5037_v21 }
  0x7b   : >> { %1885 = vperm.xlu2 %4452, %v5176_v45  }
  0x7c   : >> { %1905 = vperm.xlu0 %4450, %v5181_v46   ;;  %2204 = vperm.xlu1 %4451, %v4996_v12  }
  0x82   : >> { %4228 = vmatmul.msk.f32.gmra.mxu0 %vm446_vm2, %v5085_v31 }
  0x83   : >> { %1895 = vperm.xlu2 %4452, %v5202_v49  }
  0x84   : >> { %1900 = vperm.xlu0 %4450, %v5207_v50   ;;  %1880 = vperm.xlu1 %4451, %v5212_v51  }
  0x86   : >> { %v414_v63 = vpop.permute.xlu0 %413  ;;  %v404_v0 = vpop.permute.xlu1 %403 }
  0x8a   : >> { %4229 = vmatmul.msk.f32.gmra.mxu0 %vm446_vm2, %v5128_v38 }
  0x8b   : >> { %2219 = vperm.xlu2 %4452, %v5018_v17  }
  0x8c   : >> { %2229 = vperm.xlu0 %4450, %v5031_v20   ;;  %2224 = vperm.xlu1 %4451, %v4986_v10  }
  0x8e   : >> { %v409_v34 = vpop.permute.xlu0 %408 }
  0x92   : >> { %4230 = vmatmul.msk.f32.gmra.mxu0 %vm446_vm2, %v5043_v22 }
  0x93   : >> { %1910 = vperm.xlu2 %4452, %v5235_v53  }
  0x94   : >> { %1920 = vperm.xlu0 %4450, %v5240_v54   ;;  %1915 = vperm.xlu1 %4451, %v5245_v55  }
  0x97   : >> { %v495_v13 = vpop.f32.mrf.mxu0 }
  0x98   : >> { %v496_v14 = vadd.f32 %v495_v13, %v404_v0 }
  0x9a   : >> { %v576_v15 = vpop.f32.mrf.mxu1  ;;  %4231 = vmatmul.msk.f32.gmra.mxu0 %vm446_vm2, %v5091_v32 }
  0x9b   : >> { %1925 = vperm.xlu2 %4452, %v5258_v58   ;;  %v603_v16 = vadd.f32 %v576_v15, %v496_v14  ;;  %v585_v18 = vpop.f32.mrf.mxu3  ;;  %v4288_v14 = vld [vmem:[%s5004_s12 + $0x48] sm:$0xff] }
  0x9c   : >> { %1935 = vperm.xlu0 %4450, %v5263_v59   ;;  %1930 = vperm.xlu1 %4451, %v5268_v60  }
  0x9d   : >> { %v4117_v24 = vmul.f32 -1.442695, %v603_v16  ;;  %3191 = vmatpush.msrb.mxu0 %v4288_v14 }
  0x9e   : >> { %v504_v26 = vpop.f32.mrf.mxu2 }
  0x9f   : >> { %4453 = vpow2.f32 %v4117_v24  ;;  %v505_v41 = vadd.f32 %v504_v26, %v419_v25  ;;  %v498_v44 = vpop.f32.mrf.mxu0 }
  0xa0   : >> { %v499_v48 = vadd.f32 %v498_v44, %v409_v34 }
  0xa1   : >> { %v606_v57 = vadd.f32 %v585_v18, %v505_v41 }
  0xa2   : >> { %v579_v61 = vpop.f32.mrf.mxu1  ;;  %4232 = vmatmul.msk.f32.gmra.mxu0 %vm446_vm2, %v5134_v39 }
  0xa3   : >> { %2531 = vperm.xlu2 %4452, %v5068_v27   ;;  %v604_v0 = vadd.f32 %v579_v61, %v499_v48  ;;  %v588_v13 = vpop.f32.mrf.mxu3  ;;  %v4120_v15 = vmul.f32 -1.442695, %v606_v57  ;;  %v429_v61 = vpop.permute.xlu1 %428 }
  0xa4   : >> { %2536 = vperm.xlu0 %4450, %v5074_v29   ;;  %2244 = vperm.xlu1 %4451, %v5079_v30  }
  0xa5   : >> { %v4454_v16 = vpop.eup %4453  ;;  %v4118_v24 = vmul.f32 -1.442695, %v604_v0  ;;  %4455 = vpow2.f32 %v4120_v15 }
  0xa6   : >> { %v5325_v25 = vadd.f32 1.0, %v4454_v16  ;;  %v507_v18 = vpop.f32.mrf.mxu2 }
  0xa7   : >> { %4457 = vpow2.f32 %v4118_v24  ;;  %v508_v26 = vadd.f32 %v507_v18, %v424_v62  ;;  %v501_v28 = vpop.f32.mrf.mxu0 }
  0xa8   : >> { %4459 = vrcp.f32 %v5325_v25  ;;  %v502_v34 = vadd.f32 %v501_v28, %v414_v63  ;;  %vm638_vm4 = vweird.f32 %v5325_v25  ;;  %v644_v4 = vand.u32 2147483648, %v5325_v25 }
  0xa9   : >> { %v607_v41 = vadd.f32 %v588_v13, %v508_v26 }
  0xaa   : >> { %v582_v44 = vpop.f32.mrf.mxu1  ;;  %4233 = vmatmul.msk.f32.gmra.mxu0 %vm446_vm2, %v5162_v43 }
  0xab   : >> { %2234 = vperm.xlu2 %4452, %v5112_v35   ;;  %v605_v48 = vadd.f32 %v582_v44, %v502_v34  ;;  %v591_v56 = vpop.f32.mrf.mxu3  ;;  %v4456_v57 = vpop.eup %4455  ;;  %v4121_v0 = vmul.f32 -1.442695, %v607_v41 }
  0xac   : >> { %2239 = vperm.xlu0 %4450, %v5117_v36   ;;  %2526 = vperm.xlu1 %4451, %v5122_v37   ;;  %v5340_v18 = vadd.f32 1.0, %v4456_v57 }
  0xad   : >> { %v4458_v14 = vpop.eup %4457  ;;  %v4119_v62 = vmul.f32 -1.442695, %v605_v48  ;;  %4461 = vpow2.f32 %v4121_v0 }
  0xae   : >> { %v5333_v15 = vpop.eup %4459  ;;  %v5335_v63 = vadd.f32 1.0, %v4458_v14  ;;  %v510_v13 = vpop.f32.mrf.mxu2 }
  0xaf   : >> { %v634_v16 = vmul.f32 %v5333_v15, %v5325_v25  ;;  %v511_v24 = vadd.f32 %v510_v13, %v429_v61  ;;  %vm639_vm3 = vweird.f32 %v5333_v15  ;;  %v734_v13 = vpop.permute.xlu2 %733 }
  0xb0   : >> { %4463 = vrcp.f32 %v5335_v63  ;;  %vm5375_vm6 = vmor %vm638_vm4, %vm639_vm3  ;;  %vm653_vm7 = vweird.f32 %v5335_v63 }
  0xb1   : >> { %4465 = vpow2.f32 %v4119_v62  ;;  %v635_v26 = vsub.f32 1.0, %v634_v16  ;;  %v608_v28 = vadd.f32 %v591_v56, %v511_v24  ;;  %v642_v24 = vand.u32 2147483647, %v5325_v25 }
  0xb2   : >> { %4234 = vmatmul.msk.f32.gmra.mxu0 %vm446_vm2, %v5188_v47  ;;  %4467 = vrcp.f32 %v5340_v18 }
  0xb3   : >> { %2789 = vperm.xlu2 %4452, %v5155_v42   ;;  %v594_v34 = vpop.f32.mrf.mxu3  ;;  %v4462_v41 = vpop.eup %4461  ;;  %v4122_v44 = vmul.f32 -1.442695, %v608_v28  ;;  %v636_v57 = vmul.f32 %v5333_v15, %v635_v26  ;;  %vm643_vm9 = vcmp.eq.f32.partialorder %v642_v24, 8.507059e+37 }
  0xb4   : >> { %3113 = vperm.xlu0 %4450, %v4991_v11   ;;  %3108 = vperm.xlu1 %4451, %v5026_v19   ;;  %v5348_v48 = vadd.f32 1.0, %v4462_v41  ;;  %v5351_v42 = vpop.permute.xlu1 %443  ;;  %v5371_v28 = vpop.permute.xlu0 %738 }
  0xb5   : >> { %4469 = vpow2.f32 %v4122_v44  ;;  %v637_v14 = vadd.f32 %v5333_v15, %v636_v57 }
  0xb6   : >> { %v4464_v61 = vpop.eup %4463  ;;  %4471 = vrcp.f32 %v5348_v48  ;;  %v513_v19 = vpop.f32.mrf.mxu2  ;;  %vm698_vm13 = vweird.f32 %v5348_v48  ;;  %v702_v6 = vand.u32 2147483647, %v5348_v48 }
  0xb7   : >> { %v4466_v11 = vpop.eup %4465  ;;  %v649_v56 = vmul.f32 %v4464_v61, %v5335_v63  ;;  %vm654_vm5 = vweird.f32 %v4464_v61  ;;  %v641_v57 = vsel %vm5375_vm6, %v5333_v15, %v637_v14 }
  0xb8   : >> { %v5356_v0 = vadd.f32 1.0, %v4466_v11  ;;  %v5366_v16 = vpop.eup %4467  ;;  %vm5391_vm8 = vmor %vm653_vm7, %vm654_vm5 }
  0xb9   : >> { %v650_v62 = vsub.f32 1.0, %v649_v56  ;;  %v657_v56 = vand.u32 2147483647, %v5335_v63  ;;  %vm684_vm11 = vweird.f32 %v5366_v16 }
  0xba   : >> { %4473 = vrcp.f32 %v5356_v0  ;;  %4235 = vmatmul.msk.f32.gmra.mxu0 %vm446_vm2, %v5219_v52  ;;  %vm668_vm14 = vweird.f32 %v5356_v0 }
  0xbb   : >> { %2784 = vperm.xlu2 %4452, %v5176_v45   ;;  %v651_v26 = vmul.f32 %v4464_v61, %v650_v62  ;;  %v4470_v45 = vpop.eup %4469  ;;  %v645_v62 = vor.u32 1.1754944e-38, %v644_v4  ;;  %v679_v4 = vmul.f32 %v5366_v16, %v5340_v18  ;;  %vm658_vm10 = vcmp.eq.f32.partialorder %v657_v56, 8.507059e+37 }
  0xbc   : >> { %2804 = vperm.xlu0 %4450, %v5181_v46   ;;  %3103 = vperm.xlu1 %4451, %v4996_v12   ;;  %v597_v46 = vpop.f32.mrf.mxu3  ;;  %v659_v12 = vand.u32 2147483648, %v5335_v63  ;;  %v5381_v25 = vpop.eup %4471  ;;  %v5383_v44 = vadd.f32 1.0, %v4470_v45 }
  0xbd   : >> { %v652_v11 = vadd.f32 %v4464_v61, %v651_v26  ;;  %v694_v3 = vmul.f32 %v5381_v25, %v5348_v48  ;;  %v729_v63 = vpop.permute.xlu1 %728  ;;  %v646_v45 = vsel %vm643_vm9, %v645_v62, %v641_v57  ;;  %vm699_vm3 = vweird.f32 %v5381_v25 }
  0xbe   : >> { %4475 = vrcp.f32 %v5383_v44  ;;  %v516_v14 = vpop.f32.mrf.mxu2  ;;  %v660_v5 = vor.u32 1.1754944e-38, %v659_v12  ;;  %v741_v41 = vadd.f32 %v729_v63, %v594_v34  ;;  %v742_v12 = vadd.f32 %v734_v13, %v597_v46  ;;  %v434_v34 = vpop.permute.xlu2 %433  ;;  %vm5448_vm6 = vmor %vm698_vm13, %vm699_vm3 }
  0xbf   : >> { %v656_v15 = vsel %vm5391_vm8, %v4464_v61, %v652_v11  ;;  %v695_v1 = vsub.f32 1.0, %v694_v3  ;;  %v777_v61 = vld [vmem:[%s7618_s6] sm:$0xff]  ;;  %v674_v11 = vand.u32 2147483648, %v5356_v0  ;;  %v514_v56 = vadd.f32 %v513_v19, %v434_v34 }
  0xc0   : >> { %v4474_v26 = vpop.eup %4473  ;;  %v661_v52 = vsel %vm658_vm10, %v660_v5, %v656_v15  ;;  %v744_v24 = vmul.f32 %v741_v41, %v646_v45  ;;  %4123 = vmatmul.msk.f32.vlgmr.msrb.gmra.mxu2 %vm531_vm1, %v777_v61  ;;  %vm713_vm5 = vweird.f32 %v5383_v44  ;;  %v717_v34 = vand.u32 2147483647, %v5383_v44 }
  0xc1   : >> { %v664_v2 = vmul.f32 %v4474_v26, %v5356_v0  ;;  %v745_v62 = vmul.f32 %v742_v12, %v661_v52  ;;  %vm669_vm12 = vweird.f32 %v4474_v26  ;;  %v696_v46 = vmul.f32 %v5381_v25, %v695_v1 }
  0xc2   : >> { %4292 = vmatmul.msk.f32.vlgmr.msrb.gmra.mxu0 %vm446_vm2, %v5037_v21  ;;  %v747_v63 = vadd.f32 %v744_v24, %v514_v56  ;;  %vm670_vm15 = vmor %vm668_vm14, %vm669_vm12  ;;  %v675_v52 = vor.u32 1.1754944e-38, %v674_v11  ;;  %vm683_vm8 = vweird.f32 %v5340_v18  ;;  %v687_v56 = vand.u32 2147483647, %v5340_v18  ;;  %v7646_v11 = vld [vmem:[#allocation6_spill] sm:$0xff] }
  0xc3   : >> { %2794 = vperm.xlu2 %4452, %v5202_v49   ;;  %v665_v57 = vsub.f32 1.0, %v664_v2  ;;  %v672_v49 = vand.u32 2147483647, %v5356_v0  ;;  %v439_v2 = vpop.permute.xlu0 %438  ;;  %vm685_vm9 = vmor %vm683_vm8, %vm684_vm11  ;;  %vm718_vm10 = vcmp.eq.f32.partialorder %v717_v34, 8.507059e+37  ;;  %vm703_vm12 = vcmp.eq.f32.partialorder %v702_v6, 8.507059e+37 }
  0xc4   : >> { %2799 = vperm.xlu0 %4450, %v5207_v50   ;;  %2779 = vperm.xlu1 %4451, %v5212_v51   ;;  %v680_v50 = vsub.f32 1.0, %v679_v4  ;;  %v5415_v3 = vpop.eup %4475  ;;  %v600_v21 = vpop.f32.mrf.mxu3  ;;  %v517_v45 = vadd.f32 %v516_v14, %v439_v2  ;;  %v697_v14 = vadd.f32 %v5381_v25, %v696_v46  ;;  %vm688_vm13 = vcmp.eq.f32.partialorder %v687_v56, 8.507059e+37  ;;  %v2168_v34 = vld [vmem:[#allocation2] sm:$0x1]  ;;  %v786_v56 = vld [vmem:[%s7618_s6 + $0x48] sm:$0xff] }
  0xc5   : >> { %v666_v15 = vmul.f32 %v4474_v26, %v665_v57  ;;  %v709_v13 = vmul.f32 %v5415_v3, %v5383_v44  ;;  %vm673_vm0 = vcmp.eq.f32.partialorder %v672_v49, 8.507059e+37  ;;  %v743_v1 = vadd.f32 %v5371_v28, %v600_v21  ;;  %v785_v49 = vld [vmem:[%s7618_s6 + $0x40] sm:$0xff] }
  0xc6   : >> { %v519_v19 = vpop.f32.mrf.mxu2  ;;  %v681_v41 = vmul.f32 %v5366_v16, %v680_v50  ;;  %v748_v61 = vadd.f32 %v745_v62, %v517_v45  ;;  %vm714_vm4 = vweird.f32 %v5415_v3  ;;  %v701_v50 = vsel %vm5448_vm6, %v5381_v25, %v697_v14  ;;  %v1269_v14 = vld [vmem:[#allocation2] sm:$0x1] }
  0xc7   : >> { %v667_v5 = vadd.f32 %v4474_v26, %v666_v15  ;;  %v710_v4 = vsub.f32 1.0, %v709_v13  ;;  %vm5455_vm7 = vmor %vm713_vm5, %vm714_vm4 }
  0xc8   : >> { %4477 = vtanh.f32 %v748_v61  ;;  %v766_v61 = vld [vmem:[%s7617_s5 + $0x8] sm:$0xff] }
  0xc9   : >> { %v671_v12 = vsel %vm670_vm15, %v4474_v26, %v667_v5  ;;  %v711_v0 = vmul.f32 %v5415_v3, %v710_v4  ;;  %v778_v26 = vld [vmem:[%s7618_s6 + $0x8] sm:$0xff]  ;;  %4479 = vtanh.f32 %v747_v63 }
  0xca   : >> { %v676_v24 = vsel %vm673_vm0, %v675_v52, %v671_v12  ;;  %4293 = vmatmul.msk.f32.gmra.mxu0 %vm446_vm2, %v5085_v31  ;;  %v682_v31 = vadd.f32 %v5366_v16, %v681_v41  ;;  %4124 = vmatmul.msk.f32.gmra.mxu2 %vm531_vm1, %v778_v26  ;;  %v784_v26 = vld [vmem:[%s7618_s6 + $0x38] sm:$0xff] }
  0xcb   : >> { %3118 = vperm.xlu2 %4452, %v5018_v17   ;;  %v746_v28 = vmul.f32 %v743_v1, %v676_v24  ;;  %v520_v17 = vadd.f32 %v519_v19, %v5351_v42  ;;  %v712_v57 = vadd.f32 %v5415_v3, %v711_v0  ;;  %v768_v1 = vld [vmem:[%s7617_s5 + $0x18] sm:$0xff] }
  0xcc   : >> { %3128 = vperm.xlu0 %4450, %v5031_v20   ;;  %3123 = vperm.xlu1 %4451, %v4986_v10   ;;  %v719_v20 = vand.u32 2147483648, %v5383_v44  ;;  %v704_v10 = vand.u32 2147483648, %v5348_v48  ;;  %v689_v44 = vand.u32 2147483648, %v5340_v18  ;;  %v686_v2 = vsel %vm685_vm9, %v5366_v16, %v682_v31  ;;  %v779_v18 = vld [vmem:[%s7618_s6 + $0x10] sm:$0xff]  ;;  %v1425_v24 = vld [vmem:[%s7614_s2 + $0x18] sm:$0xff]  ;;  %v1427_v31 = vld [vmem:[%s7614_s2 + $0x28] sm:$0xff] }
  0xcd   : >> { %v749_v42 = vadd.f32 %v746_v28, %v520_v17  ;;  %v716_v48 = vsel %vm5455_vm7, %v5415_v3, %v712_v57  ;;  %v769_v17 = vld [vmem:[%s7617_s5 + $0x20] sm:$0xff] }
  0xce   : >> { %v720_v62 = vor.u32 1.1754944e-38, %v719_v20  ;;  %v705_v15 = vor.u32 1.1754944e-38, %v704_v10  ;;  %v690_v13 = vor.u32 1.1754944e-38, %v689_v44  ;;  %v4478_v25 = vpop.eup %4477  ;;  %v1426_v20 = vld [vmem:[%s7614_s2 + $0x20] sm:$0xff] }
  0xcf   : >> { %4481 = vtanh.f32 %v749_v42  ;;  %v4480_v16 = vpop.eup %4479 }
  0xd0   : >> { %v721_v21 = vsel %vm718_vm10, %v720_v62, %v716_v48  ;;  %v706_v3 = vsel %vm703_vm12, %v705_v15, %v701_v50  ;;  %v691_v46 = vsel %vm688_vm13, %v690_v13, %v686_v2  ;;  %v771_v62 = vld [vmem:[%s7617_s5 + $0x30] sm:$0xff] }
  0xd1   : >> { %v755_v6 = vsub.f32 1.0, %v721_v21  ;;  %v753_v5 = vsub.f32 1.0, %v691_v46  ;;  %v760_v19 = vmul.f32 %v4846_v8, %v706_v3  ;;  %v759_v41 = vmul.f32 %v4850_v9, %v691_v46  ;;  %v5506_v9 = vpop.permute.xlu1 %1310  ;;  %v1428_v15 = vld [vmem:[%s7614_s2 + $0x30] sm:$0xff]  ;;  %v772_v46 = vld [vmem:[%s7617_s5 + $0x38] sm:$0xff] }
  0xd2   : >> { %4294 = vmatmul.msk.f32.gmra.mxu0 %vm446_vm2, %v5128_v38  ;;  %4125 = vmatmul.msk.f32.gmra.mxu2 %vm531_vm1, %v779_v18  ;;  %v787_v18 = vld [vmem:[%s7618_s6 + $0x50] sm:$0xff] }
  0xd3   : >> { %2809 = vperm.xlu2 %4452, %v5235_v53   ;;  %v754_v53 = vsub.f32 1.0, %v706_v3  ;;  %v756_v4 = vmul.f32 %v4480_v16, %v753_v5  ;;  %v3667_v3 = vld [vmem:[%s7619_s7 + $0x18] sm:$0xff]  ;;  %v773_v5 = vld [vmem:[%s7617_s5 + $0x40] sm:$0xff] }
  0xd4   : >> { %2819 = vperm.xlu0 %4450, %v5240_v54   ;;  %2814 = vperm.xlu1 %4451, %v5245_v55   ;;  %v761_v54 = vmul.f32 %v4842_v7, %v721_v21  ;;  %v780_v7 = vld [vmem:[%s7618_s6 + $0x18] sm:$0xff]  ;;  %v3665_v21 = vld [vmem:[%s7619_s7 + $0x8] sm:$0xff] }
  0xd5   : >> { %v4482_v63 = vpop.eup %4481  ;;  %v757_v55 = vmul.f32 %v4478_v25, %v754_v53  ;;  %v5498_v8 = vadd.f32 %v759_v41, %v756_v4  ;;  %v1429_v16 = vld [vmem:[%s7614_s2 + $0x38] sm:$0xff]  ;;  %v3666_v53 = vld [vmem:[%s7619_s7 + $0x10] sm:$0xff]  ;;  %v3673_v41 = vld [vmem:[%s7619_s7 + $0x48] sm:$0xff] }
  0xd6   : >> { %v758_v45 = vmul.f32 %v4482_v63, %v755_v6  ;;  %v3670_v6 = vld [vmem:[%s7619_s7 + $0x30] sm:$0xff]  ;;  %v3669_v63 = vld [vmem:[%s7619_s7 + $0x28] sm:$0xff] }
  0xd7   : >> { %v5488_v38 = vadd.f32 %v760_v19, %v757_v55  ;;  %v1430_v19 = vld [vmem:[%s7614_s2 + $0x40] sm:$0xff] }
  0xd8   : >> { %v5482_v52 = vadd.f32 %v761_v54, %v758_v45  ;;  %v788_v54 = vld [vmem:[%s7618_s6 + $0x58] sm:$0xff] }
  0xda   : >> { %927 = vmatpush.msrb.mxu3 %v5482_v52  ;;  %1471 = vmatpush.msrb.mxu1 %v5482_v52 }
  0xdb   : >> { %2824 = vperm.xlu2 %4452, %v5258_v58   ;;  %v765_v58 = vld [vmem:[%s7617_s5] sm:$0xff]  ;;  %4295 = vmatmul.msk.f32.gmra.mxu0 %vm446_vm2, %v5043_v22 }
  0xdc   : >> { %2834 = vperm.xlu0 %4450, %v5263_v59   ;;  %2829 = vperm.xlu1 %4451, %v5268_v60   ;;  %v5513_v59 = vpop.permute.xlu0 %1315  ;;  %v5516_v60 = vpop.permute.xlu2 %991  ;;  %v781_v22 = vld [vmem:[%s7618_s6 + $0x20] sm:$0xff] }
  0xdd   : >> { %928 = vmatpush.msrb.mxu3 %v5488_v38  ;;  %1472 = vmatpush.msrb.mxu1 %v5488_v38 }
  0xde   : >> { %4126 = vmatmul.msk.f32.gmra.mxu2 %vm531_vm1, %v780_v7  ;;  %v3671_v7 = vld [vmem:[%s7619_s7 + $0x38] sm:$0xff] }
  0xdf   : >> { %929 = vmatpush.msrb.mxu3 %v5498_v8  ;;  %1473 = vmatpush.msrb.mxu1 %v5498_v8 }
  0xe0   : >> { %4135 = vmatmul.msk.f32.vlgmr.msrb.gmra.mxu3 %vm531_vm1, %v765_v58  ;;  %4171 = vmatmul.msk.f32.vlgmr.msrb.gmra.mxu1 %vm531_vm1, %v5050_v23  ;;  %v5532_v23 = vpop.permute.xlu1 %1305  ;;  %v3672_v58 = vld [vmem:[%s7619_s7 + $0x40] sm:$0xff] }
  0xe3   : >> { %3430 = vperm.xlu2 %4452, %v5068_v27   ;;  %4296 = vmatmul.msk.f32.gmra.mxu0 %vm446_vm2, %v5091_v32  ;;  %v767_v32 = vld [vmem:[%s7617_s5 + $0x10] sm:$0xff] }
  0xe4   : >> { %3435 = vperm.xlu0 %4450, %v5074_v29   ;;  %3143 = vperm.xlu1 %4451, %v5079_v30   ;;  %v5535_v27 = vpop.permute.xlu0 %1006  ;;  %v782_v29 = vld [vmem:[%s7618_s6 + $0x28] sm:$0xff]  ;;  %v5542_v30 = vpop.permute.xlu2 %986 }
  0xe6   : >> { %4127 = vmatmul.msk.f32.gmra.mxu2 %vm531_vm1, %v781_v22 }
  0xe8   : >> { %4136 = vmatmul.msk.f32.gmra.mxu3 %vm531_vm1, %v766_v61  ;;  %4172 = vmatmul.msk.f32.gmra.mxu1 %vm531_vm1, %v5098_v33  ;;  %v5553_v33 = vld [vmem:[%s7620_s8 + $0x10] sm:$0xff]  ;;  %v774_v61 = vld [vmem:[%s7617_s5 + $0x48] sm:$0xff] }
  0xeb   : >> { %3133 = vperm.xlu2 %4452, %v5112_v35   ;;  %4297 = vmatmul.msk.f32.gmra.mxu0 %vm446_vm2, %v5134_v39  ;;  %v5561_v35 = vld [vmem:[%s7620_s8] sm:$0xff]  ;;  %v5571_v39 = vpop.permute.xlu1 %981 }
  0xec   : >> { %3138 = vperm.xlu0 %4450, %v5117_v36   ;;  %3425 = vperm.xlu1 %4451, %v5122_v37   ;;  %v5566_v36 = vld [vmem:[%s7620_s8 + $0x8] sm:$0xff]  ;;  %v5568_v37 = vpop.f32.mrf.mxu0  ;;  %v5578_v12 = vpop.permute.xlu0 %1001 }
  0xed   : >> { %v5589_v0 = vpop.permute.xlu2 %996 }
  0xee   : >> { %4128 = vmatmul.msk.f32.gmra.mxu2 %vm531_vm1, %v782_v29 }
  0xf0   : >> { %4137 = vmatmul.msk.f32.gmra.mxu3 %vm531_vm1, %v767_v32  ;;  %4173 = vmatmul.msk.f32.gmra.mxu1 %vm531_vm1, %v5141_v40  ;;  %v783_v40 = vld [vmem:[%s7618_s6 + $0x30] sm:$0xff] }
  0xf3   : >> { %1255 = vperm.xlu2 %4452, %v5553_v33   ;;  %4298 = vmatmul.msk.f32.gmra.mxu0 %vm446_vm2, %v5162_v43  ;;  %v5600_v43 = vpop.permute.xlu1 %1325 }
  0xf4   : >> { %1245 = vperm.xlu0 %4450, %v5561_v35   ;;  %1250 = vperm.xlu1 %4451, %v5566_v36   ;;  %v5597_v28 = vpop.f32.mrf.mxu0  ;;  %v5611_v10 = vpop.permute.xlu0 %1330 }
  0xf5   : >> { %v5615_v57 = vpop.permute.xlu2 %1320 }
  0xf6   : >> { %4129 = vmatmul.msk.f32.gmra.mxu2 %vm531_vm1, %v783_v40  ;;  %v3674_v40 = vld [vmem:[%s7619_s7 + $0x50] sm:$0xff] }
  0xf8   : >> { %4138 = vmatmul.msk.f32.gmra.mxu3 %vm531_vm1, %v768_v1  ;;  %4174 = vmatmul.msk.f32.gmra.mxu1 %vm531_vm1, %v1425_v24  ;;  %v3675_v1 = vld [vmem:[%s7619_s7 + $0x58] sm:$0xff]  ;;  %v775_v24 = vld [vmem:[%s7617_s5 + $0x50] sm:$0xff] }
  0xfb   : >> { %2149 = vperm.xlu2 %4452, %v5566_v36   ;;  %4299 = vmatmul.msk.f32.gmra.mxu0 %vm446_vm2, %v5188_v47  ;;  %v770_v47 = vld [vmem:[%s7617_s5 + $0x28] sm:$0xff]  ;;  %v5633_v44 = vpop.permute.xlu1 %1016 }
  0xfc   : >> { %1272 = vperm.xlu0 %4450, %v1269_v14   ;;  %2144 = vperm.xlu1 %4451, %v5561_v35   ;;  %v5628_v42 = vpop.f32.mrf.mxu0  ;;  %v5637_v48 = vpop.permute.xlu0 %1021 }
  0xfd   : >> { %v5640_v50 = vpop.permute.xlu2 %1011 }
  0xfe   : >> { %4130 = vmatmul.msk.f32.gmra.mxu2 %vm531_vm1, %v784_v26  ;;  %v3067_v26 = vld [vmem:[#allocation2] sm:$0x1] }
 0x100   : >> { %4139 = vmatmul.msk.f32.gmra.mxu3 %vm531_vm1, %v769_v17  ;;  %4175 = vmatmul.msk.f32.gmra.mxu1 %vm531_vm1, %v1426_v20 }
 0x103   : >> { %3043 = vperm.xlu2 %4452, %v5561_v35   ;;  %4300 = vmatmul.msk.f32.gmra.mxu0 %vm446_vm2, %v7646_v11  ;;  %v5659_v2 = vpop.permute.xlu1 %1031 }
 0x104   : >> { %2154 = vperm.xlu0 %4450, %v5553_v33   ;;  %2171 = vperm.xlu1 %4451, %v2168_v34   ;;  %v5667_v13 = vpop.permute.xlu0 %1036 }
 0x105   : >> { %v5672_v25 = vpop.permute.xlu2 %1026 }
 0x106   : >> { %4131 = vmatmul.msk.f32.gmra.mxu2 %vm531_vm1, %v785_v49  ;;  %v3966_v49 = vld [vmem:[#allocation2] sm:$0x1] }
 0x108   : >> { %4140 = vmatmul.msk.f32.gmra.mxu3 %vm531_vm1, %v770_v47  ;;  %4176 = vmatmul.msk.f32.gmra.mxu1 %vm531_vm1, %v1427_v31 }
 0x10b   : >> { %3678 = vperm.xlu2 %4452, %v5212_v51   ;;  %v3668_v51 = vld [vmem:[%s7619_s7 + $0x20] sm:$0xff]  ;;  %v5692_v45 = vpop.permute.xlu1 %1345 }
 0x10c   : >> { %3048 = vperm.xlu0 %4450, %v5566_v36   ;;  %3053 = vperm.xlu1 %4451, %v5553_v33   ;;  %v5697_v55 = vpop.permute.xlu0 %1637 }
 0x10d   : >> { %v5706_v4 = vpop.permute.xlu2 %1632 }
 0x10e   : >> { %4132 = vmatmul.msk.f32.gmra.mxu2 %vm531_vm1, %v786_v56 }
 0x110   : >> { %4141 = vmatmul.msk.f32.gmra.mxu3 %vm531_vm1, %v771_v62  ;;  %4177 = vmatmul.msk.f32.gmra.mxu1 %vm531_vm1, %v1428_v15 }
 0x113   : >> { %3698 = vperm.xlu2 %4452, %v3668_v51   ;;  %v5719_v22 = vpop.permute.xlu1 %1627 }
 0x114   : >> { %3683 = vperm.xlu0 %4450, %v3665_v21   ;;  %3693 = vperm.xlu1 %4451, %v3667_v3   ;;  %v5724_v29 = vpop.permute.xlu0 %1340  ;;  %v1404_v21 = vpop.f32.mrf.mxu0 }
 0x115   : >> { %v5727_v32 = vpop.permute.xlu2 %1335 }
 0x116   : >> { %4133 = vmatmul.msk.f32.gmra.mxu2 %vm531_vm1, %v787_v18 }
 0x118   : >> { %4142 = vmatmul.msk.f32.gmra.mxu3 %vm531_vm1, %v772_v46  ;;  %4178 = vmatmul.msk.f32.gmra.mxu1 %vm531_vm1, %v1429_v16 }
 0x11b   : >> { %3708 = vperm.xlu2 %4452, %v3670_v6   ;;  %v5739_v14 = vpop.permute.xlu1 %2209  ;;  %v1396_v6 = vadd.f32 %v5568_v37, %v5532_v23 }
 0x11c   : >> { %3688 = vperm.xlu0 %4450, %v3666_v53   ;;  %3703 = vperm.xlu1 %4451, %v3669_v63   ;;  %v5742_v17 = vpop.permute.xlu0 %2214  ;;  %v1407_v63 = vpop.f32.mrf.mxu0 }
 0x11d   : >> { %v5744_v20 = vpop.permute.xlu2 %1890 }
 0x11e   : >> { %4134 = vmatmul.msk.f32.gmra.mxu2 %vm531_vm1, %v788_v54  ;;  %7647 = vst [vmem:[#allocation6_spill] sm:$0xff] %v5744_v20 }
 0x120   : >> { %4143 = vmatmul.msk.f32.gmra.mxu3 %vm531_vm1, %v773_v5  ;;  %4179 = vmatmul.msk.f32.gmra.mxu1 %vm531_vm1, %v1430_v19 }
 0x123   : >> { %3723 = vperm.xlu2 %4452, %v3673_v41   ;;  %v5752_v34 = vpop.permute.xlu1 %2204 }
 0x124   : >> { %3713 = vperm.xlu0 %4450, %v3671_v7   ;;  %3718 = vperm.xlu1 %4451, %v3672_v58   ;;  %v5754_v47 = vpop.permute.xlu0 %1905  ;;  %v5788_v23 = vpop.f32.mrf.mxu0 }
 0x125   : >> { %7648 = vst [vmem:[#allocation7_spill] sm:$0xff] %v5754_v47  ;;  %v5756_v31 = vpop.permute.xlu2 %1885 }
 0x128   : >> { %4144 = vmatmul.msk.f32.gmra.mxu3 %vm531_vm1, %v774_v61  ;;  %v1399_v61 = vadd.f32 %v5597_v28, %v5506_v9 }
 0x12b   : >> { %3942 = vperm.xlu2 %4452, %v5561_v35   ;;  %v776_v35 = vld [vmem:[%s7617_s5 + $0x58] sm:$0xff]  ;;  %v5758_v11 = vpop.permute.xlu1 %1880 }
 0x12c   : >> { %3728 = vperm.xlu0 %4450, %v3674_v40   ;;  %3733 = vperm.xlu1 %4451, %v3675_v1   ;;  %v5760_v56 = vpop.permute.xlu0 %1900 }
 0x12d   : >> { %7649 = vst [vmem:[#allocation8_spill] sm:$0xff] %v5760_v56 }
 0x130   : >> { %4145 = vmatmul.msk.f32.gmra.mxu3 %vm531_vm1, %v775_v24 }
 0x133   : >> { %3070 = vperm.xlu2 %4452, %v3067_v26   ;;  %v5764_v62 = vpop.permute.xlu1 %2224 }
 0x134   : >> { %3947 = vperm.xlu0 %4450, %v5566_v36   ;;  %3952 = vperm.xlu1 %4451, %v5553_v33   ;;  %v5762_v36 = vpop.permute.xlu2 %1895  ;;  %v5766_v15 = vpop.permute.xlu0 %2229 }
 0x135   : >> { %7650 = vst [vmem:[#allocation9_spill] sm:$0xff] %v5762_v36 }
 0x138   : >> { %4146 = vmatmul.msk.f32.gmra.mxu3 %vm531_vm1, %v776_v35 }
 0x13b   : >> { %v5770_v18 = vpop.permute.xlu1 %1915 }
 0x13c   : >> { %3969 = vperm.xlu0 %4450, %v3966_v49   ;;  %v5768_v51 = vpop.permute.xlu2 %2219  ;;  %7651 = vst [vmem:[#allocation10_spill] sm:$0xff] %v5770_v18  ;;  %v5772_v46 = vpop.permute.xlu0 %1920 }
 0x13d   : >> { %7652 = vst [vmem:[#allocation11_spill] sm:$0xff] %v5772_v46 }
 0x143   : >> { %v842_v33 = vpop.f32.mrf.mxu2  ;;  %v5780_v19 = vpop.permute.xlu1 %1930 }
 0x144   : >> { %v5774_v16 = vpop.permute.xlu2 %1910  ;;  %7654 = vst [vmem:[#allocation13_spill] sm:$0xff] %v5780_v19  ;;  %v5782_v7 = vpop.permute.xlu0 %1935 }
 0x145   : >> { %7653 = vst [vmem:[#allocation12_spill] sm:$0xff] %v5774_v16 }
 0x146   : >> { %7655 = vst [vmem:[#allocation14_spill] sm:$0xff] %v5782_v7 }
 0x14b   : >> { %v5790_v49 = vpop.permute.xlu1 %2244 }
 0x14c   : >> { %v5786_v40 = vpop.permute.xlu2 %1925  ;;  %v5794_v7 = vpop.permute.xlu0 %2536 }
 0x14d   : >> { %v845_v3 = vpop.f32.mrf.mxu2  ;;  %7656 = vst [vmem:[#allocation15_spill] sm:$0xff] %v5786_v40 }
 0x155   : >> { %v5778_v5 = vpop.f32.mrf.mxu2 }
 0x15d   : >> { %v1475_v53 = vpop.f32.mrf.mxu1 }
 0x15e   : >> { %v1502_v54 = vadd.f32 %v1475_v53, %v1396_v6 }
 0x160   : >> { %v4180_v41 = vmul.f32 -1.442695, %v1502_v54  ;;  %v1402_v54 = vadd.f32 %v5628_v42, %v5513_v59  ;;  %v1405_v42 = vadd.f32 %v1404_v21, %v5615_v57 }
 0x161   : >> { %v851_v26 = vpop.f32.mrf.mxu2 }
 0x162   : >> { %4483 = vpow2.f32 %v4180_v41 }
 0x163   : >> { %v931_v58 = vpop.f32.mrf.mxu3 }
 0x164   : >> { %v932_v35 = vadd.f32 %v931_v58, %v842_v33  ;;  %v5801_v58 = vpop.f32.mrf.mxu0 }
 0x165   : >> { %v1478_v1 = vpop.f32.mrf.mxu1 }
 0x166   : >> { %v1503_v24 = vadd.f32 %v1478_v1, %v1399_v61  ;;  %v1039_v28 = vadd.f32 %v5571_v39, %v932_v35  ;;  %v5797_v61 = vpop.permute.xlu2 %2531 }
 0x168   : >> { %v4181_v37 = vmul.f32 -1.442695, %v1503_v24  ;;  %v4484_v53 = vpop.eup %4483  ;;  %v4147_v19 = vmul.f32 -1.442695, %v1039_v28 }
 0x169   : >> { %v5799_v1 = vadd.f32 1.0, %v4484_v53  ;;  %v854_v59 = vpop.f32.mrf.mxu2 }
 0x16a   : >> { %4485 = vpow2.f32 %v4181_v37  ;;  %v5805_v37 = vpop.permute.xlu1 %2526 }
 0x16b   : >> { %v934_v6 = vpop.f32.mrf.mxu3  ;;  %4487 = vrcp.f32 %v5799_v1  ;;  %vm1537_vm11 = vweird.f32 %v5799_v1 }
 0x16c   : >> { %v935_v53 = vadd.f32 %v934_v6, %v845_v3  ;;  %v1416_v3 = vpop.f32.mrf.mxu0 }
 0x16d   : >> { %v1481_v9 = vpop.f32.mrf.mxu1 }
 0x16e   : >> { %v1504_v41 = vadd.f32 %v1481_v9, %v1402_v54  ;;  %v5809_v9 = vpop.permute.xlu0 %2239  ;;  %v5813_v28 = vpop.permute.xlu2 %2234  ;;  %v1040_v57 = vadd.f32 %v5542_v30, %v935_v53 }
 0x170   : >> { %v4182_v24 = vmul.f32 -1.442695, %v1504_v41  ;;  %v4486_v33 = vpop.eup %4485 }
 0x171   : >> { %v5807_v39 = vadd.f32 1.0, %v4486_v33  ;;  %v5811_v46 = vpop.eup %4487 }
 0x172   : >> { %4489 = vpow2.f32 %v4182_v24  ;;  %v1533_v6 = vmul.f32 %v5811_v46, %v5799_v1  ;;  %v5826_v30 = vpop.permute.xlu1 %3108  ;;  %vm1538_vm2 = vweird.f32 %v5811_v46 }
 0x173   : >> { %v937_v40 = vpop.f32.mrf.mxu3  ;;  %4491 = vpow2.f32 %v4147_v19  ;;  %v1408_v19 = vadd.f32 %v1407_v63, %v5600_v43  ;;  %7657 = vst [vmem:[#allocation16_spill] sm:$0xff] %v5826_v30  ;;  %vm5884_vm15 = vmor %vm1537_vm11, %vm1538_vm2  ;;  %vm1552_vm3 = vweird.f32 %v5807_v39 }
 0x174   : >> { %4493 = vrcp.f32 %v5807_v39  ;;  %v938_v43 = vadd.f32 %v937_v40, %v5778_v5  ;;  %v1534_v53 = vsub.f32 1.0, %v1533_v6 }
 0x175   : >> { %v1484_v35 = vpop.f32.mrf.mxu1 }
 0x176   : >> { %v1505_v54 = vadd.f32 %v1484_v35, %v1405_v42  ;;  %v5822_v35 = vpop.f32.mrf.mxu2  ;;  %v1535_v40 = vmul.f32 %v5811_v46, %v1534_v53 }
 0x178   : >> { %v4183_v41 = vmul.f32 -1.442695, %v1505_v54  ;;  %v4490_v18 = vpop.eup %4489  ;;  %v4148_v54 = vmul.f32 -1.442695, %v1040_v57 }
 0x179   : >> { %v5817_v21 = vadd.f32 1.0, %v4490_v18  ;;  %v4492_v33 = vpop.eup %4491 }
 0x17a   : >> { %4495 = vpow2.f32 %v4183_v41  ;;  %v5824_v20 = vpop.eup %4493  ;;  %v5828_v18 = vadd.f32 1.0, %v4492_v33  ;;  %v5832_v41 = vpop.permute.xlu0 %3113  ;;  %v1041_v33 = vadd.f32 %v5516_v60, %v938_v43 }
 0x17b   : >> { %v940_v24 = vpop.f32.mrf.mxu3  ;;  %4497 = vrcp.f32 %v5817_v21  ;;  %7658 = vst [vmem:[#allocation17_spill] sm:$0xff] %v5832_v41  ;;  %v1543_v41 = vand.u32 2147483648, %v5799_v1  ;;  %vm1553_vm0 = vweird.f32 %v5824_v20  ;;  %vm1567_vm6 = vweird.f32 %v5817_v21 }
 0x17c   : >> { %v941_v16 = vadd.f32 %v940_v24, %v851_v26  ;;  %4499 = vpow2.f32 %v4148_v54  ;;  %v1548_v26 = vmul.f32 %v5824_v20, %v5807_v39  ;;  %v5837_v24 = vpop.permute.xlu2 %2789  ;;  %v4149_v43 = vmul.f32 -1.442695, %v1041_v33  ;;  %v5867_v33 = vpop.permute.xlu1 %3103  ;;  %vm5920_vm5 = vmor %vm1552_vm3, %vm1553_vm0 }
 0x17d   : >> { %v1487_v42 = vpop.f32.mrf.mxu1  ;;  %7659 = vst [vmem:[#allocation18_spill] sm:$0xff] %v5837_v24  ;;  %4501 = vrcp.f32 %v5828_v18 }
 0x17e   : >> { %v1506_v47 = vadd.f32 %v1487_v42, %v1408_v19  ;;  %v1042_v57 = vadd.f32 %v5589_v0, %v941_v16  ;;  %v1541_v16 = vand.u32 2147483647, %v5799_v1  ;;  %v1419_v42 = vpop.f32.mrf.mxu0  ;;  %v5851_v30 = vpop.f32.mrf.mxu2  ;;  %7660 = vst [vmem:[#allocation19_spill] sm:$0xff] %v5867_v33 }
 0x180   : >> { %v4184_v63 = vmul.f32 -1.442695, %v1506_v47  ;;  %v4496_v56 = vpop.eup %4495  ;;  %v1411_v47 = vadd.f32 %v5788_v23, %v5611_v10  ;;  %v4150_v54 = vmul.f32 -1.442695, %v1042_v57  ;;  %v5862_v57 = vadd.f32 %v1416_v3, %v5724_v29 }
 0x181   : >> { %v5841_v19 = vadd.f32 1.0, %v4496_v56  ;;  %v5846_v6 = vpop.eup %4497  ;;  %v1549_v56 = vsub.f32 1.0, %v1548_v26  ;;  %v5865_v26 = vadd.f32 %v1419_v42, %v5692_v45  ;;  %vm5871_vm14 = vcmp.eq.f32.partialorder %v1541_v16, 8.507059e+37 }
 0x182   : >> { %4503 = vpow2.f32 %v4184_v63  ;;  %v4500_v10 = vpop.eup %4499  ;;  %v1536_v63 = vadd.f32 %v5811_v46, %v1535_v40  ;;  %v1563_v53 = vmul.f32 %v5846_v6, %v5817_v21  ;;  %v5878_v29 = vpop.permute.xlu0 %2804  ;;  %v1558_v16 = vand.u32 2147483648, %v5807_v39 }
 0x183   : >> { %v943_v5 = vpop.f32.mrf.mxu3  ;;  %4505 = vrcp.f32 %v5841_v19  ;;  %v5857_v36 = vpop.eup %4501  ;;  %7663 = vst [vmem:[#allocation20_spill] sm:$0xff] %v5878_v29  ;;  %vm1568_vm8 = vweird.f32 %v5846_v6  ;;  %vm1582_vm9 = vweird.f32 %v5841_v19 }
 0x184   : >> { %v944_v24 = vadd.f32 %v943_v5, %v854_v59  ;;  %v1414_v59 = vadd.f32 %v5801_v58, %v5727_v32  ;;  %4507 = vpow2.f32 %v4150_v54  ;;  %v1550_v32 = vmul.f32 %v5824_v20, %v1549_v56  ;;  %v5893_v54 = vpop.permute.xlu2 %2784  ;;  %vm5966_vm10 = vmor %vm1567_vm6, %vm1568_vm8 }
 0x185   : >> { %v1490_v0 = vpop.f32.mrf.mxu1  ;;  %4509 = vpow2.f32 %v4149_v43  ;;  %v1564_v42 = vsub.f32 1.0, %v1563_v53  ;;  %7666 = vst [vmem:[#allocation21_spill] sm:$0xff] %v5893_v54  ;;  %v5899_v56 = vadd.f32 1.0, %v4500_v10  ;;  %v1571_v10 = vand.u32 2147483647, %v5817_v21 }
 0x186   : >> { %v1507_v60 = vadd.f32 %v1490_v0, %v1411_v47  ;;  %v1043_v47 = vadd.f32 %v5578_v12, %v944_v24  ;;  %v1544_v12 = vor.u32 1.1754944e-38, %v1543_v41  ;;  %v1556_v24 = vand.u32 2147483647, %v5807_v39 }
 0x187   : >> { %v1540_v0 = vsel %vm5884_vm15, %v5811_v46, %v1536_v63  ;;  %v1551_v63 = vadd.f32 %v5824_v20, %v1550_v32  ;;  %vm5937_vm7 = vcmp.eq.f32.partialorder %v1571_v10, 8.507059e+37  ;;  %vm1092_vm8 = vweird.f32 %v5828_v18 }
 0x188   : >> { %v4185_v23 = vmul.f32 -1.442695, %v1507_v60  ;;  %v4504_v5 = vpop.eup %4503  ;;  %v5897_v60 = vmul.f32 %v5857_v36, %v5828_v18  ;;  %vm5912_vm4 = vcmp.eq.f32.partialorder %v1556_v24, 8.507059e+37 }
 0x189   : >> { %v5876_v58 = vpop.eup %4505  ;;  %v5880_v45 = vadd.f32 1.0, %v4504_v5  ;;  %v1545_v5 = vsel %vm5871_vm14, %v1544_v12, %v1540_v0  ;;  %v863_v12 = vpop.f32.mrf.mxu2 }
 0x18a   : >> { %4511 = vpow2.f32 %v4185_v23  ;;  %v1578_v41 = vmul.f32 %v5876_v58, %v5841_v19  ;;  %v4151_v23 = vmul.f32 -1.442695, %v1043_v47  ;;  %v4508_v1 = vpop.eup %4507  ;;  %v1573_v47 = vand.u32 2147483648, %v5817_v21 }
 0x18b   : >> { %v946_v3 = vpop.f32.mrf.mxu3  ;;  %4513 = vrcp.f32 %v5880_v45  ;;  %v4510_v32 = vpop.eup %4509  ;;  %vm1583_vm2 = vweird.f32 %v5876_v58  ;;  %vm1597_vm11 = vweird.f32 %v5880_v45 }
 0x18c   : >> { %v947_v53 = vadd.f32 %v946_v3, %v5822_v35  ;;  %4515 = vrcp.f32 %v5899_v56  ;;  %v1579_v40 = vsub.f32 1.0, %v1578_v41  ;;  %v1559_v3 = vor.u32 1.1754944e-38, %v1558_v16  ;;  %vm6006_vm15 = vmor %vm1582_vm9, %vm1583_vm2 }
 0x18d   : >> { %v1493_v43 = vpop.f32.mrf.mxu1  ;;  %4517 = vpow2.f32 %v4151_v23  ;;  %v5932_v41 = vadd.f32 1.0, %v4508_v1  ;;  %v5946_v1 = vpop.permute.xlu0 %2799  ;;  %v5948_v39 = vadd.f32 1.0, %v4510_v32 }
 0x18e   : >> { %v1640_v46 = vadd.f32 %v5719_v22, %v1493_v43  ;;  %v1565_v22 = vmul.f32 %v5846_v6, %v1564_v42  ;;  %v1555_v42 = vsel %vm5920_vm5, %v5824_v20, %v1551_v63  ;;  %v1044_v16 = vadd.f32 %v5535_v27, %v947_v53  ;;  %7674 = vst [vmem:[#allocation23_spill] sm:$0xff] %v5946_v1  ;;  %v5959_v1 = vpop.permute.xlu2 %2794 }
 0x18f   : >> { %v1574_v63 = vor.u32 1.1754944e-38, %v1573_v47  ;;  %v1580_v10 = vmul.f32 %v5876_v58, %v1579_v40  ;;  %7675 = vst [vmem:[#allocation24_spill] sm:$0xff] %v5959_v1 }
 0x190   : >> { %v1643_v29 = vmul.f32 %v1640_v46, %v1545_v5  ;;  %v4512_v24 = vpop.eup %4511  ;;  %v5930_v46 = vpop.permute.xlu1 %2779  ;;  %v4152_v32 = vmul.f32 -1.442695, %v1044_v16  ;;  %v1603_v16 = vand.u32 2147483648, %v5880_v45 }
 0x191   : >> { %v5928_v43 = vpop.eup %4513  ;;  %7671 = vst [vmem:[#allocation22_spill] sm:$0xff] %v5930_v46  ;;  %v5934_v5 = vadd.f32 1.0, %v4512_v24  ;;  %v1560_v46 = vsel %vm5912_vm4, %v1559_v3, %v1555_v42 }
 0x192   : >> { %v1646_v0 = vadd.f32 %v1643_v29, %v1414_v59  ;;  %v1586_v59 = vand.u32 2147483647, %v5841_v19  ;;  %v1593_v20 = vmul.f32 %v5928_v43, %v5880_v45  ;;  %v1566_v29 = vadd.f32 %v5846_v6, %v1565_v22  ;;  %v5957_v47 = vpop.eup %4515 }
 0x193   : >> { %v949_v35 = vpop.f32.mrf.mxu3  ;;  %4519 = vrcp.f32 %v5934_v5  ;;  %vm1598_vm13 = vweird.f32 %v5928_v43  ;;  %v1604_v23 = vor.u32 1.1754944e-38, %v1603_v16  ;;  %vm1612_vm4 = vweird.f32 %v5934_v5 }
 0x194   : >> { %v950_v27 = vadd.f32 %v949_v35, %v5851_v30  ;;  %v1594_v24 = vsub.f32 1.0, %v1593_v20  ;;  %4521 = vrcp.f32 %v5932_v41  ;;  %vm5970_vm12 = vcmp.eq.f32.partialorder %v1586_v59, 8.507059e+37  ;;  %v4518_v35 = vpop.eup %4517  ;;  %vm5994_vm14 = vmor %vm1597_vm11, %vm1598_vm13 }
 0x195   : >> { %v1496_v53 = vpop.f32.mrf.mxu1  ;;  %v1570_v3 = vsel %vm5966_vm10, %v5846_v6, %v1566_v29  ;;  %v1581_v59 = vadd.f32 %v5876_v58, %v1580_v10  ;;  %4523 = vtanh.f32 %v1646_v0  ;;  %v5989_v29 = vadd.f32 1.0, %v4518_v35 }
 0x196   : >> { %v1641_v22 = vadd.f32 %v5706_v4, %v1496_v53  ;;  %v1588_v4 = vand.u32 2147483648, %v5841_v19  ;;  %v1595_v42 = vmul.f32 %v5928_v43, %v1594_v24  ;;  %v1045_v21 = vadd.f32 %v5640_v50, %v950_v27  ;;  %v866_v50 = vpop.f32.mrf.mxu2 }
 0x197   : >> { %4525 = vpow2.f32 %v4152_v32  ;;  %v1575_v24 = vsel %vm5937_vm7, %v1574_v63, %v1570_v3  ;;  %v1585_v63 = vsel %vm6006_vm15, %v5876_v58, %v1581_v59  ;;  %vm1093_vm7 = vweird.f32 %v5857_v36 }
 0x198   : >> { %v1644_v40 = vmul.f32 %v1641_v22, %v1560_v46  ;;  %v1601_v46 = vand.u32 2147483647, %v5880_v45  ;;  %v1596_v27 = vadd.f32 %v5928_v43, %v1595_v42  ;;  %v6012_v30 = vpop.permute.xlu1 %3123  ;;  %v6022_v42 = vpop.permute.xlu0 %3128  ;;  %vm6085_vm9 = vmor %vm1092_vm8, %vm1093_vm7  ;;  %vm1108_vm13 = vweird.f32 %v5957_v47 }
 0x199   : >> { %v5987_v6 = vpop.eup %4519  ;;  %7684 = vst [vmem:[#allocation25_spill] sm:$0xff] %v6012_v30  ;;  %vm1137_vm15 = vweird.f32 %v5932_v41  ;;  %vm1122_vm7 = vweird.f32 %v5948_v39 }
 0x19a   : >> { %v1647_v20 = vadd.f32 %v1644_v40, %v5862_v57  ;;  %v1589_v57 = vor.u32 1.1754944e-38, %v1588_v4  ;;  %v1608_v0 = vmul.f32 %v5987_v6, %v5934_v5  ;;  %v6010_v32 = vpop.eup %4521  ;;  %v4153_v4 = vmul.f32 -1.442695, %v1045_v21  ;;  %7685 = vst [vmem:[#allocation26_spill] sm:$0xff] %v6022_v42 }
 0x19b   : >> { %v952_v53 = vpop.f32.mrf.mxu3  ;;  %vm1602_vm0 = vcmp.eq.f32.partialorder %v1601_v46, 8.507059e+37  ;;  %v1616_v21 = vand.u32 2147483647, %v5934_v5  ;;  %v4524_v16 = vpop.eup %4523  ;;  %vm1613_vm3 = vweird.f32 %v5987_v6 }
 0x19c   : >> { %4527 = vtanh.f32 %v1647_v20  ;;  %v953_v45 = vadd.f32 %v952_v53, %v863_v12  ;;  %v1600_v12 = vsel %vm5994_vm14, %v5928_v43, %v1596_v27  ;;  %v1609_v19 = vsub.f32 1.0, %v1608_v0  ;;  %vm1614_vm5 = vmor %vm1612_vm4, %vm1613_vm3 }
 0x19d   : >> { %v1499_v35 = vpop.f32.mrf.mxu1  ;;  %4529 = vrcp.f32 %v5989_v29  ;;  %v1605_v20 = vsel %vm1602_vm0, %v1604_v23, %v1600_v12  ;;  %v1590_v43 = vsel %vm5970_vm12, %v1589_v57, %v1585_v63  ;;  %v4526_v59 = vpop.eup %4525  ;;  %vm1617_vm6 = vcmp.eq.f32.partialorder %v1616_v21, 8.507059e+37 }
 0x19e   : >> { %v1046_v40 = vadd.f32 %v5633_v44, %v953_v45  ;;  %v1642_v3 = vadd.f32 %v5697_v55, %v1499_v35  ;;  %v1610_v58 = vmul.f32 %v5987_v6, %v1609_v19  ;;  %v1618_v44 = vand.u32 2147483648, %v5934_v5  ;;  %v6030_v55 = vpop.permute.xlu2 %3118  ;;  %v869_v5 = vpop.f32.mrf.mxu2 }
 0x19f   : >> { %7686 = vst [vmem:[#allocation27_spill] sm:$0xff] %v6030_v55  ;;  %4531 = vpow2.f32 %v4153_v4  ;;  %v1653_v46 = vsub.f32 1.0, %v1605_v20  ;;  %v1652_v10 = vsub.f32 1.0, %v1590_v43  ;;  %v1659_v57 = vmul.f32 %v1605_v20, %v5488_v38 }
 0x1a0   : >> { %v4154_v53 = vmul.f32 -1.442695, %v1046_v40  ;;  %v1645_v27 = vmul.f32 %v1642_v3, %v1575_v24  ;;  %v1611_v24 = vadd.f32 %v5987_v6, %v1610_v58  ;;  %v1658_v12 = vmul.f32 %v1590_v43, %v5498_v8  ;;  %v6061_v58 = vpop.permute.xlu0 %2819 }
 0x1a1   : >> { %v1655_v35 = vmul.f32 %v4524_v16, %v1652_v10  ;;  %v6038_v4 = vadd.f32 1.0, %v4526_v59  ;;  %v1619_v63 = vor.u32 1.1754944e-38, %v1618_v44  ;;  %v6054_v16 = vpop.permute.xlu1 %2814  ;;  %7689 = vst [vmem:[#allocation29_spill] sm:$0xff] %v6061_v58  ;;  %vm1107_vm12 = vweird.f32 %v5899_v56  ;;  %v6502_v58 = vld [vmem:[%s7618_s6 + $0x50] sm:$0xff] }
 0x1a2   : >> { %v4528_v0 = vpop.eup %4527  ;;  %4533 = vpow2.f32 %v4154_v53  ;;  %v1648_v54 = vadd.f32 %v1645_v27, %v5865_v26  ;;  %v1615_v38 = vsel %vm1614_vm5, %v5987_v6, %v1611_v24  ;;  %7688 = vst [vmem:[#allocation28_spill] sm:$0xff] %v6054_v16  ;;  %v1103_v6 = vmul.f32 %v5957_v47, %v5899_v56  ;;  %vm6157_vm3 = vmor %vm1107_vm12, %vm1108_vm13 }
 0x1a3   : >> { %v955_v45 = vpop.f32.mrf.mxu3  ;;  %v1656_v22 = vmul.f32 %v4528_v0, %v1653_v46  ;;  %v6042_v26 = vpop.eup %4529  ;;  %v6047_v40 = vadd.f32 %v1658_v12, %v1655_v35  ;;  %v1620_v20 = vsel %vm1617_vm6, %v1619_v63, %v1615_v38  ;;  %v1096_v46 = vand.u32 2147483647, %v5828_v18  ;;  %7732 = vst [vmem:[#allocation46_spill] sm:$0xff] %v6502_v58 }
 0x1a4   : >> { %4535 = vtanh.f32 %v1648_v54  ;;  %v956_v23 = vadd.f32 %v955_v45, %v866_v50  ;;  %v7687_v50 = vsub.f32 1.0, %v5897_v60  ;;  %v1148_v53 = vmul.f32 %v6042_v26, %v5989_v29 }
 0x1a5   : >> { %v6045_v19 = vadd.f32 %v1659_v57, %v1656_v22  ;;  %4537 = vrcp.f32 %v5948_v39  ;;  %v4532_v43 = vpop.eup %4531  ;;  %v1654_v60 = vsub.f32 1.0, %v1620_v20  ;;  %v1104_v0 = vsub.f32 1.0, %v1103_v6 }
 0x1a6   : >> { %v1047_v8 = vadd.f32 %v5637_v48, %v956_v23  ;;  %v1090_v3 = vmul.f32 %v5857_v36, %v7687_v50  ;;  %4539 = vrcp.f32 %v6038_v4  ;;  %v1133_v48 = vmul.f32 %v6010_v32, %v5932_v41  ;;  %v6068_v10 = vpop.permute.xlu2 %2809  ;;  %v872_v6 = vpop.f32.mrf.mxu2 }
 0x1a7   : >> { %7690 = vst [vmem:[#allocation30_spill] sm:$0xff] %v6068_v10  ;;  %v1660_v24 = vmul.f32 %v1620_v20, %v5482_v52  ;;  %v1149_v35 = vsub.f32 1.0, %v1148_v53  ;;  %v1098_v23 = vand.u32 2147483648, %v5828_v18  ;;  %v6076_v38 = vadd.f32 1.0, %v4532_v43  ;;  %v1687_v10 = vld [vmem:[%s7618_s6 + $0x58] sm:$0xff] }
 0x1a8   : >> { %v4534_v21 = vpop.eup %4533  ;;  %v4155_v27 = vmul.f32 -1.442695, %v1047_v8  ;;  %v1091_v59 = vadd.f32 %v5857_v36, %v1090_v3  ;;  %v1134_v63 = vsub.f32 1.0, %v1133_v48  ;;  %vm6089_vm10 = vcmp.eq.f32.partialorder %v1096_v46, 8.507059e+37 }
 0x1a9   : >> { %v6070_v54 = vadd.f32 1.0, %v4534_v21  ;;  %v1113_v20 = vand.u32 2147483648, %v5899_v56  ;;  %v1105_v21 = vmul.f32 %v5957_v47, %v1104_v0  ;;  %vm1153_vm11 = vweird.f32 %v6042_v26 }
 0x1aa   : >> { %v4536_v44 = vpop.eup %4535  ;;  %4541 = vpow2.f32 %v4155_v27  ;;  %v1095_v43 = vsel %vm6085_vm9, %v5857_v36, %v1091_v59  ;;  %v1150_v27 = vmul.f32 %v6042_v26, %v1149_v35  ;;  %v1135_v46 = vmul.f32 %v6010_v32, %v1134_v63 }
 0x1ab   : >> { %v958_v57 = vpop.f32.mrf.mxu3  ;;  %v1657_v45 = vmul.f32 %v4536_v44, %v1654_v60  ;;  %v6073_v22 = vpop.eup %4537  ;;  %4543 = vrcp.f32 %v6070_v54  ;;  %v1099_v60 = vor.u32 1.1754944e-38, %v1098_v23  ;;  %v1158_v23 = vand.u32 2147483648, %v5989_v29 }
 0x1ac   : >> { %v959_v12 = vadd.f32 %v958_v57, %v869_v5  ;;  %v6081_v50 = vpop.eup %4539  ;;  %v1111_v5 = vand.u32 2147483647, %v5899_v56  ;;  %v6097_v18 = vmul.f32 %v6073_v22, %v5948_v39  ;;  %v6109_v44 = vpop.permute.xlu1 %2829  ;;  %4545 = vrcp.f32 %v6076_v38 }
 0x1ad   : >> { %v6079_v8 = vadd.f32 %v1660_v24, %v1657_v45  ;;  %7695 = vst [vmem:[#allocation31_spill] sm:$0xff] %v6109_v44  ;;  %v1163_v36 = vmul.f32 %v6081_v50, %v6038_v4  ;;  %v1100_v0 = vsel %vm6089_vm10, %v1099_v60, %v1095_v43  ;;  %v1114_v45 = vor.u32 1.1754944e-38, %v1113_v20  ;;  %v6131_v24 = vpop.permute.xlu0 %2834 }
 0x1ae   : >> { %v1048_v48 = vadd.f32 %v5672_v25, %v959_v12  ;;  %v6122_v25 = vld [vmem:[%s7614_s2] sm:$0xff]  ;;  %vm6127_vm2 = vcmp.eq.f32.partialorder %v1111_v5, 8.507059e+37  ;;  %7698 = vst [vmem:[#allocation32_spill] sm:$0xff] %v6131_v24  ;;  %v1119_v35 = vsub.f32 1.0, %v6097_v18  ;;  %v1143_v12 = vand.u32 2147483648, %v5932_v41  ;;  %v6145_v18 = vpop.permute.xlu2 %2824 }
 0x1af   : >> { %1826 = vmatpush.msra.mxu3 %v6079_v8  ;;  %2370 = vmatpush.msra.mxu1 %v6079_v8  ;;  %v1106_v3 = vadd.f32 %v5957_v47, %v1105_v21  ;;  %v1151_v5 = vadd.f32 %v6042_v26, %v1150_v27  ;;  %7699 = vst [vmem:[#allocation33_spill] sm:$0xff] %v6145_v18  ;;  %vm1138_vm14 = vweird.f32 %v6010_v32  ;;  %v1164_v43 = vsub.f32 1.0, %v1163_v36  ;;  %v2294_v18 = vpop.f32.mrf.mxu0 }
 0x1b0   : >> { %v4542_v53 = vpop.eup %4541  ;;  %4547 = vtanh.f32 %v1048_v48  ;;  %v1136_v21 = vadd.f32 %v6010_v32, %v1135_v46  ;;  %vm1152_vm0 = vweird.f32 %v5989_v29  ;;  %vm1123_vm4 = vweird.f32 %v6073_v22  ;;  %vm6177_vm6 = vmor %vm1137_vm15, %vm1138_vm14 }
 0x1b1   : >> { %v6115_v59 = vadd.f32 1.0, %v4542_v53  ;;  %1827 = vmatpush.msra.mxu3 %v6045_v19  ;;  %2371 = vmatpush.msra.mxu1 %v6045_v19  ;;  %v6143_v20 = vpop.eup %4543  ;;  %v1156_v27 = vand.u32 2147483647, %v5989_v29  ;;  %v1144_v60 = vor.u32 1.1754944e-38, %v1143_v12  ;;  %vm6167_vm5 = vmor %vm1152_vm0, %vm1153_vm11  ;;  %v1110_v56 = vsel %vm6157_vm3, %v5957_v47, %v1106_v3  ;;  %v6192_v3 = vld [vmem:[%s7614_s2 + $0x8] sm:$0xff] }
 0x1b2   : >> { %v6163_v48 = vpop.eup %4545  ;;  %v1141_v36 = vand.u32 2147483647, %v5932_v41  ;;  %v1155_v12 = vsel %vm6167_vm5, %v6042_v26, %v1151_v5  ;;  %v1165_v47 = vmul.f32 %v6081_v50, %v1164_v43  ;;  %v1120_v41 = vmul.f32 %v6073_v22, %v1119_v35 }
 0x1b3   : >> { %v961_v63 = vpop.f32.mrf.mxu3  ;;  %1828 = vmatpush.msra.mxu3 %v6047_v40  ;;  %2372 = vmatpush.msra.mxu1 %v6047_v40  ;;  %4549 = vrcp.f32 %v6115_v59  ;;  %vm1167_vm8 = vweird.f32 %v6038_v4  ;;  %v1115_v26 = vsel %vm6127_vm2, %v1114_v45, %v1110_v56  ;;  %vm1157_vm9 = vcmp.eq.f32.partialorder %v1156_v27, 8.507059e+37  ;;  %vm6235_vm2 = vmor %vm1122_vm7, %vm1123_vm4 }
 0x1b4   : >> { %v962_v52 = vadd.f32 %v961_v63, %v872_v6  ;;  %4236 = vmatmul.msk.f32.vlgmr.msra.gmra.mxu1 %vm531_vm1, %v6122_v25  ;;  %v875_v63 = vpop.f32.mrf.mxu2  ;;  %v1178_v5 = vmul.f32 %v6163_v48, %v6076_v38  ;;  %v6204_v43 = vpop.permute.xlu1 %3143  ;;  %v1173_v53 = vand.u32 2147483648, %v6038_v4  ;;  %vm1142_vm10 = vcmp.eq.f32.partialorder %v1141_v36, 8.507059e+37 }
 0x1b5   : >> { %7706 = vst [vmem:[#allocation34_spill] sm:$0xff] %v6204_v43  ;;  %v6209_v45 = vpop.permute.xlu0 %3435  ;;  %vm1168_vm12 = vweird.f32 %v6081_v50  ;;  %v1121_v56 = vadd.f32 %v6073_v22, %v1120_v41  ;;  %v1166_v29 = vadd.f32 %v6081_v50, %v1165_v47  ;;  %vm1198_vm15 = vweird.f32 %v6143_v20 }
 0x1b6   : >> { %v1049_v6 = vadd.f32 %v5659_v2, %v962_v52  ;;  %v1159_v2 = vor.u32 1.1754944e-38, %v1158_v23  ;;  %v1193_v23 = vmul.f32 %v6143_v20, %v6070_v54  ;;  %v1140_v52 = vsel %vm6177_vm6, %v6010_v32, %v1136_v21  ;;  %7707 = vst [vmem:[#allocation35_spill] sm:$0xff] %v6209_v45  ;;  %vm6225_vm13 = vmor %vm1167_vm8, %vm1168_vm12 }
 0x1b7   : >> { %v1145_v57 = vsel %vm1142_vm10, %v1144_v60, %v1140_v52  ;;  %v1171_v52 = vand.u32 2147483647, %v6038_v4  ;;  %v1170_v4 = vsel %vm6225_vm13, %v6081_v50, %v1166_v29  ;;  %vm1197_vm0 = vweird.f32 %v6070_v54  ;;  %v2297_v16 = vpop.f32.mrf.mxu0 }
 0x1b8   : >> { %4551 = vtanh.f32 %v1049_v6  ;;  %v4548_v6 = vpop.eup %4547  ;;  %v1160_v24 = vsel %vm1157_vm9, %v1159_v2, %v1155_v12  ;;  %v1194_v21 = vsub.f32 1.0, %v1193_v23  ;;  %v1128_v12 = vand.u32 2147483648, %v5948_v39  ;;  %v6218_v23 = vpop.permute.xlu2 %3430  ;;  %vm6279_vm4 = vmor %vm1197_vm0, %vm1198_vm15 }
 0x1b9   : >> { %v6202_v35 = vpop.eup %4549  ;;  %v1228_v27 = vmul.f32 %v4548_v6, %v1100_v0  ;;  %7708 = vst [vmem:[#allocation36_spill] sm:$0xff] %v6218_v23  ;;  %v7710_v6 = vld [vmem:[#allocation5_spill] sm:$0xff]  ;;  %vm1172_vm11 = vcmp.eq.f32.partialorder %v1171_v52, 8.507059e+37  ;;  %vm1183_vm3 = vweird.f32 %v6163_v48  ;;  %vm1182_vm5 = vweird.f32 %v6076_v38 }
 0x1ba   : >> { %v1208_v2 = vmul.f32 %v6202_v35, %v6115_v59  ;;  %v1225_v41 = vmul.f32 %v7710_v6, %v1145_v57  ;;  %vm6302_vm6 = vmor %vm1182_vm5, %vm1183_vm3  ;;  %vm1213_vm7 = vweird.f32 %v6202_v35  ;;  %vm1212_vm9 = vweird.f32 %v6115_v59 }
 0x1bb   : >> { %v964_v46 = vpop.f32.mrf.mxu3  ;;  %vm1214_vm12 = vmor %vm1212_vm9, %vm1213_vm7  ;;  %v2295_v1 = vadd.f32 %v2294_v18, %v5752_v34 }
 0x1bc   : >> { %v965_v32 = vadd.f32 %v964_v46, %v875_v63  ;;  %4237 = vmatmul.msk.f32.gmra.mxu1 %vm531_vm1, %v6192_v3  ;;  %v1179_v63 = vsub.f32 1.0, %v1178_v5  ;;  %v7709_v46 = vld [vmem:[#allocation4_spill] sm:$0xff]  ;;  %v1195_v5 = vmul.f32 %v6143_v20, %v1194_v21  ;;  %v1174_v21 = vor.u32 1.1754944e-38, %v1173_v53  ;;  %v6260_v53 = vpop.permute.xlu1 %3425 }
 0x1bd   : >> { %v1226_v0 = vmul.f32 %v7709_v46, %v1160_v24  ;;  %v6245_v24 = vld [vmem:[%s7614_s2 + $0x10] sm:$0xff]  ;;  %v1209_v57 = vsub.f32 1.0, %v1208_v2  ;;  %v1129_v46 = vor.u32 1.1754944e-38, %v1128_v12  ;;  %7715 = vst [vmem:[#allocation4_spill] sm:$0xff] %v6260_v53  ;;  %v1201_v12 = vand.u32 2147483647, %v6070_v54  ;;  %v6274_v52 = vpop.permute.xlu0 %3138 }
 0x1be   : >> { %v4552_v44 = vpop.eup %4551  ;;  %v1050_v36 = vadd.f32 %v5667_v13, %v965_v32  ;;  %v1126_v13 = vand.u32 2147483647, %v5948_v39  ;;  %v6249_v32 = vadd.f32 %v1228_v27, %v1225_v41  ;;  %v1125_v39 = vsel %vm6235_vm2, %v6073_v22, %v1121_v56  ;;  %7716 = vst [vmem:[#allocation5_spill] sm:$0xff] %v6274_v52 }
 0x1bf   : >> { %v1229_v60 = vmul.f32 %v4552_v44, %v1115_v26  ;;  %v1175_v50 = vsel %vm1172_vm11, %v1174_v21, %v1170_v4  ;;  %v1196_v27 = vadd.f32 %v6143_v20, %v1195_v5  ;;  %v1203_v22 = vand.u32 2147483648, %v6070_v54  ;;  %v2300_v52 = vpop.f32.mrf.mxu0 }
 0x1c0   : >> { %4553 = vtanh.f32 %v1050_v36  ;;  %v1180_v36 = vmul.f32 %v6163_v48, %v1179_v63  ;;  %vm1127_vm14 = vcmp.eq.f32.partialorder %v1126_v13, 8.507059e+37  ;;  %v1210_v2 = vmul.f32 %v6202_v35, %v1209_v57  ;;  %v6291_v4 = vpop.permute.xlu2 %3133 }
 0x1c1   : >> { %v6247_v26 = vadd.f32 %v1229_v60, %v1226_v0  ;;  %v1130_v29 = vsel %vm1127_vm14, %v1129_v46, %v1125_v39  ;;  %v6272_v60 = vld [vmem:[%s7617_s5] sm:$0xff]  ;;  %v1188_v54 = vand.u32 2147483648, %v6076_v38  ;;  %v1200_v13 = vsel %vm6279_vm4, %v6143_v20, %v1196_v27  ;;  %v6298_v39 = vld [vmem:[%s7614_s2 + $0x18] sm:$0xff] }
 0x1c2   : >> { %v1181_v63 = vadd.f32 %v6163_v48, %v1180_v36  ;;  %v7717_v0 = vld [vmem:[#allocation3_spill] sm:$0xff]  ;;  %4198 = vmatmul.msk.f32.vlgmr.msra.gmra.mxu3 %vm531_vm1, %v6272_v60  ;;  %v1186_v5 = vand.u32 2147483647, %v6076_v38  ;;  %v1204_v57 = vor.u32 1.1754944e-38, %v1203_v22  ;;  %v1211_v20 = vadd.f32 %v6202_v35, %v1210_v2 }
 0x1c3   : >> { %4555 = vtanh.f32 %v6247_v26  ;;  %v1227_v6 = vmul.f32 %v7717_v0, %v1175_v50  ;;  %7720 = vst [vmem:[#allocation3_spill] sm:$0xff] %v6291_v4  ;;  %vm1202_vm8 = vcmp.eq.f32.partialorder %v1201_v12, 8.507059e+37  ;;  %v1218_v50 = vand.u32 2147483648, %v6115_v59 }
 0x1c4   : >> { %4238 = vmatmul.msk.f32.gmra.mxu1 %vm531_vm1, %v6245_v24  ;;  %4557 = vtanh.f32 %v6249_v32  ;;  %v1185_v38 = vsel %vm6302_vm6, %v6163_v48, %v1181_v63  ;;  %v1205_v27 = vsel %vm1202_vm8, %v1204_v57, %v1200_v13  ;;  %v1216_v22 = vand.u32 2147483647, %v6115_v59  ;;  %v6320_v48 = vld [vmem:[%s7617_s5 + $0x8] sm:$0xff]  ;;  %v1251_v0 = vpop.permute.xlu1 %1250  ;;  %v6328_v13 = vld [vmem:[%s7614_s2 + $0x20] sm:$0xff] }
 0x1c5   : >> { %vm1187_vm10 = vcmp.eq.f32.partialorder %v1186_v5, 8.507059e+37  ;;  %v1215_v12 = vsel %vm1214_vm12, %v6202_v35, %v1211_v20  ;;  %v1246_v47 = vpop.permute.xlu0 %1245  ;;  %v6335_v20 = vld [vmem:[%s7617_s5 + $0x10] sm:$0xff]  ;;  %v2298_v4 = vadd.f32 %v2297_v16, %v5739_v14 }
 0x1c6   : >> { %v4554_v56 = vpop.eup %4553  ;;  %vm1217_vm13 = vcmp.eq.f32.partialorder %v1216_v22, 8.507059e+37 }
 0x1c7   : >> { %v1230_v41 = vmul.f32 %v4554_v56, %v1130_v29  ;;  %v1189_v29 = vor.u32 1.1754944e-38, %v1188_v54 }
 0x1c8   : >> { %v1256_v57 = vpop.permute.xlu2 %1255 }
 0x1c9   : >> { %v4556_v44 = vpop.eup %4555  ;;  %v6293_v21 = vadd.f32 %v1230_v41, %v1227_v6  ;;  %v1190_v2 = vsel %vm1187_vm10, %v1189_v29, %v1185_v38  ;;  %v1219_v6 = vor.u32 1.1754944e-38, %v1218_v50 }
 0x1ca   : >> { %v4558_v46 = vpop.eup %4557  ;;  %v1238_v56 = vmul.f32 %v4556_v44, %v1205_v27  ;;  %4199 = vmatmul.msk.f32.gmra.mxu3 %vm531_vm1, %v6320_v48  ;;  %v6346_v27 = vld [vmem:[%s7614_s2 + $0x28] sm:$0xff] }
 0x1cb   : >> { %4559 = vtanh.f32 %v6293_v21  ;;  %v1237_v63 = vmul.f32 %v4558_v46, %v1190_v2  ;;  %v1220_v54 = vsel %vm1217_vm13, %v1219_v6, %v1215_v12  ;;  %v1676_v46 = vld [vmem:[%s7618_s6] sm:$0xff]  ;;  %v1677_v12 = vld [vmem:[%s7618_s6 + $0x8] sm:$0xff]  ;;  %v6365_v6 = vld [vmem:[%s7614_s2 + $0x30] sm:$0xff] }
 0x1cc   : >> { %4239 = vmatmul.msk.f32.gmra.mxu1 %vm531_vm1, %v6298_v39  ;;  %v1259_v41 = vmul.f32 %v1251_v0, %v1238_v56 }
 0x1cd   : >> { %v1258_v44 = vmul.f32 %v1246_v47, %v1237_v63 }
 0x1cf   : >> { %v1261_v36 = vadd.f32 %v1259_v41, %v1258_v44  ;;  %v6390_v44 = vld [vmem:[%s7614_s2 + $0x38] sm:$0xff] }
 0x1d1   : >> { %v4560_v59 = vpop.eup %4559 }
 0x1d2   : >> { %v1239_v5 = vmul.f32 %v4560_v59, %v1220_v54  ;;  %4200 = vmatmul.msk.f32.gmra.mxu3 %vm531_vm1, %v6335_v20  ;;  %v6375_v54 = vld [vmem:[%s7617_s5 + $0x20] sm:$0xff] }
 0x1d4   : >> { %v1260_v35 = vmul.f32 %v1256_v57, %v1239_v5  ;;  %1737 = vmatpush.msra.mxu2 %v1239_v5  ;;  %4240 = vmatmul.msk.f32.gmra.mxu1 %vm531_vm1, %v6328_v13  ;;  %v6381_v5 = vld [vmem:[%s7618_s6 + $0x10] sm:$0xff]  ;;  %v6397_v57 = vld [vmem:[%s7617_s5 + $0x28] sm:$0xff] }
 0x1d5   : >> { %7723 = vst [vmem:[#allocation37_spill] sm:$0xff] %v6381_v5 }
 0x1d6   : >> { %1738 = vmatpush.msra.mxu2 %v1238_v56  ;;  %v1262_v38 = vadd.f32 %v1261_v36, %v1260_v35  ;;  %v6353_v56 = vld [vmem:[%s7617_s5 + $0x18] sm:$0xff]  ;;  %v6411_v36 = vld [vmem:[%s7614_s2 + $0x40] sm:$0xff] }
 0x1d7   : >> { %v6402_v35 = vld [vmem:[%s7618_s6 + $0x18] sm:$0xff] }
 0x1d8   : >> { %v1263_v50 = vrot.slane %v1262_v38, 4  ;;  %1739 = vmatpush.msra.mxu2 %v1237_v63  ;;  %v1273_v63 = vpop.permute.xlu0 %1272  ;;  %7724 = vst [vmem:[#allocation38_spill] sm:$0xff] %v6402_v35 }
 0x1d9   : >> { %4186 = vmatmul.msk.f32.vlgmr.msra.gmra.mxu2 %vm531_vm1, %v1676_v46  ;;  %v1275_v41 = vperm.slane %v1273_v63, 0  ;;  %v6423_v46 = vld [vmem:[%s7618_s6 + $0x20] sm:$0xff]  ;;  %v6465_v63 = vld [vmem:[%s7618_s6 + $0x38] sm:$0xff] }
 0x1da   : >> { %v1264_v29 = vadd.f32 %v1263_v50, %v1262_v38  ;;  %4201 = vmatmul.msk.f32.gmra.mxu3 %vm531_vm1, %v6353_v56  ;;  %v6418_v38 = vld [vmem:[%s7617_s5 + $0x30] sm:$0xff]  ;;  %7725 = vst [vmem:[#allocation39_spill] sm:$0xff] %v6423_v46  ;;  %v6432_v50 = vld [vmem:[%s7617_s5 + $0x38] sm:$0xff] }
 0x1db   : >> { %7728 = vst [vmem:[#allocation42_spill] sm:$0xff] %v6465_v63 }
 0x1dc   : >> { %v1265_v22 = vrot.slane %v1264_v29, 2  ;;  %4241 = vmatmul.msk.f32.gmra.mxu1 %vm531_vm1, %v6346_v27 }
 0x1de   : >> { %v1266_v2 = vadd.f32 %v1265_v22, %v1264_v29  ;;  %v6437_v29 = vld [vmem:[%s7618_s6 + $0x28] sm:$0xff]  ;;  %v6446_v22 = vld [vmem:[%s7617_s5 + $0x40] sm:$0xff] }
 0x1df   : >> { %7726 = vst [vmem:[#allocation40_spill] sm:$0xff] %v6437_v29 }
 0x1e0   : >> { %v1267_v0 = vrot.slane %v1266_v2, 1 }
 0x1e1   : >> { %4187 = vmatmul.msk.f32.gmra.mxu2 %vm531_vm1, %v1677_v12  ;;  %v6460_v12 = vld [vmem:[%s7617_s5 + $0x48] sm:$0xff] }
 0x1e2   : >> { %v1268_v59 = vadd.f32 %v1267_v0, %v1266_v2  ;;  %4202 = vmatmul.msk.f32.gmra.mxu3 %vm531_vm1, %v6375_v54  ;;  %v6451_v2 = vld [vmem:[%s7618_s6 + $0x30] sm:$0xff] }
 0x1e3   : >> { %7727 = vst [vmem:[#allocation41_spill] sm:$0xff] %v6451_v2  ;;  %v6474_v0 = vld [vmem:[%s7617_s5 + $0x50] sm:$0xff] }
 0x1e4   : >> { %v1276_v47 = vadd.f32 %v1275_v41, %v1268_v59  ;;  %4242 = vmatmul.msk.f32.gmra.mxu1 %vm531_vm1, %v6365_v6  ;;  %v6479_v41 = vld [vmem:[%s7618_s6 + $0x40] sm:$0xff]  ;;  %v6488_v59 = vld [vmem:[%s7617_s5 + $0x58] sm:$0xff] }
 0x1e5   : >> { %7729 = vst [vmem:[#allocation43_spill] sm:$0xff] %v6479_v41 }
 0x1e6   : >> { %1278 = vst [vmem:[%s6368_s26] sm:$0x1] %v1276_v47  ;;  %v6493_v47 = vld [vmem:[%s7618_s6 + $0x48] sm:$0xff] }
 0x1e7   : >> { %7730 = vst [vmem:[#allocation44_spill] sm:$0xff] %v6488_v59 }
 0x1e8   : >> { %7731 = vst [vmem:[#allocation45_spill] sm:$0xff] %v6493_v47 }
 0x1e9   : >> { %4188 = vmatmul.msk.f32.gmra.mxu2 %vm531_vm1, %v6381_v5 }
 0x1ea   : >> { %4203 = vmatmul.msk.f32.gmra.mxu3 %vm531_vm1, %v6397_v57 }
 0x1ec   : >> { %4243 = vmatmul.msk.f32.gmra.mxu1 %vm531_vm1, %v6390_v44 }
 0x1f1   : >> { %4189 = vmatmul.msk.f32.gmra.mxu2 %vm531_vm1, %v6402_v35 }
 0x1f2   : >> { %4204 = vmatmul.msk.f32.gmra.mxu3 %vm531_vm1, %v6418_v38 }
 0x1f4   : >> { %4244 = vmatmul.msk.f32.gmra.mxu1 %vm531_vm1, %v6411_v36 }
 0x1f9   : >> { %4190 = vmatmul.msk.f32.gmra.mxu2 %vm531_vm1, %v6423_v46 }
 0x1fa   : >> { %4205 = vmatmul.msk.f32.gmra.mxu3 %vm531_vm1, %v6432_v50 }
 0x201   : >> { %4191 = vmatmul.msk.f32.gmra.mxu2 %vm531_vm1, %v6437_v29 }
 0x202   : >> { %4206 = vmatmul.msk.f32.gmra.mxu3 %vm531_vm1, %v6446_v22 }
 0x209   : >> { %4192 = vmatmul.msk.f32.gmra.mxu2 %vm531_vm1, %v6451_v2 }
 0x20a   : >> { %4207 = vmatmul.msk.f32.gmra.mxu3 %vm531_vm1, %v6460_v12 }
 0x211   : >> { %4193 = vmatmul.msk.f32.gmra.mxu2 %vm531_vm1, %v6465_v63 }
 0x212   : >> { %4208 = vmatmul.msk.f32.gmra.mxu3 %vm531_vm1, %v6474_v0 }
 0x219   : >> { %4194 = vmatmul.msk.f32.gmra.mxu2 %vm531_vm1, %v6479_v41 }
 0x21a   : >> { %4209 = vmatmul.msk.f32.gmra.mxu3 %vm531_vm1, %v6488_v59 }
 0x221   : >> { %4195 = vmatmul.msk.f32.gmra.mxu2 %vm531_vm1, %v6493_v47  ;;  %v2301_v47 = vadd.f32 %v2300_v52, %v5742_v17 }
 0x229   : >> { %4196 = vmatmul.msk.f32.gmra.mxu2 %vm531_vm1, %v6502_v58  ;;  %v2303_v58 = vpop.f32.mrf.mxu0 }
 0x231   : >> { %4197 = vmatmul.msk.f32.gmra.mxu2 %vm531_vm1, %v1687_v10  ;;  %v2374_v43 = vpop.f32.mrf.mxu1 }
 0x232   : >> { %v2401_v45 = vadd.f32 %v2374_v43, %v2295_v1  ;;  %v2304_v1 = vadd.f32 %v2303_v58, %v5768_v51  ;;  %v2306_v43 = vpop.f32.mrf.mxu0 }
 0x233   : >> { %v2307_v17 = vadd.f32 %v2306_v43, %v5764_v62 }
 0x234   : >> { %v4245_v23 = vmul.f32 -1.442695, %v2401_v45 }
 0x236   : >> { %4561 = vpow2.f32 %v4245_v23 }
 0x239   : >> { %v2377_v53 = vpop.f32.mrf.mxu1 }
 0x23a   : >> { %v2402_v42 = vadd.f32 %v2377_v53, %v2298_v4  ;;  %v2309_v58 = vpop.f32.mrf.mxu0 }
 0x23b   : >> { %v2310_v62 = vadd.f32 %v2309_v58, %v5766_v15 }
 0x23c   : >> { %v4246_v30 = vmul.f32 -1.442695, %v2402_v42  ;;  %v4562_v55 = vpop.eup %4561 }
 0x23d   : >> { %v2425_v34 = vadd.f32 1.0, %v4562_v55 }
 0x23e   : >> { %4563 = vpow2.f32 %v4246_v30 }
 0x23f   : >> { %4565 = vrcp.f32 %v2425_v34  ;;  %vm2436_vm11 = vweird.f32 %v2425_v34 }
 0x241   : >> { %v2380_v41 = vpop.f32.mrf.mxu1 }
 0x242   : >> { %v2403_v63 = vadd.f32 %v2380_v41, %v2301_v47  ;;  %v2312_v33 = vpop.f32.mrf.mxu0 }
 0x244   : >> { %v4247_v18 = vmul.f32 -1.442695, %v2403_v63  ;;  %v4564_v10 = vpop.eup %4563 }
 0x245   : >> { %v6514_v45 = vadd.f32 1.0, %v4564_v10  ;;  %v4566_v23 = vpop.eup %4565  ;;  %v1830_v30 = vpop.f32.mrf.mxu3 }
 0x246   : >> { %4567 = vpow2.f32 %v4247_v18  ;;  %v2432_v55 = vmul.f32 %v4566_v23, %v2425_v34  ;;  %vm2437_vm2 = vweird.f32 %v4566_v23 }
 0x247   : >> { %vm2438_vm14 = vmor %vm2436_vm11, %vm2437_vm2  ;;  %vm2451_vm3 = vweird.f32 %v6514_v45 }
 0x248   : >> { %v2433_v47 = vsub.f32 1.0, %v2432_v55 }
 0x249   : >> { %v2383_v14 = vpop.f32.mrf.mxu1 }
 0x24a   : >> { %v2404_v16 = vadd.f32 %v2383_v14, %v2304_v1  ;;  %v2434_v1 = vmul.f32 %v4566_v23, %v2433_v47  ;;  %v2442_v47 = vand.u32 2147483648, %v2425_v34 }
 0x24c   : >> { %v4248_v42 = vmul.f32 -1.442695, %v2404_v16  ;;  %v4568_v53 = vpop.eup %4567 }
 0x24d   : >> { %v6518_v52 = vadd.f32 1.0, %v4568_v53  ;;  %v6527_v43 = vpop.f32.mrf.mxu3 }
 0x24e   : >> { %4569 = vpow2.f32 %v4248_v42 }
 0x24f   : >> { %4571 = vrcp.f32 %v6514_v45  ;;  %vm2466_vm10 = vweird.f32 %v6518_v52 }
 0x250   : >> { %4573 = vrcp.f32 %v6518_v52 }
 0x251   : >> { %v2386_v4 = vpop.f32.mrf.mxu1 }
 0x252   : >> { %v2405_v51 = vadd.f32 %v2386_v4, %v2307_v17 }
 0x254   : >> { %v4570_v63 = vpop.eup %4569  ;;  %v4249_v41 = vmul.f32 -1.442695, %v2405_v51  ;;  %v2435_v51 = vadd.f32 %v4566_v23, %v2434_v1 }
 0x255   : >> { %v6520_v18 = vpop.eup %4571  ;;  %v6523_v10 = vadd.f32 1.0, %v4570_v63 }
 0x256   : >> { %4575 = vpow2.f32 %v4249_v41  ;;  %v2447_v14 = vmul.f32 %v6520_v18, %v6514_v45  ;;  %v6531_v53 = vpop.eup %4573  ;;  %v2439_v1 = vsel %vm2438_vm14, %v4566_v23, %v2435_v51  ;;  %vm2452_vm0 = vweird.f32 %v6520_v18 }
 0x257   : >> { %4577 = vrcp.f32 %v6523_v10  ;;  %vm6564_vm4 = vmor %vm2451_vm3, %vm2452_vm0  ;;  %vm2481_vm6 = vweird.f32 %v6523_v10  ;;  %vm2467_vm9 = vweird.f32 %v6531_v53 }
 0x258   : >> { %v2448_v63 = vsub.f32 1.0, %v2447_v14  ;;  %vm6597_vm13 = vmor %vm2466_vm10, %vm2467_vm9 }
 0x259   : >> { %v2389_v16 = vpop.f32.mrf.mxu1 }
 0x25a   : >> { %v2406_v42 = vadd.f32 %v2389_v16, %v2310_v62  ;;  %v2440_v62 = vand.u32 2147483647, %v2425_v34  ;;  %v2449_v14 = vmul.f32 %v6520_v18, %v2448_v63  ;;  %v6543_v16 = vpop.f32.mrf.mxu3 }
 0x25c   : >> { %v4576_v17 = vpop.eup %4575  ;;  %v4250_v55 = vmul.f32 -1.442695, %v2406_v42  ;;  %v1741_v4 = vpop.f32.mrf.mxu2  ;;  %v2462_v42 = vmul.f32 %v6531_v53, %v6518_v52  ;;  %vm2441_vm15 = vcmp.eq.f32.partialorder %v2440_v62, 8.507059e+37  ;;  %v2450_v23 = vadd.f32 %v6520_v18, %v2449_v14 }
 0x25d   : >> { %v6533_v41 = vpop.eup %4577  ;;  %v6535_v15 = vadd.f32 1.0, %v4576_v17  ;;  %v6537_v58 = vadd.f32 %v1830_v30, %v1741_v4  ;;  %v2443_v17 = vor.u32 1.1754944e-38, %v2442_v47  ;;  %v2315_v47 = vpop.f32.mrf.mxu0  ;;  %v2487_v14 = vand.u32 2147483648, %v6523_v10 }
 0x25e   : >> { %v2477_v2 = vmul.f32 %v6533_v41, %v6523_v10  ;;  %4579 = vpow2.f32 %v4250_v55  ;;  %v2313_v55 = vadd.f32 %v2312_v33, %v5813_v28  ;;  %v2463_v51 = vsub.f32 1.0, %v2462_v42 }
 0x25f   : >> { %4581 = vrcp.f32 %v6535_v15  ;;  %v2444_v34 = vsel %vm2441_vm15, %v2443_v17, %v2439_v1  ;;  %vm2482_vm5 = vweird.f32 %v6533_v41  ;;  %v2485_v17 = vand.u32 2147483647, %v6523_v10 }
 0x260   : >> { %v2478_v4 = vsub.f32 1.0, %v2477_v2  ;;  %v2464_v1 = vmul.f32 %v6531_v53, %v2463_v51  ;;  %vm6580_vm8 = vmor %vm2481_vm6, %vm2482_vm5  ;;  %vm2496_vm11 = vweird.f32 %v6535_v15 }
 0x261   : >> { %v2392_v30 = vpop.f32.mrf.mxu1  ;;  %vm2486_vm12 = vcmp.eq.f32.partialorder %v2485_v17, 8.507059e+37 }
 0x262   : >> { %v2539_v29 = vadd.f32 %v5805_v37, %v2392_v30  ;;  %v2457_v37 = vand.u32 2147483648, %v6514_v45  ;;  %v2479_v2 = vmul.f32 %v6533_v41, %v2478_v4  ;;  %v2465_v10 = vadd.f32 %v6531_v53, %v2464_v1 }
 0x264   : >> { %v4580_v46 = vpop.eup %4579  ;;  %v2542_v35 = vmul.f32 %v2539_v29, %v2444_v34  ;;  %v6549_v5 = vpop.f32.mrf.mxu2  ;;  %v2455_v29 = vand.u32 2147483647, %v6514_v45  ;;  %v2480_v45 = vadd.f32 %v6533_v41, %v2479_v2  ;;  %v2458_v30 = vor.u32 1.1754944e-38, %v2457_v37 }
 0x265   : >> { %v6553_v63 = vpop.eup %4581  ;;  %v6555_v59 = vadd.f32 1.0, %v4580_v46  ;;  %v2454_v46 = vsel %vm6564_vm4, %v6520_v18, %v2450_v23  ;;  %v2316_v34 = vadd.f32 %v2315_v47, %v5809_v9  ;;  %v2472_v9 = vand.u32 2147483648, %v6518_v52 }
 0x266   : >> { %v2492_v28 = vmul.f32 %v6553_v63, %v6535_v15  ;;  %v2545_v33 = vadd.f32 %v2542_v35, %v2313_v55  ;;  %v6573_v35 = vpop.f32.mrf.mxu3  ;;  %vm2456_vm7 = vcmp.eq.f32.partialorder %v2455_v29, 8.507059e+37  ;;  %v2484_v51 = vsel %vm6580_vm8, %v6533_v41, %v2480_v45 }
 0x267   : >> { %4583 = vrcp.f32 %v6555_v59  ;;  %v2459_v23 = vsel %vm2456_vm7, %v2458_v30, %v2454_v46  ;;  %vm2497_vm2 = vweird.f32 %v6553_v63  ;;  %v2469_v45 = vsel %vm6597_vm13, %v6531_v53, %v2465_v10  ;;  %v2318_v30 = vpop.f32.mrf.mxu0 }
 0x268   : >> { %v2493_v4 = vsub.f32 1.0, %v2492_v28  ;;  %4585 = vtanh.f32 %v2545_v33  ;;  %v2488_v28 = vor.u32 1.1754944e-38, %v2487_v14  ;;  %v2470_v33 = vand.u32 2147483647, %v6518_v52  ;;  %vm6612_vm15 = vmor %vm2496_vm11, %vm2497_vm2 }
 0x269   : >> { %v2395_v42 = vpop.f32.mrf.mxu1  ;;  %vm2511_vm4 = vweird.f32 %v6555_v59  ;;  %v1938_v53 = vadd.f32 %v5758_v11, %v6537_v58  ;;  %v7742_v11 = vld [vmem:[#allocation8_spill] sm:$0xff] }
 0x26a   : >> { %v2540_v55 = vadd.f32 %v5797_v61, %v2395_v42  ;;  %v2494_v41 = vmul.f32 %v6553_v63, %v2493_v4  ;;  %v2489_v62 = vsel %vm2486_vm12, %v2488_v28, %v2484_v51  ;;  %v2502_v42 = vand.u32 2147483648, %v6535_v15 }
 0x26b   : >> { %v2473_v4 = vor.u32 1.1754944e-38, %v2472_v9  ;;  %v2551_v18 = vsub.f32 1.0, %v2489_v62  ;;  %vm2471_vm14 = vcmp.eq.f32.partialorder %v2470_v33, 8.507059e+37  ;;  %v2319_v28 = vadd.f32 %v2318_v30, %v5790_v49 }
 0x26c   : >> { %v2543_v37 = vmul.f32 %v2540_v55, %v2459_v23  ;;  %v6588_v2 = vpop.f32.mrf.mxu2  ;;  %v2495_v52 = vadd.f32 %v6553_v63, %v2494_v41  ;;  %v2500_v55 = vand.u32 2147483647, %v6535_v15  ;;  %v2557_v15 = vmul.f32 %v2489_v62, %v6047_v40 }
 0x26d   : >> { %v4584_v61 = vpop.eup %4583  ;;  %v2474_v51 = vsel %vm2471_vm14, %v2473_v4, %v2469_v45  ;;  %v1837_v58 = vadd.f32 %v6543_v16, %v6588_v2  ;;  %v7744_v16 = vld [vmem:[#allocation7_spill] sm:$0xff] }
 0x26e   : >> { %v2507_v29 = vmul.f32 %v4584_v61, %v6555_v59  ;;  %v2546_v47 = vadd.f32 %v2543_v37, %v2316_v34  ;;  %v4586_v1 = vpop.eup %4585  ;;  %v1842_v14 = vpop.f32.mrf.mxu3  ;;  %v2499_v37 = vsel %vm6612_vm15, %v6553_v63, %v2495_v52  ;;  %vm2501_vm0 = vcmp.eq.f32.partialorder %v2500_v55, 8.507059e+37 }
 0x26f   : >> { %v2554_v10 = vmul.f32 %v4586_v1, %v2551_v18  ;;  %vm2512_vm3 = vweird.f32 %v4584_v61 }
 0x270   : >> { %v2508_v34 = vsub.f32 1.0, %v2507_v29  ;;  %4587 = vtanh.f32 %v2546_v47  ;;  %v2503_v29 = vor.u32 1.1754944e-38, %v2502_v42  ;;  %v2517_v47 = vand.u32 2147483648, %v6555_v59  ;;  %vm2513_vm5 = vmor %vm2511_vm4, %vm2512_vm3 }
 0x271   : >> { %v2398_v17 = vpop.f32.mrf.mxu1  ;;  %v6623_v41 = vadd.f32 %v2557_v15, %v2554_v10 }
 0x272   : >> { %v2541_v23 = vadd.f32 %v5794_v7, %v2398_v17  ;;  %v2515_v7 = vand.u32 2147483647, %v6555_v59  ;;  %v2509_v45 = vmul.f32 %v4584_v61, %v2508_v34  ;;  %v2504_v17 = vsel %vm2501_vm0, %v2503_v29, %v2499_v37  ;;  %v7741_v29 = vld [vmem:[#allocation9_spill] sm:$0xff] }
 0x273   : >> { %v2518_v40 = vor.u32 1.1754944e-38, %v2517_v47  ;;  %v2552_v62 = vsub.f32 1.0, %v2504_v17  ;;  %v2558_v4 = vmul.f32 %v2504_v17, %v6045_v19  ;;  %v1834_v59 = vadd.f32 %v6527_v43, %v6549_v5 }
 0x274   : >> { %v2544_v9 = vmul.f32 %v2541_v23, %v2474_v51  ;;  %v1750_v33 = vpop.f32.mrf.mxu2  ;;  %v2510_v1 = vadd.f32 %v4584_v61, %v2509_v45  ;;  %vm2516_vm6 = vcmp.eq.f32.partialorder %v2515_v7, 8.507059e+37  ;;  %v4210_v19 = vmul.f32 -1.442695, %v1938_v53 }
 0x275   : >> { %v1840_v51 = vadd.f32 %v6573_v35, %v1750_v33  ;;  %v7743_v33 = vld [vmem:[#allocation6_spill] sm:$0xff] }
 0x276   : >> { %v2547_v46 = vadd.f32 %v2544_v9, %v2319_v28  ;;  %v4588_v63 = vpop.eup %4587  ;;  %v1845_v49 = vpop.f32.mrf.mxu3  ;;  %v2514_v52 = vsel %vm2513_vm5, %v4584_v61, %v2510_v1  ;;  %v1939_v9 = vadd.f32 %v5756_v31, %v1834_v59  ;;  %v1940_v47 = vadd.f32 %v7743_v33, %v1837_v58 }
 0x277   : >> { %v2519_v42 = vsel %vm2516_vm6, %v2518_v40, %v2514_v52  ;;  %v2555_v30 = vmul.f32 %v4588_v63, %v2552_v62  ;;  %v1941_v7 = vadd.f32 %v7741_v29, %v1840_v51 }
 0x278   : >> { %4589 = vtanh.f32 %v2547_v46  ;;  %v2553_v18 = vsub.f32 1.0, %v2519_v42  ;;  %v2559_v61 = vmul.f32 %v2519_v42, %v6079_v8  ;;  %v4211_v8 = vmul.f32 -1.442695, %v1939_v9 }
 0x279   : >> { %v6627_v34 = vadd.f32 %v2558_v4, %v2555_v30  ;;  %4591 = vpow2.f32 %v4210_v19  ;;  %v4213_v35 = vmul.f32 -1.442695, %v1941_v7  ;;  %v4212_v63 = vmul.f32 -1.442695, %v1940_v47 }
 0x27a   : >> { %4593 = vpow2.f32 %v4211_v8 }
 0x27b   : >> { %4595 = vpow2.f32 %v4213_v35 }
 0x27c   : >> { %v1753_v55 = vpop.f32.mrf.mxu2 }
 0x27d   : >> { %v1843_v10 = vadd.f32 %v1842_v14, %v1753_v55 }
 0x27e   : >> { %v4590_v23 = vpop.eup %4589  ;;  %v1848_v15 = vpop.f32.mrf.mxu3 }
 0x27f   : >> { %v2556_v37 = vmul.f32 %v4590_v23, %v2553_v18  ;;  %v1942_v5 = vadd.f32 %v7742_v11, %v1843_v10  ;;  %v4592_v45 = vpop.eup %4591  ;;  %v7745_v18 = vld [vmem:[#allocation12_spill] sm:$0xff] }
 0x280   : >> { %v6654_v1 = vadd.f32 1.0, %v4592_v45 }
 0x281   : >> { %v6635_v28 = vadd.f32 %v2559_v61, %v2556_v37  ;;  %v4214_v31 = vmul.f32 -1.442695, %v1942_v5 }
 0x282   : >> { %vm1991_vm8 = vweird.f32 %v6654_v1 }
 0x283   : >> { %2725 = vmatpush.msrb.mxu3 %v6635_v28  ;;  %3269 = vmatpush.msrb.mxu1 %v6635_v28  ;;  %4597 = vpow2.f32 %v4214_v31 }
 0x284   : >> { %v1756_v43 = vpop.f32.mrf.mxu2  ;;  %4599 = vpow2.f32 %v4212_v63 }
 0x285   : >> { %2726 = vmatpush.msrb.mxu3 %v6627_v34  ;;  %3270 = vmatpush.msrb.mxu1 %v6627_v34  ;;  %v1846_v14 = vadd.f32 %v1845_v49, %v1756_v43  ;;  %v4594_v49 = vpop.eup %4593  ;;  %4601 = vrcp.f32 %v6654_v1  ;;  %v7747_v43 = vld [vmem:[#allocation11_spill] sm:$0xff] }
 0x286   : >> { %v1851_v46 = vpop.f32.mrf.mxu3  ;;  %v6661_v52 = vadd.f32 1.0, %v4594_v49  ;;  %v1995_v49 = vand.u32 2147483647, %v6654_v1 }
 0x287   : >> { %2727 = vmatpush.msrb.mxu3 %v6623_v41  ;;  %3271 = vmatpush.msrb.mxu1 %v6623_v41  ;;  %v1943_v2 = vadd.f32 %v7744_v16, %v1846_v14 }
 0x288   : >> { %4301 = vmatmul.msk.f32.vlgmr.msrb.gmra.mxu1 %vm531_vm1, %v6122_v25  ;;  %4263 = vmatmul.msk.f32.vlgmr.msrb.gmra.mxu3 %vm531_vm1, %v6272_v60  ;;  %v4596_v25 = vpop.eup %4595  ;;  %vm6729_vm9 = vcmp.eq.f32.partialorder %v1995_v49, 8.507059e+37  ;;  %vm2006_vm12 = vweird.f32 %v6661_v52 }
 0x289   : >> { %v4215_v40 = vmul.f32 -1.442695, %v1943_v2  ;;  %v4598_v62 = vpop.eup %4597  ;;  %v6663_v42 = vadd.f32 1.0, %v4596_v25 }
 0x28a   : >> { %v6665_v55 = vadd.f32 1.0, %v4598_v62  ;;  %v4600_v59 = vpop.eup %4599  ;;  %v1997_v62 = vand.u32 2147483648, %v6654_v1 }
 0x28b   : >> { %4603 = vpow2.f32 %v4215_v40  ;;  %v6675_v51 = vpop.eup %4601  ;;  %vm2036_vm15 = vweird.f32 %v6663_v42 }
 0x28c   : >> { %v1759_v17 = vpop.f32.mrf.mxu2  ;;  %4605 = vrcp.f32 %v6661_v52  ;;  %v1987_v19 = vmul.f32 %v6675_v51, %v6654_v1  ;;  %vm1992_vm7 = vweird.f32 %v6675_v51  ;;  %v1998_v1 = vor.u32 1.1754944e-38, %v1997_v62 }
 0x28d   : >> { %v1849_v60 = vadd.f32 %v1848_v15, %v1759_v17  ;;  %4607 = vrcp.f32 %v6663_v42  ;;  %v6678_v15 = vadd.f32 1.0, %v4600_v59  ;;  %vm6741_vm10 = vmor %vm1991_vm8, %vm1992_vm7  ;;  %vm2051_vm4 = vweird.f32 %v6665_v55 }
 0x28e   : >> { %v1854_v4 = vpop.f32.mrf.mxu3  ;;  %4609 = vrcp.f32 %v6665_v55  ;;  %v1988_v58 = vsub.f32 1.0, %v1987_v19  ;;  %v2055_v62 = vand.u32 2147483647, %v6665_v55 }
 0x290   : >> { %4302 = vmatmul.msk.f32.gmra.mxu1 %vm531_vm1, %v6192_v3  ;;  %4264 = vmatmul.msk.f32.gmra.mxu3 %vm531_vm1, %v6320_v48  ;;  %v1944_v3 = vadd.f32 %v7745_v18, %v1849_v60  ;;  %v7746_v48 = vld [vmem:[#allocation10_spill] sm:$0xff]  ;;  %vm2056_vm8 = vcmp.eq.f32.partialorder %v2055_v62, 8.507059e+37 }
 0x291   : >> { %v4604_v10 = vpop.eup %4603 }
 0x292   : >> { %v4216_v37 = vmul.f32 -1.442695, %v1944_v3  ;;  %v6682_v29 = vpop.eup %4605 }
 0x293   : >> { %v6686_v7 = vpop.eup %4607  ;;  %v2002_v35 = vmul.f32 %v6682_v29, %v6661_v52  ;;  %vm2007_vm2 = vweird.f32 %v6682_v29 }
 0x294   : >> { %v1762_v30 = vpop.f32.mrf.mxu2  ;;  %v6688_v5 = vpop.eup %4609  ;;  %v2032_v14 = vmul.f32 %v6686_v7, %v6663_v42  ;;  %vm2037_vm11 = vweird.f32 %v6686_v7  ;;  %vm6768_vm0 = vmor %vm2006_vm12, %vm2007_vm2 }
 0x295   : >> { %v1852_v23 = vadd.f32 %v1851_v46, %v1762_v30  ;;  %v2047_v47 = vmul.f32 %v6688_v5, %v6665_v55  ;;  %v2003_v45 = vsub.f32 1.0, %v2002_v35  ;;  %v2010_v30 = vand.u32 2147483647, %v6661_v52  ;;  %vm6776_vm3 = vmor %vm2036_vm15, %vm2037_vm11 }
 0x296   : >> { %v1857_v11 = vpop.f32.mrf.mxu3  ;;  %vm2052_vm14 = vweird.f32 %v6688_v5 }
 0x297   : >> { %v1945_v53 = vadd.f32 %v7746_v48, %v1852_v23  ;;  %v2048_v40 = vsub.f32 1.0, %v2047_v47  ;;  %v2004_v48 = vmul.f32 %v6682_v29, %v2003_v45  ;;  %vm6746_vm13 = vcmp.eq.f32.partialorder %v2010_v30, 8.507059e+37  ;;  %vm6790_vm5 = vmor %vm2051_vm4, %vm2052_vm14 }
 0x298   : >> { %4303 = vmatmul.msk.f32.gmra.mxu1 %vm531_vm1, %v6245_v24  ;;  %4265 = vmatmul.msk.f32.gmra.mxu3 %vm531_vm1, %v6335_v20  ;;  %v6684_v24 = vadd.f32 1.0, %v4604_v10  ;;  %v2057_v45 = vand.u32 2147483648, %v6665_v55  ;;  %v2027_v55 = vand.u32 2147483648, %v6678_v15 }
 0x299   : >> { %v4217_v61 = vmul.f32 -1.442695, %v1945_v53  ;;  %v2049_v19 = vmul.f32 %v6688_v5, %v2048_v40  ;;  %v2005_v35 = vadd.f32 %v6682_v29, %v2004_v48  ;;  %v2040_v40 = vand.u32 2147483647, %v6663_v42 }
 0x29a   : >> { %v2028_v49 = vor.u32 1.1754944e-38, %v2027_v55 }
 0x29b   : >> { %4611 = vpow2.f32 %v4217_v61  ;;  %vm2041_vm7 = vcmp.eq.f32.partialorder %v2040_v40, 8.507059e+37 }
 0x29c   : >> { %v1765_v9 = vpop.f32.mrf.mxu2  ;;  %4613 = vpow2.f32 %v4216_v37  ;;  %v7748_v37 = vld [vmem:[#allocation15_spill] sm:$0xff] }
 0x29d   : >> { %v1855_v20 = vadd.f32 %v1854_v4, %v1765_v9  ;;  %4615 = vrcp.f32 %v6678_v15  ;;  %v2012_v4 = vand.u32 2147483648, %v6661_v52 }
 0x29e   : >> { %4617 = vrcp.f32 %v6684_v24  ;;  %v1860_v23 = vpop.f32.mrf.mxu3 }
 0x29f   : >> { %v1946_v8 = vadd.f32 %v7747_v43, %v1855_v20 }
 0x2a0   : >> { %4304 = vmatmul.msk.f32.gmra.mxu1 %vm531_vm1, %v6298_v39  ;;  %4266 = vmatmul.msk.f32.gmra.mxu3 %vm531_vm1, %v6353_v56  ;;  %v1989_v39 = vmul.f32 %v6675_v51, %v1988_v58  ;;  %v2033_v56 = vsub.f32 1.0, %v2032_v14 }
 0x2a1   : >> { %v4612_v31 = vpop.eup %4611  ;;  %v4218_v33 = vmul.f32 -1.442695, %v1946_v8 }
 0x2a2   : >> { %v4614_v46 = vpop.eup %4613  ;;  %v6703_v16 = vadd.f32 1.0, %v4612_v31  ;;  %v1990_v3 = vadd.f32 %v6675_v51, %v1989_v39  ;;  %v2034_v59 = vmul.f32 %v6686_v7, %v2033_v56 }
 0x2a3   : >> { %4619 = vpow2.f32 %v4218_v33  ;;  %v6706_v17 = vpop.eup %4615  ;;  %v6709_v25 = vadd.f32 1.0, %v4614_v46  ;;  %v2042_v46 = vand.u32 2147483648, %v6663_v42  ;;  %v2009_v42 = vsel %vm6768_vm0, %v6682_v29, %v2005_v35 }
 0x2a4   : >> { %v1768_v2 = vpop.f32.mrf.mxu2  ;;  %v6711_v60 = vpop.eup %4617  ;;  %v2017_v18 = vmul.f32 %v6706_v17, %v6678_v15  ;;  %4621 = vrcp.f32 %v6703_v16  ;;  %v1994_v8 = vsel %vm6741_vm10, %v6675_v51, %v1990_v3  ;;  %v2035_v47 = vadd.f32 %v6686_v7, %v2034_v59 }
 0x2a5   : >> { %v1858_v63 = vadd.f32 %v1857_v11, %v1768_v2  ;;  %4623 = vrcp.f32 %v6709_v25  ;;  %v2013_v11 = vor.u32 1.1754944e-38, %v2012_v4  ;;  %v2050_v51 = vadd.f32 %v6688_v5, %v2049_v19  ;;  %v7755_v2 = vld [vmem:[#allocation13_spill] sm:$0xff] }
 0x2a6   : >> { %v2018_v43 = vsub.f32 1.0, %v2017_v18  ;;  %v2039_v18 = vsel %vm6776_vm3, %v6686_v7, %v2035_v47  ;;  %v1863_v29 = vpop.f32.mrf.mxu3  ;;  %v2043_v48 = vor.u32 1.1754944e-38, %v2042_v46  ;;  %vm2022_vm6 = vweird.f32 %v6706_v17 }
 0x2a7   : >> { %v1947_v61 = vadd.f32 %v7748_v37, %v1858_v63  ;;  %v2054_v3 = vsel %vm6790_vm5, %v6688_v5, %v2050_v51  ;;  %vm2067_vm10 = vweird.f32 %v6711_v60  ;;  %v2070_v46 = vand.u32 2147483647, %v6684_v24 }
 0x2a8   : >> { %4305 = vmatmul.msk.f32.gmra.mxu1 %vm531_vm1, %v6328_v13  ;;  %4267 = vmatmul.msk.f32.gmra.mxu3 %vm531_vm1, %v6375_v54  ;;  %v2062_v13 = vmul.f32 %v6711_v60, %v6684_v24  ;;  %v2019_v52 = vmul.f32 %v6706_v17, %v2018_v43  ;;  %v2044_v5 = vsel %vm2041_vm7, %v2043_v48, %v2039_v18  ;;  %v2102_v30 = vand.u32 2147483648, %v6703_v16 }
 0x2a9   : >> { %v4620_v53 = vpop.eup %4619  ;;  %4625 = vtanh.f32 %v1947_v61  ;;  %v2014_v61 = vsel %vm6746_vm13, %v2013_v11, %v2009_v42  ;;  %v7762_v11 = vld [vmem:[#allocation14_spill] sm:$0xff]  ;;  %vm2021_vm13 = vweird.f32 %v6678_v15  ;;  %vm2071_vm11 = vcmp.eq.f32.partialorder %v2070_v46, 8.507059e+37 }
 0x2aa   : >> { %v6737_v9 = vadd.f32 1.0, %v4620_v53  ;;  %v6757_v14 = vpop.eup %4621  ;;  %v2063_v33 = vsub.f32 1.0, %v2062_v13  ;;  %v2058_v53 = vor.u32 1.1754944e-38, %v2057_v45  ;;  %v2020_v10 = vadd.f32 %v6706_v17, %v2019_v52  ;;  %vm2023_vm2 = vmor %vm2021_vm13, %vm2022_vm6 }
 0x2ab   : >> { %v6772_v63 = vpop.eup %4623  ;;  %vm2097_vm15 = vweird.f32 %v6757_v14  ;;  %vm2096_vm3 = vweird.f32 %v6703_v16  ;;  %v2100_v42 = vand.u32 2147483647, %v6703_v16  ;;  %v2087_v18 = vand.u32 2147483648, %v6709_v25 }
 0x2ac   : >> { %v1771_v58 = vpop.f32.mrf.mxu2  ;;  %4627 = vrcp.f32 %v6737_v9  ;;  %v2064_v4 = vmul.f32 %v6711_v60, %v2063_v33  ;;  %v2077_v59 = vmul.f32 %v6772_v63, %v6709_v25  ;;  %v2059_v19 = vsel %vm2056_vm8, %v2058_v53, %v2054_v3  ;;  %vm6864_vm4 = vmor %vm2096_vm3, %vm2097_vm15 }
 0x2ad   : >> { %v1861_v31 = vadd.f32 %v1860_v23, %v1771_v58  ;;  %v2072_v58 = vand.u32 2147483648, %v6684_v24  ;;  %v2124_v33 = vmul.f32 %v2044_v5, %v6249_v32  ;;  %v2125_v47 = vmul.f32 %v2059_v19, %v6247_v26 }
 0x2ae   : >> { %v2065_v43 = vadd.f32 %v6711_v60, %v2064_v4  ;;  %v2025_v32 = vand.u32 2147483647, %v6678_v15  ;;  %v2024_v56 = vsel %vm2023_vm2, %v6706_v17, %v2020_v10  ;;  %vm2082_vm0 = vweird.f32 %v6772_v63 }
 0x2af   : >> { %v1948_v39 = vadd.f32 %v7755_v2, %v1861_v31  ;;  %v4626_v23 = vpop.eup %4625  ;;  %v2078_v31 = vsub.f32 1.0, %v2077_v59  ;;  %vm2081_vm5 = vweird.f32 %v6709_v25  ;;  %vm2101_vm8 = vcmp.eq.f32.partialorder %v2100_v42, 8.507059e+37 }
 0x2b0   : >> { %4306 = vmatmul.msk.f32.gmra.mxu1 %vm531_vm1, %v6346_v27  ;;  %4268 = vmatmul.msk.f32.gmra.mxu3 %vm531_vm1, %v6397_v57  ;;  %v2092_v27 = vmul.f32 %v6757_v14, %v6703_v16  ;;  %v1999_v57 = vsel %vm6729_vm9, %v1998_v1, %v1994_v8  ;;  %vm2066_vm9 = vweird.f32 %v6684_v24  ;;  %vm2026_vm14 = vcmp.eq.f32.partialorder %v2025_v32, 8.507059e+37  ;;  %vm6880_vm6 = vmor %vm2081_vm5, %vm2082_vm0 }
 0x2b1   : >> { %4629 = vtanh.f32 %v1948_v39  ;;  %v2127_v1 = vmul.f32 %v4626_v23, %v1999_v57  ;;  %vm6833_vm12 = vmor %vm2066_vm9, %vm2067_vm10  ;;  %v2079_v15 = vmul.f32 %v6772_v63, %v2078_v31  ;;  %v2029_v52 = vsel %vm2026_vm14, %v2028_v49, %v2024_v56  ;;  %v3193_v56 = vpop.f32.mrf.mxu0  ;;  %v7779_v23 = vld [vmem:[#allocation17_spill] sm:$0xff] }
 0x2b2   : >> { %v6812_v37 = vpop.eup %4627  ;;  %v2093_v54 = vsub.f32 1.0, %v2092_v27  ;;  %v2117_v48 = vand.u32 2147483648, %v6737_v9  ;;  %v2088_v59 = vor.u32 1.1754944e-38, %v2087_v18  ;;  %vm2111_vm9 = vweird.f32 %v6737_v9 }
 0x2b3   : >> { %v2107_v20 = vmul.f32 %v6812_v37, %v6737_v9  ;;  %v6840_v2 = vadd.f32 %v2127_v1, %v2124_v33  ;;  %v2080_v55 = vadd.f32 %v6772_v63, %v2079_v15  ;;  %vm2112_vm7 = vweird.f32 %v6812_v37  ;;  %v7773_v15 = vld [vmem:[#allocation40_spill] sm:$0xff] }
 0x2b4   : >> { %v1774_v7 = vpop.f32.mrf.mxu2  ;;  %v2094_v26 = vmul.f32 %v6757_v14, %v2093_v54 }
 0x2b5   : >> { %v1864_v13 = vadd.f32 %v1863_v29, %v1774_v7  ;;  %v2108_v24 = vsub.f32 1.0, %v2107_v20  ;;  %v2155_v20 = vpop.permute.xlu0 %2154 }
 0x2b6   : >> { %v2095_v62 = vadd.f32 %v6757_v14, %v2094_v26 }
 0x2b7   : >> { %v4630_v8 = vpop.eup %4629  ;;  %v1949_v35 = vadd.f32 %v7762_v11, %v1864_v13  ;;  %v2150_v13 = vpop.permute.xlu2 %2149 }
 0x2b8   : >> { %v2128_v51 = vmul.f32 %v4630_v8, %v2014_v61  ;;  %4307 = vmatmul.msk.f32.gmra.mxu1 %vm531_vm1, %v6365_v6  ;;  %4269 = vmatmul.msk.f32.gmra.mxu3 %vm531_vm1, %v6418_v38  ;;  %v2069_v6 = vsel %vm6833_vm12, %v6711_v60, %v2065_v43  ;;  %v2073_v38 = vor.u32 1.1754944e-38, %v2072_v58  ;;  %v2109_v60 = vmul.f32 %v6812_v37, %v2108_v24  ;;  %vm2113_vm12 = vmor %vm2111_vm9, %vm2112_vm7  ;;  %v2145_v43 = vpop.permute.xlu1 %2144  ;;  %v7771_v24 = vld [vmem:[#allocation38_spill] sm:$0xff] }
 0x2b9   : >> { %4631 = vtanh.f32 %v1949_v35  ;;  %v2099_v16 = vsel %vm6864_vm4, %v6757_v14, %v2095_v62  ;;  %v2084_v14 = vsel %vm6880_vm6, %v6772_v63, %v2080_v55  ;;  %v2115_v61 = vand.u32 2147483647, %v6737_v9  ;;  %v3196_v49 = vpop.f32.mrf.mxu0  ;;  %v7775_v62 = vld [vmem:[#allocation19_spill] sm:$0xff]  ;;  %v7776_v55 = vld [vmem:[#allocation42_spill] sm:$0xff] }
 0x2ba   : >> { %v6842_v39 = vadd.f32 %v2128_v51, %v2125_v47  ;;  %v2074_v40 = vsel %vm2071_vm11, %v2073_v38, %v2069_v6  ;;  %v2118_v63 = vor.u32 1.1754944e-38, %v2117_v48  ;;  %v7769_v6 = vld [vmem:[#allocation44_spill] sm:$0xff]  ;;  %v7770_v38 = vld [vmem:[#allocation37_spill] sm:$0xff] }
 0x2bb   : >> { %v2126_v27 = vmul.f32 %v2074_v40, %v6293_v21  ;;  %v2085_v21 = vand.u32 2147483647, %v6709_v25  ;;  %vm2116_vm13 = vcmp.eq.f32.partialorder %v2115_v61, 8.507059e+37  ;;  %v7774_v40 = vld [vmem:[#allocation41_spill] sm:$0xff] }
 0x2bc   : >> { %4633 = vtanh.f32 %v6842_v39 }
 0x2bd   : >> { %4635 = vtanh.f32 %v6840_v2  ;;  %vm2086_vm10 = vcmp.eq.f32.partialorder %v2085_v21, 8.507059e+37  ;;  %v7778_v21 = vld [vmem:[#allocation43_spill] sm:$0xff] }
 0x2be   : >> { %v2089_v10 = vsel %vm2086_vm10, %v2088_v59, %v2084_v14  ;;  %v7780_v59 = vld [vmem:[#allocation45_spill] sm:$0xff] }
 0x2bf   : >> { %v4632_v17 = vpop.eup %4631 }
 0x2c0   : >> { %v2129_v4 = vmul.f32 %v4632_v17, %v2029_v52  ;;  %4308 = vmatmul.msk.f32.gmra.mxu1 %vm531_vm1, %v6390_v44  ;;  %4270 = vmatmul.msk.f32.gmra.mxu3 %vm531_vm1, %v6432_v50  ;;  %v2103_v44 = vor.u32 1.1754944e-38, %v2102_v30  ;;  %v2110_v50 = vadd.f32 %v6812_v37, %v2109_v60  ;;  %v2172_v51 = vpop.permute.xlu1 %2171  ;;  %v3194_v52 = vadd.f32 %v3193_v56, %v7775_v62 }
 0x2c1   : >> { %v2174_v45 = vperm.slane %v2172_v51, 0  ;;  %v3199_v60 = vpop.f32.mrf.mxu0 }
 0x2c2   : >> { %v4634_v3 = vpop.eup %4633  ;;  %v6876_v29 = vadd.f32 %v2129_v4, %v2126_v27  ;;  %v2104_v53 = vsel %vm2101_vm8, %v2103_v44, %v2099_v16  ;;  %v2114_v5 = vsel %vm2113_vm12, %v6812_v37, %v2110_v50  ;;  %v7777_v27 = vld [vmem:[#allocation16_spill] sm:$0xff]  ;;  %v3200_v50 = vadd.f32 %v3199_v60, %v7779_v23 }
 0x2c3   : >> { %v4636_v25 = vpop.eup %4635  ;;  %v2137_v7 = vmul.f32 %v4634_v3, %v2104_v53  ;;  %v2119_v9 = vsel %vm2116_vm13, %v2118_v63, %v2114_v5  ;;  %v3197_v4 = vadd.f32 %v3196_v49, %v7777_v27 }
 0x2c4   : >> { %4637 = vtanh.f32 %v6876_v29  ;;  %v2136_v19 = vmul.f32 %v4636_v25, %v2089_v10 }
 0x2c5   : >> { %v2158_v54 = vmul.f32 %v2150_v13, %v2137_v7 }
 0x2c6   : >> { %v2157_v58 = vmul.f32 %v2145_v43, %v2136_v19 }
 0x2c8   : >> { %4309 = vmatmul.msk.f32.gmra.mxu1 %vm531_vm1, %v6411_v36  ;;  %4271 = vmatmul.msk.f32.gmra.mxu3 %vm531_vm1, %v6446_v22  ;;  %v2160_v37 = vadd.f32 %v2158_v54, %v2157_v58  ;;  %v4765_v22 = vld [vmem:[%s7618_s6] sm:$0xff] }
 0x2c9   : >> { %v3202_v3 = vpop.f32.mrf.mxu0 }
 0x2ca   : >> { %v4638_v1 = vpop.eup %4637 }
 0x2cb   : >> { %v2138_v8 = vmul.f32 %v4638_v1, %v2119_v9  ;;  %v7782_v9 = vld [vmem:[#allocation46_spill] sm:$0xff] }
 0x2cd   : >> { %v2159_v11 = vmul.f32 %v2155_v20, %v2138_v8  ;;  %2636 = vmatpush.msrb.mxu2 %v2138_v8  ;;  %v7783_v8 = vld [vmem:[#allocation25_spill] sm:$0xff] }
 0x2cf   : >> { %2637 = vmatpush.msrb.mxu2 %v2137_v7  ;;  %v2161_v35 = vadd.f32 %v2160_v37, %v2159_v11  ;;  %v7781_v7 = vld [vmem:[#allocation27_spill] sm:$0xff] }
 0x2d0   : >> { %4272 = vmatmul.msk.f32.gmra.mxu3 %vm531_vm1, %v6460_v12  ;;  %v4766_v12 = vld [vmem:[%s7618_s6 + $0x8] sm:$0xff]  ;;  %v3203_v10 = vadd.f32 %v3202_v3, %v7781_v7 }
 0x2d1   : >> { %v2162_v36 = vrot.slane %v2161_v35, 4  ;;  %2638 = vmatpush.msrb.mxu2 %v2136_v19  ;;  %v3205_v5 = vpop.f32.mrf.mxu0 }
 0x2d2   : >> { %4251 = vmatmul.msk.f32.vlgmr.msrb.gmra.mxu2 %vm531_vm1, %v4765_v22  ;;  %v3206_v58 = vadd.f32 %v3205_v5, %v7783_v8 }
 0x2d3   : >> { %v2163_v31 = vadd.f32 %v2162_v36, %v2161_v35 }
 0x2d5   : >> { %v2164_v33 = vrot.slane %v2163_v31, 2 }
 0x2d7   : >> { %v2165_v47 = vadd.f32 %v2164_v33, %v2163_v31 }
 0x2d8   : >> { %4273 = vmatmul.msk.f32.gmra.mxu3 %vm531_vm1, %v6474_v0  ;;  %v7772_v0 = vld [vmem:[#allocation39_spill] sm:$0xff] }
 0x2d9   : >> { %v2166_v46 = vrot.slane %v2165_v47, 1  ;;  %v3208_v36 = vpop.f32.mrf.mxu0 }
 0x2da   : >> { %4252 = vmatmul.msk.f32.gmra.mxu2 %vm531_vm1, %v4766_v12  ;;  %v7784_v12 = vld [vmem:[#allocation26_spill] sm:$0xff] }
 0x2db   : >> { %v2167_v32 = vadd.f32 %v2166_v46, %v2165_v47  ;;  %v4767_v46 = vld [vmem:[%s7618_s6 + $0x58] sm:$0xff] }
 0x2dd   : >> { %v2175_v26 = vadd.f32 %v2174_v45, %v2167_v32  ;;  %v3209_v45 = vadd.f32 %v3208_v36, %v7784_v12 }
 0x2df   : >> { %4220 = vst [vmem:[%s6368_s26 + $0x1] sm:$0x1] %v2175_v26 }
 0x2e0   : >> { %4274 = vmatmul.msk.f32.gmra.mxu3 %vm531_vm1, %v7769_v6 }
 0x2e1   : >> { %v3211_v62 = vpop.f32.mrf.mxu0 }
 0x2e2   : >> { %4253 = vmatmul.msk.f32.gmra.mxu2 %vm531_vm1, %v7770_v38 }
 0x2ea   : >> { %4254 = vmatmul.msk.f32.gmra.mxu2 %vm531_vm1, %v7771_v24 }
 0x2f2   : >> { %4255 = vmatmul.msk.f32.gmra.mxu2 %vm531_vm1, %v7772_v0 }
 0x2fa   : >> { %4256 = vmatmul.msk.f32.gmra.mxu2 %vm531_vm1, %v7773_v15 }
 0x302   : >> { %4257 = vmatmul.msk.f32.gmra.mxu2 %vm531_vm1, %v7774_v40 }
 0x305   : >> { %v3273_v30 = vpop.f32.mrf.mxu1 }
 0x306   : >> { %v3300_v17 = vadd.f32 %v3273_v30, %v3194_v52 }
 0x308   : >> { %v4310_v42 = vmul.f32 -1.442695, %v3300_v17 }
 0x30a   : >> { %4258 = vmatmul.msk.f32.gmra.mxu2 %vm531_vm1, %v7776_v55  ;;  %4639 = vpow2.f32 %v4310_v42 }
 0x30d   : >> { %v3276_v57 = vpop.f32.mrf.mxu1 }
 0x30e   : >> { %v3301_v18 = vadd.f32 %v3276_v57, %v3197_v4 }
 0x310   : >> { %v4311_v16 = vmul.f32 -1.442695, %v3301_v18  ;;  %v4640_v44 = vpop.eup %4639 }
 0x311   : >> { %v3324_v48 = vadd.f32 1.0, %v4640_v44 }
 0x312   : >> { %4259 = vmatmul.msk.f32.gmra.mxu2 %vm531_vm1, %v7778_v21  ;;  %4641 = vpow2.f32 %v4311_v16  ;;  %v7785_v16 = vld [vmem:[#allocation4_spill] sm:$0xff] }
 0x313   : >> { %4643 = vrcp.f32 %v3324_v48  ;;  %v3341_v30 = vand.u32 2147483648, %v3324_v48  ;;  %vm3335_vm11 = vweird.f32 %v3324_v48  ;;  %v3339_v60 = vand.u32 2147483647, %v3324_v48 }
 0x315   : >> { %v3279_v14 = vpop.f32.mrf.mxu1  ;;  %v3342_v57 = vor.u32 1.1754944e-38, %v3341_v30  ;;  %vm3340_vm15 = vcmp.eq.f32.partialorder %v3339_v60, 8.507059e+37 }
 0x316   : >> { %v3302_v25 = vadd.f32 %v3279_v14, %v3200_v50  ;;  %v7786_v50 = vld [vmem:[#allocation3_spill] sm:$0xff] }
 0x317   : >> { %v3212_v14 = vadd.f32 %v3211_v62, %v7786_v50  ;;  %v7796_v50 = vld [vmem:[#allocation34_spill] sm:$0xff] }
 0x318   : >> { %v4312_v53 = vmul.f32 -1.442695, %v3302_v25  ;;  %v4642_v61 = vpop.eup %4641 }
 0x319   : >> { %v6933_v63 = vadd.f32 1.0, %v4642_v61  ;;  %v4644_v1 = vpop.eup %4643 }
 0x31a   : >> { %4260 = vmatmul.msk.f32.gmra.mxu2 %vm531_vm1, %v7780_v59  ;;  %4645 = vpow2.f32 %v4312_v53  ;;  %v3331_v20 = vmul.f32 %v4644_v1, %v3324_v48  ;;  %vm3336_vm2 = vweird.f32 %v4644_v1 }
 0x31b   : >> { %vm3337_vm14 = vmor %vm3335_vm11, %vm3336_vm2  ;;  %vm3350_vm3 = vweird.f32 %v6933_v63  ;;  %v3356_v61 = vand.u32 2147483648, %v6933_v63  ;;  %v3354_v5 = vand.u32 2147483647, %v6933_v63 }
 0x31c   : >> { %v3332_v33 = vsub.f32 1.0, %v3331_v20 }
 0x31d   : >> { %v3282_v19 = vpop.f32.mrf.mxu1  ;;  %vm3355_vm7 = vcmp.eq.f32.partialorder %v3354_v5, 8.507059e+37 }
 0x31e   : >> { %v3303_v13 = vadd.f32 %v3282_v19, %v3203_v10  ;;  %v3333_v32 = vmul.f32 %v4644_v1, %v3332_v33 }
 0x320   : >> { %v4313_v54 = vmul.f32 -1.442695, %v3303_v13  ;;  %v4646_v43 = vpop.eup %4645  ;;  %v3334_v15 = vadd.f32 %v4644_v1, %v3333_v32  ;;  %v3214_v13 = vpop.f32.mrf.mxu0 }
 0x321   : >> { %v6939_v11 = vadd.f32 1.0, %v4646_v43 }
 0x322   : >> { %4647 = vpow2.f32 %v4313_v54  ;;  %4261 = vmatmul.msk.f32.gmra.mxu2 %vm531_vm1, %v7782_v9  ;;  %v3338_v55 = vsel %vm3337_vm14, %v4644_v1, %v3334_v15 }
 0x323   : >> { %4649 = vrcp.f32 %v6933_v63  ;;  %v3343_v3 = vsel %vm3340_vm15, %v3342_v57, %v3338_v55  ;;  %vm3365_vm10 = vweird.f32 %v6939_v11 }
 0x324   : >> { %4651 = vrcp.f32 %v6939_v11 }
 0x325   : >> { %v3285_v37 = vpop.f32.mrf.mxu1 }
 0x326   : >> { %v3304_v35 = vadd.f32 %v3285_v37, %v3206_v58  ;;  %v3357_v58 = vor.u32 1.1754944e-38, %v3356_v61 }
 0x328   : >> { %v4648_v22 = vpop.eup %4647  ;;  %v4314_v31 = vmul.f32 -1.442695, %v3304_v35  ;;  %v7789_v35 = vld [vmem:[#allocation36_spill] sm:$0xff]  ;;  %v3217_v55 = vpop.f32.mrf.mxu0 }
 0x329   : >> { %v6941_v47 = vpop.eup %4649  ;;  %v6944_v51 = vadd.f32 1.0, %v4648_v22 }
 0x32a   : >> { %4653 = vpow2.f32 %v4314_v31  ;;  %4262 = vmatmul.msk.f32.gmra.mxu2 %vm531_vm1, %v4767_v46  ;;  %v3346_v26 = vmul.f32 %v6941_v47, %v6933_v63  ;;  %v6954_v24 = vpop.eup %4651  ;;  %vm3351_vm0 = vweird.f32 %v6941_v47  ;;  %v7792_v46 = vld [vmem:[#allocation5_spill] sm:$0xff] }
 0x32b   : >> { %4655 = vrcp.f32 %v6944_v51  ;;  %v3361_v42 = vmul.f32 %v6954_v24, %v6939_v11  ;;  %vm6981_vm4 = vmor %vm3350_vm3, %vm3351_vm0  ;;  %v3386_v63 = vand.u32 2147483648, %v6944_v51  ;;  %vm3380_vm6 = vweird.f32 %v6944_v51 }
 0x32c   : >> { %v3347_v49 = vsub.f32 1.0, %v3346_v26  ;;  %v3384_v20 = vand.u32 2147483647, %v6944_v51  ;;  %vm3366_vm9 = vweird.f32 %v6954_v24  ;;  %v3369_v26 = vand.u32 2147483647, %v6939_v11 }
 0x32d   : >> { %v3288_v6 = vpop.f32.mrf.mxu1  ;;  %v3362_v44 = vsub.f32 1.0, %v3361_v42  ;;  %vm7010_vm2 = vmor %vm3365_vm10, %vm3366_vm9 }
 0x32e   : >> { %v3305_v38 = vadd.f32 %v3288_v6, %v3209_v45  ;;  %v3348_v27 = vmul.f32 %v6941_v47, %v3347_v49  ;;  %v3387_v45 = vor.u32 1.1754944e-38, %v3386_v63  ;;  %v3371_v6 = vand.u32 2147483648, %v6939_v11 }
 0x32f   : >> { %v3363_v1 = vmul.f32 %v6954_v24, %v3362_v44  ;;  %vm3385_vm13 = vcmp.eq.f32.partialorder %v3384_v20, 8.507059e+37  ;;  %vm3370_vm15 = vcmp.eq.f32.partialorder %v3369_v26, 8.507059e+37 }
 0x330   : >> { %v4654_v0 = vpop.eup %4653  ;;  %v4315_v56 = vmul.f32 -1.442695, %v3305_v38  ;;  %v3349_v48 = vadd.f32 %v6941_v47, %v3348_v27 }
 0x331   : >> { %v6956_v40 = vpop.eup %4655  ;;  %v6958_v52 = vadd.f32 1.0, %v4654_v0  ;;  %v3364_v33 = vadd.f32 %v6954_v24, %v3363_v1 }
 0x332   : >> { %v3376_v17 = vmul.f32 %v6956_v40, %v6944_v51  ;;  %4657 = vpow2.f32 %v4315_v56  ;;  %vm3381_vm5 = vweird.f32 %v6956_v40  ;;  %v3353_v43 = vsel %vm6981_vm4, %v6941_v47, %v3349_v48  ;;  %v7798_v56 = vld [vmem:[#allocation21_spill] sm:$0xff] }
 0x333   : >> { %4659 = vrcp.f32 %v6958_v52  ;;  %vm6995_vm8 = vmor %vm3380_vm6, %vm3381_vm5  ;;  %v3358_v31 = vsel %vm3355_vm7, %v3357_v58, %v3353_v43  ;;  %v3215_v51 = vadd.f32 %v3214_v13, %v7792_v46  ;;  %v3401_v62 = vand.u32 2147483648, %v6958_v52 }
 0x334   : >> { %v3377_v18 = vsub.f32 1.0, %v3376_v17  ;;  %v2729_v17 = vpop.f32.mrf.mxu3  ;;  %vm3395_vm11 = vweird.f32 %v6958_v52  ;;  %v3399_v42 = vand.u32 2147483647, %v6958_v52 }
 0x335   : >> { %v3291_v4 = vpop.f32.mrf.mxu1 }
 0x336   : >> { %v3438_v21 = vadd.f32 %v7785_v16, %v3291_v4  ;;  %v3378_v19 = vmul.f32 %v6956_v40, %v3377_v18  ;;  %v3372_v4 = vor.u32 1.1754944e-38, %v3371_v6  ;;  %vm3400_vm0 = vcmp.eq.f32.partialorder %v3399_v42, 8.507059e+37 }
 0x338   : >> { %v4658_v23 = vpop.eup %4657  ;;  %v3441_v25 = vmul.f32 %v3438_v21, %v3343_v3  ;;  %v3379_v9 = vadd.f32 %v6956_v40, %v3378_v19  ;;  %v3402_v3 = vor.u32 1.1754944e-38, %v3401_v62  ;;  %v7800_v62 = vld [vmem:[#allocation23_spill] sm:$0xff] }
 0x339   : >> { %v6970_v53 = vpop.eup %4659  ;;  %v6972_v59 = vadd.f32 1.0, %v4658_v23 }
 0x33a   : >> { %v3391_v7 = vmul.f32 %v6970_v53, %v6958_v52  ;;  %v3444_v10 = vadd.f32 %v3441_v25, %v3212_v14  ;;  %v3383_v47 = vsel %vm6995_vm8, %v6956_v40, %v3379_v9  ;;  %vm3396_vm12 = vweird.f32 %v6970_v53 }
 0x33b   : >> { %4661 = vrcp.f32 %v6972_v59  ;;  %v3388_v49 = vsel %vm3385_vm13, %v3387_v45, %v3383_v47  ;;  %v3368_v40 = vsel %vm7010_vm2, %v6954_v24, %v3364_v33  ;;  %vm3397_vm14 = vmor %vm3395_vm11, %vm3396_vm12  ;;  %v7795_v24 = vld [vmem:[#allocation35_spill] sm:$0xff]  ;;  %v3218_v52 = vadd.f32 %v3217_v55, %v7796_v50  ;;  %v7797_v45 = vld [vmem:[#allocation22_spill] sm:$0xff] }
 0x33c   : >> { %v3392_v37 = vsub.f32 1.0, %v3391_v7  ;;  %4663 = vtanh.f32 %v3444_v10  ;;  %v3450_v57 = vsub.f32 1.0, %v3388_v49  ;;  %v3373_v21 = vsel %vm3370_vm15, %v3372_v4, %v3368_v40  ;;  %v2732_v43 = vpop.f32.mrf.mxu3  ;;  %v7801_v4 = vld [vmem:[#allocation18_spill] sm:$0xff] }
 0x33d   : >> { %v3294_v8 = vpop.f32.mrf.mxu1  ;;  %v3456_v23 = vmul.f32 %v3388_v49, %v6623_v41  ;;  %v3416_v48 = vand.u32 2147483648, %v6972_v59  ;;  %v3414_v10 = vand.u32 2147483647, %v6972_v59  ;;  %vm3410_vm4 = vweird.f32 %v6972_v59  ;;  %v7799_v49 = vld [vmem:[#allocation24_spill] sm:$0xff] }
 0x33e   : >> { %v3439_v36 = vadd.f32 %v7789_v35, %v3294_v8  ;;  %v3393_v15 = vmul.f32 %v6970_v53, %v3392_v37 }
 0x33f   : >> { %v3417_v19 = vor.u32 1.1754944e-38, %v3416_v48  ;;  %vm3415_vm6 = vcmp.eq.f32.partialorder %v3414_v10, 8.507059e+37 }
 0x340   : >> { %v3442_v12 = vmul.f32 %v3439_v36, %v3358_v31  ;;  %v3394_v60 = vadd.f32 %v6970_v53, %v3393_v15 }
 0x341   : >> { %v4662_v32 = vpop.eup %4661 }
 0x342   : >> { %v3406_v38 = vmul.f32 %v4662_v32, %v6972_v59  ;;  %v3445_v0 = vadd.f32 %v3442_v12, %v3215_v51  ;;  %v4664_v11 = vpop.eup %4663  ;;  %v3398_v16 = vsel %vm3397_vm14, %v6970_v53, %v3394_v60  ;;  %vm3411_vm3 = vweird.f32 %v4662_v32 }
 0x343   : >> { %v3453_v44 = vmul.f32 %v4664_v11, %v3450_v57  ;;  %v3403_v61 = vsel %vm3400_vm0, %v3402_v3, %v3398_v16  ;;  %vm3412_vm5 = vmor %vm3410_vm4, %vm3411_vm3  ;;  %v7802_v16 = vld [vmem:[#allocation20_spill] sm:$0xff] }
 0x344   : >> { %v3407_v30 = vsub.f32 1.0, %v3406_v38  ;;  %4665 = vtanh.f32 %v3445_v0  ;;  %v3451_v41 = vsub.f32 1.0, %v3403_v61  ;;  %v3457_v1 = vmul.f32 %v3403_v61, %v6627_v34  ;;  %v2735_v22 = vpop.f32.mrf.mxu3 }
 0x345   : >> { %v3297_v27 = vpop.f32.mrf.mxu1  ;;  %v7029_v9 = vadd.f32 %v3456_v23, %v3453_v44  }
 0x346   : >> { %v3440_v18 = vadd.f32 %v7795_v24, %v3297_v27  ;;  %v3408_v14 = vmul.f32 %v4662_v32, %v3407_v30 }
 0x348   : >> { %v3443_v25 = vmul.f32 %v3440_v18, %v3373_v21  ;;  %v3409_v5 = vadd.f32 %v4662_v32, %v3408_v14 }
 0x34a   : >> { %v3446_v7 = vadd.f32 %v3443_v25, %v3218_v52  ;;  %v4666_v53 = vpop.eup %4665  ;;  %v3413_v13 = vsel %vm3412_vm5, %v4662_v32, %v3409_v5 }
 0x34b   : >> { %v3454_v54 = vmul.f32 %v4666_v53, %v3451_v41  ;;  %v3418_v63 = vsel %vm3415_vm6, %v3417_v19, %v3413_v13  ;;  %v7803_v19 = vld [vmem:[#allocation30_spill] sm:$0xff] }
 0x34c   : >> { %4667 = vtanh.f32 %v3446_v7  ;;  %v3452_v58 = vsub.f32 1.0, %v3418_v63  ;;  %v3458_v35 = vmul.f32 %v3418_v63, %v6635_v28  ;;  %v2738_v31 = vpop.f32.mrf.mxu3 }
 0x34d   : >> { %v7034_v8 = vadd.f32 %v3457_v1, %v3454_v54   ;;  %v7804_v1 = vld [vmem:[#allocation28_spill] sm:$0xff] }
 0x352   : >> { %v4668_v20 = vpop.eup %4667 }
 0x353   : >> { %v3455_v37 = vmul.f32 %v4668_v20, %v3452_v58 }
 0x354   : >> { %v2741_v47 = vpop.f32.mrf.mxu3 }
 0x355   : >> { %v2640_v59 = vpop.f32.mrf.mxu2  ;;  %v7037_v7 = vadd.f32 %v3458_v35, %v3455_v37  }
 0x356   : >> { %v2730_v36 = vadd.f32 %v2729_v17, %v2640_v59 }
 0x357   : >> { %3624 = vmatpush.msra.mxu1 %v7037_v7 }
 0x358   : >> { %v2837_v28 = vadd.f32 %v7797_v45, %v2730_v36  ;;  %v7066_v36 = vpop.permute.xlu2 %3043  ;;  %v7805_v45 = vld [vmem:[#allocation29_spill] sm:$0xff] }
 0x359   : >> { %3625 = vmatpush.msra.mxu1 %v7034_v8 }
 0x35a   : >> { %v4275_v0 = vmul.f32 -1.442695, %v2837_v28 }
 0x35b   : >> { %3626 = vmatpush.msra.mxu1 %v7029_v9 }
 0x35c   : >> { %v2744_v51 = vpop.f32.mrf.mxu3  ;;  %4669 = vpow2.f32 %v4275_v0 }
 0x35d   : >> { %v2643_v34 = vpop.f32.mrf.mxu2 }
 0x35e   : >> { %v2733_v32 = vadd.f32 %v2732_v43, %v2643_v34 }
 0x360   : >> { %v2838_v15 = vadd.f32 %v7798_v56, %v2733_v32 }
 0x362   : >> { %v4276_v17 = vmul.f32 -1.442695, %v2838_v15  ;;  %v4670_v18 = vpop.eup %4669 }
 0x363   : >> { %v7048_v23 = vadd.f32 1.0, %v4670_v18 }
 0x364   : >> { %v2747_v38 = vpop.f32.mrf.mxu3  ;;  %4671 = vpow2.f32 %v4276_v17 }
 0x365   : >> { %v2646_v33 = vpop.f32.mrf.mxu2  ;;  %vm2890_vm8 = vweird.f32 %v7048_v23 }
 0x366   : >> { %v2736_v60 = vadd.f32 %v2735_v22, %v2646_v33 }
 0x368   : >> { %v2839_v57 = vadd.f32 %v7801_v4, %v2736_v60 }
 0x36a   : >> { %v4277_v44 = vmul.f32 -1.442695, %v2839_v57  ;;  %v4672_v50 = vpop.eup %4671 }
 0x36b   : >> { %v7051_v61 = vadd.f32 1.0, %v4672_v50 }
 0x36c   : >> { %v2750_v24 = vpop.f32.mrf.mxu3 }
 0x36d   : >> { %v2649_v46 = vpop.f32.mrf.mxu2  ;;  %v2909_v18 = vand.u32 2147483647, %v7051_v61  ;;  %vm2905_vm12 = vweird.f32 %v7051_v61 }
 0x36e   : >> { %v2739_v26 = vadd.f32 %v2738_v31, %v2649_v46 }
 0x36f   : >> { %vm7128_vm13 = vcmp.eq.f32.partialorder %v2909_v18, 8.507059e+37 }
 0x370   : >> { %v2840_v40 = vadd.f32 %v7799_v49, %v2739_v26 }
 0x372   : >> { %v4278_v42 = vmul.f32 -1.442695, %v2840_v40 }
 0x374   : >> { %4673 = vpow2.f32 %v4278_v42  ;;  %v2753_v5 = vpop.f32.mrf.mxu3  ;;  %v2894_v42 = vand.u32 2147483647, %v7048_v23 }
 0x375   : >> { %v2652_v12 = vpop.f32.mrf.mxu2 }
 0x376   : >> { %v2742_v6 = vadd.f32 %v2741_v47, %v2652_v12  ;;  %vm7111_vm9 = vcmp.eq.f32.partialorder %v2894_v42, 8.507059e+37 }
 0x378   : >> { %v2841_v11 = vadd.f32 %v7800_v62, %v2742_v6 }
 0x37a   : >> { %v4279_v55 = vmul.f32 -1.442695, %v2841_v11  ;;  %v4674_v14 = vpop.eup %4673 }
 0x37b   : >> { %v7053_v10 = vadd.f32 1.0, %v4674_v14 }
 0x37c   : >> { %4675 = vpow2.f32 %v4279_v55  ;;  %v7093_v55 = vpop.permute.xlu2 %3678 }
 0x37d   : >> { %v2655_v30 = vpop.f32.mrf.mxu2  ;;  %4677 = vpow2.f32 %v4277_v44  ;;  %vm2935_vm15 = vweird.f32 %v7053_v10 }
 0x37e   : >> { %v2745_v27 = vadd.f32 %v2744_v51, %v2655_v30  ;;  %4679 = vrcp.f32 %v7048_v23  ;;  %v2756_v51 = vpop.f32.mrf.mxu3 }
 0x380   : >> { %v2842_v21 = vadd.f32 %v7802_v16, %v2745_v27  ;;  %v2911_v16 = vand.u32 2147483648, %v7051_v61 }
 0x382   : >> { %v4280_v52 = vmul.f32 -1.442695, %v2842_v21  ;;  %v4676_v48 = vpop.eup %4675 }
 0x383   : >> { %v7055_v41 = vadd.f32 1.0, %v4676_v48  ;;  %v4678_v63 = vpop.eup %4677 }
 0x384   : >> { %4681 = vpow2.f32 %v4280_v52  ;;  %v7061_v58 = vpop.eup %4679  ;;  %v7064_v59 = vadd.f32 1.0, %v4678_v63 }
 0x385   : >> { %v2658_v3 = vpop.f32.mrf.mxu2  ;;  %4683 = vrcp.f32 %v7051_v61  ;;  %v2886_v22 = vmul.f32 %v7061_v58, %v7048_v23  ;;  %vm2891_vm7 = vweird.f32 %v7061_v58  ;;  %vm2950_vm4 = vweird.f32 %v7055_v41 }
 0x386   : >> { %v2748_v25 = vadd.f32 %v2747_v38, %v2658_v3  ;;  %4685 = vrcp.f32 %v7053_v10  ;;  %v2759_v44 = vpop.f32.mrf.mxu3  ;;  %vm7123_vm10 = vmor %vm2890_vm8, %vm2891_vm7 }
 0x387   : >> { %4687 = vrcp.f32 %v7055_v41  ;;  %v2887_v32 = vsub.f32 1.0, %v2886_v22 }
 0x388   : >> { %v2843_v13 = vadd.f32 %v7803_v19, %v2748_v25  ;;  %v7806_v25 = vld [vmem:[#allocation33_spill] sm:$0xff] }
 0x389   : >> { %v2888_v11 = vmul.f32 %v7061_v58, %v2887_v32  ;;  %v7813_v32 = vld [vmem:[#allocation31_spill] sm:$0xff] }
 0x38a   : >> { %v4281_v20 = vmul.f32 -1.442695, %v2843_v13  ;;  %v4682_v35 = vpop.eup %4681 }
 0x38b   : >> { %v7070_v31 = vpop.eup %4683  ;;  %v7072_v33 = vadd.f32 1.0, %v4682_v35  ;;  %v2889_v3 = vadd.f32 %v7061_v58, %v2888_v11 }
 0x38c   : >> { %v7074_v46 = vpop.eup %4685  ;;  %v2901_v26 = vmul.f32 %v7070_v31, %v7051_v61  ;;  %vm2906_vm2 = vweird.f32 %v7070_v31  ;;  %v2954_v61 = vand.u32 2147483647, %v7055_v41 }
 0x38d   : >> { %v2661_v53 = vpop.f32.mrf.mxu2  ;;  %v7076_v12 = vpop.eup %4687  ;;  %v2931_v38 = vmul.f32 %v7074_v46, %v7053_v10  ;;  %vm2936_vm11 = vweird.f32 %v7074_v46  ;;  %vm7150_vm0 = vmor %vm2905_vm12, %vm2906_vm2 }
 0x38e   : >> { %v2751_v54 = vadd.f32 %v2750_v24, %v2661_v53  ;;  %v2946_v56 = vmul.f32 %v7076_v12, %v7055_v41  ;;  %v2902_v49 = vsub.f32 1.0, %v2901_v26  ;;  %v2896_v24 = vand.u32 2147483648, %v7048_v23  ;;  %vm7160_vm3 = vmor %vm2935_vm15, %vm2936_vm11 }
 0x38f   : >> { %v2932_v17 = vsub.f32 1.0, %v2931_v38  ;;  %vm2951_vm14 = vweird.f32 %v7076_v12  ;;  %vm2955_vm8 = vcmp.eq.f32.partialorder %v2954_v61, 8.507059e+37 }
 0x390   : >> { %v2844_v43 = vadd.f32 %v7804_v1, %v2751_v54  ;;  %v2947_v27 = vsub.f32 1.0, %v2946_v56  ;;  %v2903_v50 = vmul.f32 %v7070_v31, %v2902_v49  ;;  %v2897_v23 = vor.u32 1.1754944e-38, %v2896_v24  ;;  %vm7170_vm5 = vmor %vm2950_vm4, %vm2951_vm14 }
 0x391   : >> { %v2933_v14 = vmul.f32 %v7074_v46, %v2932_v17  ;;  %v2926_v24 = vand.u32 2147483648, %v7064_v59 }
 0x392   : >> { %v4282_v37 = vmul.f32 -1.442695, %v2844_v43  ;;  %v2912_v43 = vor.u32 1.1754944e-38, %v2911_v16  ;;  %v2904_v35 = vadd.f32 %v7070_v31, %v2903_v50 }
 0x394   : >> { %4689 = vpow2.f32 %v4282_v37  ;;  %v2908_v17 = vsel %vm7150_vm0, %v7070_v31, %v2904_v35  ;;  %v2969_v35 = vand.u32 2147483647, %v7072_v33 }
 0x395   : >> { %v2664_v34 = vpop.f32.mrf.mxu2  ;;  %4691 = vpow2.f32 %v4281_v20  ;;  %v2893_v20 = vsel %vm7123_vm10, %v7061_v58, %v2889_v3 }
 0x396   : >> { %v2754_v47 = vadd.f32 %v2753_v5, %v2664_v34  ;;  %4693 = vrcp.f32 %v7064_v59  ;;  %v2948_v5 = vmul.f32 %v7076_v12, %v2947_v27  ;;  %v2898_v11 = vsel %vm7111_vm9, %v2897_v23, %v2893_v20  ;;  %v2762_v27 = vpop.f32.mrf.mxu3  ;;  %v7820_v23 = vld [vmem:[#allocation32_spill] sm:$0xff] }
 0x397   : >> { %4695 = vrcp.f32 %v7072_v33  ;;  %vm2965_vm9 = vweird.f32 %v7072_v33  ;;  %vm2970_vm11 = vcmp.eq.f32.partialorder %v2969_v35, 8.507059e+37  ;;  %v3474_v35 = vld [vmem:[%s7618_s6] sm:$0xff] }
 0x398   : >> { %v2845_v28 = vadd.f32 %v7805_v45, %v2754_v47  ;;  %v2949_v58 = vadd.f32 %v7076_v12, %v2948_v5  ;;  %v2941_v45 = vand.u32 2147483648, %v7053_v10 }
 0x39a   : >> { %v4690_v6 = vpop.eup %4689  ;;  %v4283_v0 = vmul.f32 -1.442695, %v2845_v28  ;;  %v2956_v28 = vand.u32 2147483648, %v7055_v41  ;;  %v2953_v42 = vsel %vm7170_vm5, %v7076_v12, %v2949_v58  ;;  %v2942_v16 = vor.u32 1.1754944e-38, %v2941_v45 }
 0x39b   : >> { %v4692_v15 = vpop.eup %4691  ;;  %v7087_v40 = vadd.f32 1.0, %v4690_v6 }
 0x39c   : >> { %4697 = vpow2.f32 %v4283_v0  ;;  %v7090_v30 = vpop.eup %4693  ;;  %v7095_v4 = vadd.f32 1.0, %v4692_v15  ;;  %v7156_v0 = vpop.permute.xlu2 %3698  ;;  %v2939_v15 = vand.u32 2147483647, %v7053_v10  ;;  %v2957_v31 = vor.u32 1.1754944e-38, %v2956_v28 }
 0x39d   : >> { %v2667_v62 = vpop.f32.mrf.mxu2  ;;  %v7097_v57 = vpop.eup %4695  ;;  %v2916_v21 = vmul.f32 %v7090_v30, %v7064_v59  ;;  %4699 = vrcp.f32 %v7087_v40  ;;  %vm2921_vm6 = vweird.f32 %v7090_v30  ;;  %v3001_v61 = vand.u32 2147483648, %v7087_v40 }
 0x39e   : >> { %v2757_v60 = vadd.f32 %v2756_v51, %v2667_v62  ;;  %v2961_v19 = vmul.f32 %v7097_v57, %v7072_v33  ;;  %4701 = vrcp.f32 %v7095_v4  ;;  %v2934_v51 = vadd.f32 %v7074_v46, %v2933_v14 }
 0x39f   : >> { %v2917_v63 = vsub.f32 1.0, %v2916_v21  ;;  %vm2940_vm7 = vcmp.eq.f32.partialorder %v2939_v15, 8.507059e+37  ;;  %vm2966_vm10 = vweird.f32 %v7097_v57  ;;  %vm2980_vm5 = vweird.f32 %v7095_v4 }
 0x3a0   : >> { %v2846_v48 = vadd.f32 %v7806_v25, %v2757_v60  ;;  %v2962_v47 = vsub.f32 1.0, %v2961_v19  ;;  %v2938_v60 = vsel %vm7160_vm3, %v7074_v46, %v2934_v51  ;;  %v2913_v46 = vsel %vm7128_vm13, %v2912_v43, %v2908_v17  ;;  %vm7207_vm12 = vmor %vm2965_vm9, %vm2966_vm10 }
 0x3a1   : >> { %v2918_v49 = vmul.f32 %v7090_v30, %v2917_v63  ;;  %v2943_v50 = vsel %vm2940_vm7, %v2942_v16, %v2938_v60  ;;  %v2971_v19 = vand.u32 2147483648, %v7072_v33  ;;  %vm2920_vm13 = vweird.f32 %v7064_v59 }
 0x3a2   : >> { %v4698_v52 = vpop.eup %4697  ;;  %4703 = vtanh.f32 %v2846_v48  ;;  %v2963_v41 = vmul.f32 %v7097_v57, %v2962_v47  ;;  %v3023_v63 = vmul.f32 %v2943_v50, %v6840_v2  ;;  %v2924_v47 = vand.u32 2147483647, %v7064_v59  ;;  %vm2922_vm2 = vmor %vm2920_vm13, %vm2921_vm6 }
 0x3a3   : >> { %v7119_v13 = vadd.f32 1.0, %v4698_v52  ;;  %v7139_v34 = vpop.eup %4699  ;;  %v2919_v12 = vadd.f32 %v7090_v30, %v2918_v49  ;;  %v2958_v52 = vsel %vm2955_vm8, %v2957_v31, %v2953_v42  ;;  %v2972_v33 = vor.u32 1.1754944e-38, %v2971_v19 }
 0x3a4   : >> { %v7154_v38 = vpop.eup %4701  ;;  %v2991_v10 = vmul.f32 %v7139_v34, %v7087_v40  ;;  %v2964_v53 = vadd.f32 %v7097_v57, %v2963_v41  ;;  %v3024_v20 = vmul.f32 %v2958_v52, %v6842_v39  ;;  %v7214_v58 = vpop.permute.xlu2 %3708  ;;  %vm2925_vm14 = vcmp.eq.f32.partialorder %v2924_v47, 8.507059e+37  ;;  %v3463_v52 = vld [vmem:[%s7617_s5 + $0x8] sm:$0xff] }
 0x3a5   : >> { %v2670_v37 = vpop.f32.mrf.mxu2  ;;  %4705 = vrcp.f32 %v7119_v13  ;;  %v2976_v21 = vmul.f32 %v7154_v38, %v7095_v4  ;;  %v2923_v59 = vsel %vm2922_vm2, %v7090_v30, %v2919_v12  ;;  %vm2996_vm15 = vweird.f32 %v7139_v34  ;;  %v3471_v41 = vld [vmem:[%s7617_s5 + $0x48] sm:$0xff] }
 0x3a6   : >> { %v2760_v22 = vadd.f32 %v2759_v44, %v2670_v37  ;;  %v2992_v25 = vsub.f32 1.0, %v2991_v10  ;;  %v2968_v39 = vsel %vm7207_vm12, %v7097_v57, %v2964_v53  ;;  %vm2981_vm0 = vweird.f32 %v7154_v38 }
 0x3a7   : >> { %v2977_v43 = vsub.f32 1.0, %v2976_v21  ;;  %v2973_v6 = vsel %vm2970_vm11, %v2972_v33, %v2968_v39  ;;  %vm2995_vm3 = vweird.f32 %v7087_v40  ;;  %v2999_v49 = vand.u32 2147483647, %v7087_v40  ;;  %vm7256_vm6 = vmor %vm2980_vm5, %vm2981_vm0  ;;  %v3475_v33 = vld [vmem:[%s7618_s6 + $0x8] sm:$0xff] }
 0x3a8   : >> { %v2847_v26 = vadd.f32 %v7813_v32, %v2760_v22  ;;  %v4704_v18 = vpop.eup %4703  ;;  %v2993_v51 = vmul.f32 %v7139_v34, %v2992_v25  ;;  %v3025_v17 = vmul.f32 %v2973_v6, %v6876_v29  ;;  %vm7241_vm4 = vmor %vm2995_vm3, %vm2996_vm15  ;;  %v2986_v60 = vand.u32 2147483648, %v7095_v4 }
 0x3a9   : >> { %v3026_v48 = vmul.f32 %v4704_v18, %v2898_v11  ;;  %v2978_v32 = vmul.f32 %v7154_v38, %v2977_v43  ;;  %v3462_v11 = vld [vmem:[%s7617_s5] sm:$0xff]  ;;  %v2984_v42 = vand.u32 2147483647, %v7095_v4  ;;  %v3002_v29 = vor.u32 1.1754944e-38, %v3001_v61  ;;  %v3467_v61 = vld [vmem:[%s7617_s5 + $0x28] sm:$0xff]  ;;  %v3484_v18 = vld [vmem:[%s7618_s6 + $0x50] sm:$0xff] }
 0x3aa   : >> { %4707 = vtanh.f32 %v2847_v26  ;;  %v2927_v26 = vor.u32 1.1754944e-38, %v2926_v24  ;;  %v2994_v56 = vadd.f32 %v7139_v34, %v2993_v51  ;;  %4328 = vmatmul.msk.f32.vlgmr.msra.gmra.mxu1 %vm531_vm1, %v3462_v11  ;;  %vm3000_vm8 = vcmp.eq.f32.partialorder %v2999_v49, 8.507059e+37  ;;  %v3465_v51 = vld [vmem:[%s7617_s5 + $0x18] sm:$0xff]  ;;  %v3478_v49 = vld [vmem:[%s7618_s6 + $0x20] sm:$0xff]  ;;  %v3479_v11 = vld [vmem:[%s7618_s6 + $0x28] sm:$0xff] }
 0x3ab   : >> { %v7192_v3 = vpop.eup %4705  ;;  %v7216_v45 = vadd.f32 %v3026_v48, %v3023_v63  ;;  %v2979_v62 = vadd.f32 %v7154_v38, %v2978_v32  ;;  %v3016_v21 = vand.u32 2147483648, %v7119_v13  ;;  %vm3010_vm9 = vweird.f32 %v7119_v13  ;;  %v3049_v48 = vpop.permute.xlu0 %3048 }
 0x3ac   : >> { %v3006_v54 = vmul.f32 %v7192_v3, %v7119_v13  ;;  %v2928_v15 = vsel %vm2925_vm14, %v2927_v26, %v2923_v59  ;;  %v2998_v40 = vsel %vm7241_vm4, %v7139_v34, %v2994_v56  ;;  %vm3011_vm7 = vweird.f32 %v7192_v3  ;;  %v7265_v31 = vpop.permute.xlu2 %3723  ;;  %v3466_v56 = vld [vmem:[%s7617_s5 + $0x20] sm:$0xff] }
 0x3ad   : >> { %v2673_v44 = vpop.f32.mrf.mxu2  ;;  %v2983_v34 = vsel %vm7256_vm6, %v7154_v38, %v2979_v62  ;;  %v3014_v12 = vand.u32 2147483647, %v7119_v13  ;;  %vm2985_vm10 = vcmp.eq.f32.partialorder %v2984_v42, 8.507059e+37  ;;  %vm3012_vm12 = vmor %vm3010_vm9, %vm3011_vm7  ;;  %v3017_v53 = vor.u32 1.1754944e-38, %v3016_v21  ;;  %v3469_v62 = vld [vmem:[%s7617_s5 + $0x38] sm:$0xff]  ;;  %v3482_v42 = vld [vmem:[%s7618_s6 + $0x40] sm:$0xff] }
 0x3ae   : >> { %v2763_v14 = vadd.f32 %v2762_v27, %v2673_v44  ;;  %v3007_v28 = vsub.f32 1.0, %v3006_v54  ;;  %v2987_v44 = vor.u32 1.1754944e-38, %v2986_v60  ;;  %v3481_v60 = vld [vmem:[%s7618_s6 + $0x38] sm:$0xff] }
 0x3af   : >> { %vm3015_vm13 = vcmp.eq.f32.partialorder %v3014_v12, 8.507059e+37 }
 0x3b0   : >> { %v4708_v5 = vpop.eup %4707  ;;  %v2848_v1 = vadd.f32 %v7820_v23, %v2763_v14  ;;  %v3008_v57 = vmul.f32 %v7192_v3, %v3007_v28  ;;  %v2988_v38 = vsel %vm2985_vm10, %v2987_v44, %v2983_v34 }
 0x3b1   : >> { %v3027_v37 = vmul.f32 %v4708_v5, %v2913_v46  ;;  %v3003_v46 = vsel %vm3000_vm8, %v3002_v29, %v2998_v40  ;;  %v3472_v40 = vld [vmem:[%s7617_s5 + $0x50] sm:$0xff]  ;;  %v3483_v29 = vld [vmem:[%s7618_s6 + $0x48] sm:$0xff] }
 0x3b2   : >> { %4709 = vtanh.f32 %v2848_v1  ;;  %v3009_v16 = vadd.f32 %v7192_v3, %v3008_v57  ;;  %4329 = vmatmul.msk.f32.gmra.mxu1 %vm531_vm1, %v3463_v52  ;;  %v3054_v1 = vpop.permute.xlu1 %3053  ;;  %v3468_v57 = vld [vmem:[%s7617_s5 + $0x30] sm:$0xff] }
 0x3b3   : >> { %v7218_v2 = vadd.f32 %v3027_v37, %v3024_v20 }
 0x3b4   : >> { %v3013_v14 = vsel %vm3012_vm12, %v7192_v3, %v3009_v16  ;;  %v3464_v3 = vld [vmem:[%s7617_s5 + $0x10] sm:$0xff]  ;;  %v7280_v20 = vpop.permute.xlu2 %3942  ;;  %v3485_v16 = vld [vmem:[%s7618_s6 + $0x58] sm:$0xff] }
 0x3b5   : >> { %4711 = vtanh.f32 %v7218_v2  ;;  %v3018_v54 = vsel %vm3015_vm13, %v3017_v53, %v3013_v14 }
 0x3b6   : >> { %4713 = vtanh.f32 %v7216_v45 }
 0x3b8   : >> { %v4710_v30 = vpop.eup %4709 }
 0x3b9   : >> { %v3028_v10 = vmul.f32 %v4710_v30, %v2928_v15  ;;  %v3476_v15 = vld [vmem:[%s7618_s6 + $0x10] sm:$0xff]  ;;  %v3477_v30 = vld [vmem:[%s7618_s6 + $0x18] sm:$0xff] }
 0x3ba   : >> { %4330 = vmatmul.msk.f32.gmra.mxu1 %vm531_vm1, %v3464_v3 }
 0x3bb   : >> { %v4712_v27 = vpop.eup %4711  ;;  %v7252_v24 = vadd.f32 %v3028_v10, %v3025_v17  ;;  %v3470_v17 = vld [vmem:[%s7617_s5 + $0x40] sm:$0xff]  ;;  %v3480_v10 = vld [vmem:[%s7618_s6 + $0x30] sm:$0xff] }
 0x3bc   : >> { %v4714_v4 = vpop.eup %4713  ;;  %v3036_v50 = vmul.f32 %v4712_v27, %v3003_v46  ;;  %v3071_v28 = vpop.permute.xlu2 %3070  ;;  %v3473_v27 = vld [vmem:[%s7617_s5 + $0x58] sm:$0xff] }
 0x3bd   : >> { %4715 = vtanh.f32 %v7252_v24  ;;  %v3035_v25 = vmul.f32 %v4714_v4, %v2988_v38  ;;  %v3073_v32 = vperm.slane %v3071_v28, 0 }
 0x3be   : >> { %v3057_v5 = vmul.f32 %v3049_v48, %v3036_v50 }
 0x3bf   : >> { %v3056_v23 = vmul.f32 %v7066_v36, %v3035_v25 }
 0x3c1   : >> { %v3059_v63 = vadd.f32 %v3057_v5, %v3056_v23  ;;  %v3694_v23 = vpop.permute.xlu1 %3693 }
 0x3c2   : >> { %4331 = vmatmul.msk.f32.gmra.mxu1 %vm531_vm1, %v3465_v51 }
 0x3c3   : >> { %v4716_v19 = vpop.eup %4715 }
 0x3c4   : >> { %v3037_v13 = vmul.f32 %v4716_v19, %v3018_v54  ;;  %v3684_v19 = vpop.permute.xlu0 %3683 }
 0x3c6   : >> { %v3058_v43 = vmul.f32 %v3054_v1, %v3037_v13  ;;  %3535 = vmatpush.msra.mxu0 %v3037_v13 }
 0x3c8   : >> { %3536 = vmatpush.msra.mxu0 %v3036_v50  ;;  %v3060_v37 = vadd.f32 %v3059_v63, %v3058_v43 }
 0x3c9   : >> { %v3704_v28 = vpop.permute.xlu1 %3703 }
 0x3ca   : >> { %v3061_v22 = vrot.slane %v3060_v37, 4  ;;  %3537 = vmatpush.msra.mxu0 %v3035_v25  ;;  %4332 = vmatmul.msk.f32.gmra.mxu1 %vm531_vm1, %v3466_v56 }
 0x3cb   : >> { %4316 = vmatmul.msk.f32.vlgmr.msra.gmra.mxu0 %vm531_vm1, %v3474_v35 }
 0x3cc   : >> { %v3062_v36 = vadd.f32 %v3061_v22, %v3060_v37 }
 0x3ce   : >> { %v3063_v47 = vrot.slane %v3062_v36, 2 }
 0x3d0   : >> { %v3064_v39 = vadd.f32 %v3063_v47, %v3062_v36 }
 0x3d2   : >> { %v3065_v59 = vrot.slane %v3064_v39, 1  ;;  %4333 = vmatmul.msk.f32.gmra.mxu1 %vm531_vm1, %v3467_v61 }
 0x3d3   : >> { %4317 = vmatmul.msk.f32.gmra.mxu0 %vm531_vm1, %v3475_v33  ;;  %v3689_v33 = vpop.permute.xlu0 %3688 }
 0x3d4   : >> { %v3066_v26 = vadd.f32 %v3065_v59, %v3064_v39 }
 0x3d6   : >> { %v3074_v6 = vadd.f32 %v3073_v32, %v3066_v26 }
 0x3d8   : >> { %4285 = vst [vmem:[%s6368_s26 + $0x2] sm:$0x1] %v3074_v6 }
 0x3da   : >> { %4334 = vmatmul.msk.f32.gmra.mxu1 %vm531_vm1, %v3468_v57 }
 0x3db   : >> { %4318 = vmatmul.msk.f32.gmra.mxu0 %vm531_vm1, %v3476_v15 }
 0x3e2   : >> { %4335 = vmatmul.msk.f32.gmra.mxu1 %vm531_vm1, %v3469_v62 }
 0x3e3   : >> { %4319 = vmatmul.msk.f32.gmra.mxu0 %vm531_vm1, %v3477_v30 }
 0x3ea   : >> { %4336 = vmatmul.msk.f32.gmra.mxu1 %vm531_vm1, %v3470_v17 }
 0x3eb   : >> { %4320 = vmatmul.msk.f32.gmra.mxu0 %vm531_vm1, %v3478_v49 }
 0x3f2   : >> { %4337 = vmatmul.msk.f32.gmra.mxu1 %vm531_vm1, %v3471_v41 }
 0x3f3   : >> { %4321 = vmatmul.msk.f32.gmra.mxu0 %vm531_vm1, %v3479_v11 }
 0x3fa   : >> { %4338 = vmatmul.msk.f32.gmra.mxu1 %vm531_vm1, %v3472_v40 }
 0x3fb   : >> { %4322 = vmatmul.msk.f32.gmra.mxu0 %vm531_vm1, %v3480_v10 }
 0x402   : >> { %4339 = vmatmul.msk.f32.gmra.mxu1 %vm531_vm1, %v3473_v27 }
 0x403   : >> { %4323 = vmatmul.msk.f32.gmra.mxu0 %vm531_vm1, %v3481_v60 }
 0x40b   : >> { %4324 = vmatmul.msk.f32.gmra.mxu0 %vm531_vm1, %v3482_v42  ;;  %v3714_v42 = vpop.permute.xlu0 %3713 }
 0x413   : >> { %4325 = vmatmul.msk.f32.gmra.mxu0 %vm531_vm1, %v3483_v29 }
 0x41b   : >> { %4326 = vmatmul.msk.f32.gmra.mxu0 %vm531_vm1, %v3484_v18 }
 0x423   : >> { %4327 = vmatmul.msk.f32.gmra.mxu0 %vm531_vm1, %v3485_v16 }
 0x427   : >> { %v3628_v34 = vpop.f32.mrf.mxu1 }
 0x42f   : >> { %v3631_v4 = vpop.f32.mrf.mxu1 }
 0x437   : >> { %v3634_v44 = vpop.f32.mrf.mxu1 }
 0x43f   : >> { %v3637_v50 = vpop.f32.mrf.mxu1 }
 0x447   : >> { %v3640_v38 = vpop.f32.mrf.mxu1 }
 0x448   : >> { %v3539_v21 = vpop.f32.mrf.mxu0 }
 0x449   : >> { %v3629_v46 = vadd.f32 %v3628_v34, %v3539_v21 }
 0x44b   : >> { %v3736_v53 = vadd.f32 %v7093_v55, %v3629_v46 }
 0x44d   : >> { %v4340_v43 = vmul.f32 -1.442695, %v3736_v53 }
 0x44f   : >> { %v3643_v25 = vpop.f32.mrf.mxu1  ;;  %4717 = vpow2.f32 %v4340_v43 }
 0x450   : >> { %v3542_v12 = vpop.f32.mrf.mxu0 }
 0x451   : >> { %v3632_v5 = vadd.f32 %v3631_v4, %v3542_v12 }
 0x453   : >> { %v3737_v63 = vadd.f32 %v3684_v19, %v3632_v5 }
 0x455   : >> { %v4341_v22 = vmul.f32 -1.442695, %v3737_v63  ;;  %v4718_v32 = vpop.eup %4717 }
 0x456   : >> { %v7370_v15 = vadd.f32 1.0, %v4718_v32 }
 0x457   : >> { %v3646_v1 = vpop.f32.mrf.mxu1  ;;  %4719 = vpow2.f32 %v4341_v22 }
 0x458   : >> { %v3545_v52 = vpop.f32.mrf.mxu0  ;;  %vm3789_vm2 = vweird.f32 %v7370_v15 }
 0x459   : >> { %v3635_v36 = vadd.f32 %v3634_v44, %v3545_v52 }
 0x45b   : >> { %v3738_v55 = vadd.f32 %v3689_v33, %v3635_v36 }
 0x45d   : >> { %v4342_v56 = vmul.f32 -1.442695, %v3738_v55  ;;  %v3795_v55 = vand.u32 2147483648, %v7370_v15 }
 0x45f   : >> { %v3649_v59 = vpop.f32.mrf.mxu1 }
 0x460   : >> { %v3548_v14 = vpop.f32.mrf.mxu0 }
 0x461   : >> { %v3638_v54 = vadd.f32 %v3637_v50, %v3548_v14 }
 0x463   : >> { %v3739_v3 = vadd.f32 %v3694_v23, %v3638_v54 }
 0x465   : >> { %v4343_v47 = vmul.f32 -1.442695, %v3739_v3 }
 0x467   : >> { %4721 = vpow2.f32 %v4343_v47  ;;  %v3652_v10 = vpop.f32.mrf.mxu1  ;;  %v3793_v47 = vand.u32 2147483647, %v7370_v15 }
 0x468   : >> { %v3551_v48 = vpop.f32.mrf.mxu0 }
 0x469   : >> { %v3641_v13 = vadd.f32 %v3640_v38, %v3551_v48  ;;  %v3719_v38 = vpop.permute.xlu1 %3718  ;;  %vm7427_vm11 = vcmp.eq.f32.partialorder %v3793_v47, 8.507059e+37 }
 0x46b   : >> { %v3740_v37 = vadd.f32 %v7156_v0, %v3641_v13  ;;  %v4720_v0 = vpop.eup %4719 }
 0x46c   : >> { %v7373_v62 = vadd.f32 1.0, %v4720_v0 }
 0x46d   : >> { %v4344_v51 = vmul.f32 -1.442695, %v3740_v37  ;;  %v4722_v30 = vpop.eup %4721 }
 0x46e   : >> { %v7375_v11 = vadd.f32 1.0, %v4722_v30  ;;  %vm3804_vm15 = vweird.f32 %v7373_v62 }
 0x46f   : >> { %4723 = vpow2.f32 %v4344_v51  ;;  %v3655_v14 = vpop.f32.mrf.mxu1 }
 0x470   : >> { %v3554_v35 = vpop.f32.mrf.mxu0  ;;  %4725 = vpow2.f32 %v4342_v56  ;;  %vm3834_vm6 = vweird.f32 %v7375_v11 }
 0x471   : >> { %v3644_v39 = vadd.f32 %v3643_v25, %v3554_v35  ;;  %4727 = vrcp.f32 %v7370_v15 }
 0x473   : >> { %v3741_v26 = vadd.f32 %v3704_v28, %v3644_v39  ;;  %v3808_v28 = vand.u32 2147483647, %v7373_v62 }
 0x475   : >> { %v4345_v61 = vmul.f32 -1.442695, %v3741_v26  ;;  %v4724_v49 = vpop.eup %4723  ;;  %vm7444_vm0 = vcmp.eq.f32.partialorder %v3808_v28, 8.507059e+37 }
 0x476   : >> { %v7377_v41 = vadd.f32 1.0, %v4724_v49  ;;  %v4726_v29 = vpop.eup %4725 }
 0x477   : >> { %4729 = vpow2.f32 %v4345_v61  ;;  %v7382_v18 = vpop.eup %4727  ;;  %v7385_v21 = vadd.f32 1.0, %v4726_v29 }
 0x478   : >> { %v3557_v6 = vpop.f32.mrf.mxu0  ;;  %4731 = vrcp.f32 %v7373_v62  ;;  %vm3790_vm1 = vweird.f32 %v7382_v18  ;;  %vm3849_vm9 = vweird.f32 %v7377_v41 }
 0x479   : >> { %v3647_v57 = vadd.f32 %v3646_v1, %v3557_v6  ;;  %4733 = vrcp.f32 %v7375_v11  ;;  %v3658_v6 = vpop.f32.mrf.mxu1  ;;  %vm7439_vm14 = vmor %vm3789_vm2, %vm3790_vm1 }
 0x47a   : >> { %4735 = vrcp.f32 %v7377_v41 }
 0x47b   : >> { %v3742_v60 = vadd.f32 %v7214_v58, %v3647_v57  ;;  %v3785_v58 = vmul.f32 %v7382_v18, %v7370_v15 }
 0x47d   : >> { %v4346_v16 = vmul.f32 -1.442695, %v3742_v60  ;;  %v4730_v4 = vpop.eup %4729  ;;  %v3786_v53 = vsub.f32 1.0, %v3785_v58  ;;  %v3729_v58 = vpop.permute.xlu0 %3728 }
 0x47e   : >> { %v7389_v44 = vpop.eup %4731  ;;  %v7391_v12 = vadd.f32 1.0, %v4730_v4 }
 0x47f   : >> { %v7393_v52 = vpop.eup %4733  ;;  %v3800_v5 = vmul.f32 %v7389_v44, %v7373_v62  ;;  %v3787_v37 = vmul.f32 %v7382_v18, %v3786_v53  ;;  %vm3805_vm3 = vweird.f32 %v7389_v44 }
 0x480   : >> { %v3560_v17 = vpop.f32.mrf.mxu0  ;;  %v7395_v25 = vpop.eup %4735  ;;  %v3830_v54 = vmul.f32 %v7393_v52, %v7375_v11  ;;  %vm3835_vm4 = vweird.f32 %v7393_v52  ;;  %vm7467_vm7 = vmor %vm3804_vm15, %vm3805_vm3  ;;  %vm3864_vm2 = vweird.f32 %v7391_v12  ;;  %vm3819_vm15 = vweird.f32 %v7385_v21 }
 0x481   : >> { %v3650_v40 = vadd.f32 %v3649_v59, %v3560_v17  ;;  %v3845_v23 = vmul.f32 %v7395_v25, %v7377_v41  ;;  %v3801_v43 = vsub.f32 1.0, %v3800_v5  ;;  %v3810_v59 = vand.u32 2147483648, %v7373_v62  ;;  %vm7475_vm8 = vmor %vm3834_vm6, %vm3835_vm4 }
 0x482   : >> { %v3831_v22 = vsub.f32 1.0, %v3830_v54  ;;  %v3788_v26 = vadd.f32 %v7382_v18, %v3787_v37  ;;  %vm3850_vm5 = vweird.f32 %v7395_v25  ;;  %v3838_v54 = vand.u32 2147483647, %v7375_v11 }
 0x483   : >> { %v3743_v27 = vadd.f32 %v3714_v42, %v3650_v40  ;;  %v3846_v51 = vsub.f32 1.0, %v3845_v23  ;;  %v3802_v56 = vmul.f32 %v7389_v44, %v3801_v43  ;;  %v3811_v40 = vor.u32 1.1754944e-38, %v3810_v59  ;;  %vm7485_vm10 = vmor %vm3849_vm9, %vm3850_vm5 }
 0x484   : >> { %v3832_v61 = vmul.f32 %v7393_v52, %v3831_v22  ;;  %v3661_v22 = vpop.f32.mrf.mxu1  ;;  %vm3839_vm13 = vcmp.eq.f32.partialorder %v3838_v54, 8.507059e+37 }
 0x485   : >> { %v4347_v34 = vmul.f32 -1.442695, %v3743_v27  ;;  %v3847_v49 = vmul.f32 %v7395_v25, %v3846_v51  ;;  %v3792_v27 = vsel %vm7439_vm14, %v7382_v18, %v3788_v26 }
 0x487   : >> { %4737 = vpow2.f32 %v4347_v34  ;;  %v3848_v18 = vadd.f32 %v7395_v25, %v3847_v49  ;;  %v3870_v49 = vand.u32 2147483648, %v7391_v12 }
 0x488   : >> { %v3563_v46 = vpop.f32.mrf.mxu0  ;;  %4739 = vpow2.f32 %v4346_v16  ;;  %v3803_v16 = vadd.f32 %v7389_v44, %v3802_v56 }
 0x489   : >> { %v3653_v50 = vadd.f32 %v3652_v10, %v3563_v46  ;;  %4741 = vrcp.f32 %v7385_v21  ;;  %v3852_v37 = vsel %vm7485_vm10, %v7395_v25, %v3848_v18 }
 0x48a   : >> { %4743 = vrcp.f32 %v7391_v12 }
 0x48b   : >> { %v3744_v48 = vadd.f32 %v3719_v38, %v3653_v50  ;;  %v3833_v50 = vadd.f32 %v7393_v52, %v3832_v61  ;;  %v3840_v38 = vand.u32 2147483648, %v7375_v11  ;;  %v3807_v11 = vsel %vm7467_vm7, %v7389_v44, %v3803_v16 }
 0x48d   : >> { %v4738_v19 = vpop.eup %4737  ;;  %v4348_v13 = vmul.f32 -1.442695, %v3744_v48  ;;  %v3841_v51 = vor.u32 1.1754944e-38, %v3840_v38 }
 0x48e   : >> { %v4740_v1 = vpop.eup %4739  ;;  %v7405_v63 = vadd.f32 1.0, %v4738_v19 }
 0x48f   : >> { %4745 = vpow2.f32 %v4348_v13  ;;  %v7408_v35 = vpop.eup %4741  ;;  %v7411_v39 = vadd.f32 1.0, %v4740_v1  ;;  %v3853_v13 = vand.u32 2147483647, %v7377_v41 }
 0x490   : >> { %v3566_v3 = vpop.f32.mrf.mxu0  ;;  %v7413_v33 = vpop.eup %4743  ;;  %v3815_v32 = vmul.f32 %v7408_v35, %v7385_v21  ;;  %4747 = vrcp.f32 %v7405_v63  ;;  %vm3820_vm12 = vweird.f32 %v7408_v35  ;;  %vm3894_vm7 = vweird.f32 %v7405_v63 }
 0x491   : >> { %v3656_v36 = vadd.f32 %v3655_v14, %v3566_v3  ;;  %v3860_v17 = vmul.f32 %v7413_v33, %v7391_v12  ;;  %4749 = vrcp.f32 %v7411_v39  ;;  %v3855_v14 = vand.u32 2147483648, %v7377_v41 }
 0x492   : >> { %v3816_v42 = vsub.f32 1.0, %v3815_v32  ;;  %v3837_v3 = vsel %vm7475_vm8, %v7393_v52, %v3833_v50  ;;  %v3812_v52 = vsel %vm7444_vm0, %v3811_v40, %v3807_v11  ;;  %vm3854_vm1 = vcmp.eq.f32.partialorder %v3853_v13, 8.507059e+37  ;;  %vm7534_vm0 = vmor %vm3819_vm15, %vm3820_vm12 }
 0x493   : >> { %v3745_v30 = vadd.f32 %v7265_v31, %v3656_v36  ;;  %v3796_v31 = vor.u32 1.1754944e-38, %v3795_v55  ;;  %v3861_v46 = vsub.f32 1.0, %v3860_v17  ;;  %v3825_v36 = vand.u32 2147483648, %v7385_v21 }
 0x494   : >> { %v3817_v62 = vmul.f32 %v7408_v35, %v3816_v42  ;;  %v3856_v55 = vor.u32 1.1754944e-38, %v3855_v14  ;;  %v3842_v26 = vsel %vm3839_vm13, %v3841_v51, %v3837_v3  ;;  %v3898_v19 = vand.u32 2147483647, %v7405_v63 }
 0x495   : >> { %v4746_v0 = vpop.eup %4745  ;;  %4751 = vtanh.f32 %v3745_v30  ;;  %v3797_v43 = vsel %vm7427_vm11, %v3796_v31, %v3792_v27  ;;  %v3862_v41 = vmul.f32 %v7413_v33, %v3861_v46  ;;  %vm3865_vm11 = vweird.f32 %v7413_v33 }
 0x496   : >> { %v7435_v10 = vadd.f32 1.0, %v4746_v0  ;;  %v7455_v4 = vpop.eup %4747  ;;  %v3818_v25 = vadd.f32 %v7408_v35, %v3817_v62  ;;  %v3734_v0 = vpop.permute.xlu1 %3733  ;;  %v3922_v15 = vmul.f32 %v3842_v26, %v7216_v45  ;;  %v3868_v27 = vand.u32 2147483647, %v7391_v12  ;;  %vm7521_vm14 = vmor %vm3864_vm2, %vm3865_vm11 }
 0x497   : >> { %v7471_v5 = vpop.eup %4749  ;;  %v3890_v1 = vmul.f32 %v7455_v4, %v7405_v63  ;;  %v3863_v30 = vadd.f32 %v7413_v33, %v3862_v41  ;;  %v3826_v18 = vor.u32 1.1754944e-38, %v3825_v36  ;;  %vm3895_vm4 = vweird.f32 %v7455_v4 }
 0x498   : >> { %v3569_v29 = vpop.f32.mrf.mxu0  ;;  %4753 = vrcp.f32 %v7435_v10  ;;  %v3875_v44 = vmul.f32 %v7471_v5, %v7411_v39  ;;  %vm3869_vm3 = vcmp.eq.f32.partialorder %v3868_v27, 8.507059e+37  ;;  %vm3880_vm6 = vweird.f32 %v7471_v5  ;;  %vm7556_vm8 = vmor %vm3894_vm7, %vm3895_vm4 }
 0x499   : >> { %v3659_v34 = vadd.f32 %v3658_v6, %v3569_v29  ;;  %v3891_v32 = vsub.f32 1.0, %v3890_v1  ;;  %v3857_v6 = vsel %vm3854_vm1, %v3856_v55, %v3852_v37  ;;  %v3867_v12 = vsel %vm7521_vm14, %v7413_v33, %v3863_v30 }
 0x49a   : >> { %v3876_v17 = vsub.f32 1.0, %v3875_v44  ;;  %v3923_v40 = vmul.f32 %v3857_v6, %v7218_v2  ;;  %v3900_v33 = vand.u32 2147483648, %v7405_v63  ;;  %v3885_v13 = vand.u32 2147483648, %v7411_v39 }
 0x49b   : >> { %v3746_v48 = vadd.f32 %v3729_v58, %v3659_v34  ;;  %v4752_v47 = vpop.eup %4751  ;;  %v3892_v16 = vmul.f32 %v7455_v4, %v3891_v32  ;;  %v3823_v34 = vand.u32 2147483647, %v7385_v21  ;;  %v3871_v58 = vor.u32 1.1754944e-38, %v3870_v49 }
 0x49c   : >> { %v3925_v61 = vmul.f32 %v4752_v47, %v3797_v43  ;;  %v3877_v46 = vmul.f32 %v7471_v5, %v3876_v17  ;;  %v3822_v21 = vsel %vm7534_vm0, %v7408_v35, %v3818_v25  ;;  %vm3879_vm9 = vweird.f32 %v7411_v39 }
 0x49d   : >> { %4755 = vtanh.f32 %v3746_v48  ;;  %v3893_v38 = vadd.f32 %v7455_v4, %v3892_v16  ;;  %vm3824_vm5 = vcmp.eq.f32.partialorder %v3823_v34, 8.507059e+37  ;;  %v3872_v14 = vsel %vm3869_vm3, %v3871_v58, %v3867_v12  ;;  %vm7568_vm10 = vmor %vm3879_vm9, %vm3880_vm6 }
 0x49e   : >> { %v7507_v28 = vpop.eup %4753  ;;  %v7528_v3 = vadd.f32 %v3925_v61, %v3922_v15   ;;  %v3827_v48 = vsel %vm3824_vm5, %v3826_v18, %v3822_v21  ;;  %v3878_v35 = vadd.f32 %v7471_v5, %v3877_v46  ;;  %v3924_v23 = vmul.f32 %v3872_v14, %v7252_v24 }
 0x49f   : >> { %v3905_v60 = vmul.f32 %v7507_v28, %v7435_v10  ;;  %v3883_v43 = vand.u32 2147483647, %v7411_v39  ;;  %v3897_v11 = vsel %vm7556_vm8, %v7455_v4, %v3893_v38  ;;  %v3901_v37 = vor.u32 1.1754944e-38, %v3900_v33 }
 0x4a0   : >> { %v3572_v59 = vpop.f32.mrf.mxu0  ;;  %v3882_v24 = vsel %vm7568_vm10, %v7471_v5, %v3878_v35  ;;  %vm3899_vm12 = vcmp.eq.f32.partialorder %v3898_v19, 8.507059e+37  ;;  %vm3910_vm13 = vweird.f32 %v7507_v28  ;;  %v3886_v4 = vor.u32 1.1754944e-38, %v3885_v13 }
 0x4a1   : >> { %v3662_v56 = vadd.f32 %v3661_v22, %v3572_v59  ;;  %v3906_v50 = vsub.f32 1.0, %v3905_v60  ;;  %v3915_v36 = vand.u32 2147483648, %v7435_v10  ;;  %v3902_v47 = vsel %vm3899_vm12, %v3901_v37, %v3897_v11 }
 0x4a2   : >> { %vm3884_vm1 = vcmp.eq.f32.partialorder %v3883_v43, 8.507059e+37  ;;  %vm3909_vm2 = vweird.f32 %v7435_v10  ;;  %v3913_v51 = vand.u32 2147483647, %v7435_v10 }
 0x4a3   : >> { %v4756_v57 = vpop.eup %4755  ;;  %v3747_v31 = vadd.f32 %v3734_v0, %v3662_v56  ;;  %v3907_v54 = vmul.f32 %v7507_v28, %v3906_v50  ;;  %vm3911_vm11 = vmor %vm3909_vm2, %vm3910_vm13  ;;  %v3887_v55 = vsel %vm3884_vm1, %v3886_v4, %v3882_v24  ;;  %v3916_v59 = vor.u32 1.1754944e-38, %v3915_v36  ;;  %v3953_v0 = vpop.permute.xlu1 %3952 }
 0x4a4   : >> { %v3926_v42 = vmul.f32 %v4756_v57, %v3812_v52  ;;  %v3948_v52 = vpop.permute.xlu0 %3947  ;;  %vm3914_vm14 = vcmp.eq.f32.partialorder %v3913_v51, 8.507059e+37 }
 0x4a5   : >> { %4757 = vtanh.f32 %v3747_v31  ;;  %v3908_v39 = vadd.f32 %v7507_v28, %v3907_v54 }
 0x4a6   : >> { %v7530_v2 = vadd.f32 %v3926_v42, %v3923_v40  }
 0x4a7   : >> { %v3912_v44 = vsel %vm3911_vm11, %v7507_v28, %v3908_v39 }
 0x4a8   : >> { %4759 = vtanh.f32 %v7530_v2  ;;  %v3917_v26 = vsel %vm3914_vm14, %v3916_v59, %v3912_v44 }
 0x4a9   : >> { %4761 = vtanh.f32 %v7528_v3 }
 0x4ab   : >> { %v4758_v53 = vpop.eup %4757 }
 0x4ac   : >> { %v3927_v1 = vmul.f32 %v4758_v53, %v3827_v48  ;;  %v3970_v28 = vpop.permute.xlu0 %3969 }
 0x4ad   : >> { %v3972_v15 = vperm.slane %v3970_v28, 0 }
 0x4ae   : >> { %v4760_v63 = vpop.eup %4759  ;;  %v3930_v1 = vadd.f32 %v3927_v1, %v3924_v23  }
 0x4af   : >> { %v4762_v22 = vpop.eup %4761  ;;  %v3935_v5 = vmul.f32 %v4760_v63, %v3902_v47  }
 0x4b0   : >> { %4763 = vtanh.f32 %v3930_v1  ;;  %v3934_v6 = vmul.f32 %v4762_v22, %v3887_v55  }
 0x4b1   : >> { %v3956_v25 = vmul.f32 %v3948_v52, %v3935_v5 }
 0x4b2   : >> { %v3955_v56 = vmul.f32 %v7280_v20, %v3934_v6 }
 0x4b4   : >> { %v3958_v61 = vadd.f32 %v3956_v25, %v3955_v56 }
 0x4b6   : >> { %v4764_v32 = vpop.eup %4763 }
 0x4b7   : >> { %v3936_v4 = vmul.f32 %v4764_v32, %v3917_v26  }
 0x4b9   : >> { %v3957_v30 = vmul.f32 %v3953_v0, %v3936_v4 }
 0x4bb   : >> { %v3959_v10 = vadd.f32 %v3958_v61, %v3957_v30 }
 0x4bd   : >> { %v3960_v57 = vrot.slane %v3959_v10, 4 }
 0x4bf   : >> { %v3961_v49 = vadd.f32 %v3960_v57, %v3959_v10 }
 0x4c1   : >> { %v3962_v17 = vrot.slane %v3961_v49, 2 }
 0x4c3   : >> { %v3963_v60 = vadd.f32 %v3962_v17, %v3961_v49 }
 0x4c5   : >> { %v3964_v31 = vrot.slane %v3963_v60, 1 }
 0x4c7   : >> { %v3965_v40 = vadd.f32 %v3964_v31, %v3963_v60  ;;  %366 = sbr.rel (!%p364_p4) target bundleno = 17 (0x11), region = 105 }
 0x4c9   : >> { %v3973_v42 = vadd.f32 %v3972_v15, %v3965_v40 }
 0x4cb   : >> { %4350 = vst [vmem:[%s6368_s26 + $0x3] sm:$0x1] %v3973_v42 }
 0x4cc PF: > { %s22_s15 = sadd.s32 1, %s4814_s15  }
 0x4cd   : > { %p19_p5 = scmp.ge.s32.totalorder %s22_s15, 4  }
 0x4cf   :  { %21 = sbr.rel (!%p19_p5) target bundleno = 3 (0x3), region = 116 }

</bundles_post_ra>
